<compile_context>
chip_gen: v5e
topology: v5e:2x2
jax: 0.10.0
libtpu: 0.0.40
codegen_flags: <defaults>
</compile_context>

<pallas_src>
import functools

import jax
import jax.numpy as jnp
from jax.experimental import pallas as pl
from jax.experimental.pallas import tpu as pltpu

# ----------------------------------------------------------------------------
# Hyper-parameters (small shapes consistent with TCNTrajGlobal.__init__)
# ----------------------------------------------------------------------------
BATCH         = 2
OBSERVE_LEN   = 8      # args.observe_length
PREDICT_LEN   = 4      # model_opts['predict_length']
OUTPUT_DIM    = 4      # model_opts['output_dim']
ENC_IN_DIM    = 4      # model_opts['enc_in_dim']   (bbox features)
DEC_OUT_DIM   = 32     # model_opts['dec_out_dim']  (TCN channel width)
N_LAYERS      = 2      # model_opts['n_layers']
KERNEL_SIZE   = 3      # model_opts['kernel_size']
FEAT_DIM      = 512    # dim of precomputed global feature maps
CNN_FC_HID1   = 1024
CNN_FC_HID2   = 768
CNN_EMBED_DIM = 512
HEAD_HID      = 64
BN_EPS        = 1e-5
WEIGHT_DTYPE  = jnp.bfloat16   # weights streamed in bf16, accumulate in f32

# Derived packing constants
TAPS_W      = KERNEL_SIZE * DEC_OUT_DIM       # 96  (tap-concatenated conv width)
L0_IN_W     = TAPS_W + DEC_OUT_DIM            # 128 (conv1 taps + 1x1 downsample)
HEAD1_ROWS  = DEC_OUT_DIM * OBSERVE_LEN       # 256
HEAD_W_ROWS = HEAD1_ROWS + 2 * HEAD_HID       # 384
N_OUT       = PREDICT_LEN * OUTPUT_DIM        # 16

# bias-vector layout (all offsets 128-aligned -> lane-aligned static slices)
B_FC2, B_FC3 = 0, 768
B_L0B1, B_L0B2, B_L0BD = 1280, 1408, 1536
B_L1B1, B_L1B2 = 1664, 1792
B_H1, B_H2, B_H3 = 1920, 2048, 2176
BIAS_LEN = 2304

FC_CHUNK = 512   # fc1-out / fc2-in streaming chunk (multiple of 128)


def _mish(y):
  # mish(y) = y * tanh(softplus(y)); numerically stable softplus
  sp = jnp.log(1.0 + jnp.exp(-jnp.abs(y))) + jnp.maximum(y, 0.0)
  return y * jnp.tanh(sp)


# ----------------------------------------------------------------------------
# Fused forward kernel (entire model; grid streams fc1/fc2 weight chunks)
# ----------------------------------------------------------------------------
def _fused_forward_kernel(
    feats_ref, bbox_ref, fc1w_ref, fc1b_ref, fc2w_ref, fc3w_ref,
    w512_ref, wbbox_ref, tcnw_ref, headw_ref, bias_ref,
    out_ref, acc2_ref, *, B, T, ksize):
  f32 = jnp.float32
  C = DEC_OUT_DIM
  BT = B * T
  chunk = pl.program_id(0)
  last = pl.num_programs(0) - 1

  def mm(x, w):
    # bf16 x bf16 -> f32 accumulation on the MXU
    return jnp.dot(x.astype(WEIGHT_DTYPE), w, preferred_element_type=f32)

  # --- streamed ResCNNEncoder fc1 -> relu -> fc2 partial sum (per chunk) ---
  # BN already folded into fc1/fc2 at pack time; ReLU is per-column so
  # chunking fc1's outputs / fc2's inputs is exact.
  x1 = jnp.maximum(mm(feats_ref[...], fc1w_ref[...]) + fc1b_ref[...], 0.0)
  part = mm(x1, fc2w_ref[...])                        # (BT, 768) partial

  @pl.when(chunk == 0)
  def _():
    acc2_ref[...] = part

  @pl.when(chunk > 0)
  def _():
    acc2_ref[...] = acc2_ref[...] + part

  # --- everything past fc2 only runs on the last chunk ---
  @pl.when(chunk == last)
  def _():
    def bvec(off, n):                                  # (1, n) f32 bias slice
      return bias_ref[:, off:off + n]

    x2 = jnp.maximum(acc2_ref[...] + bvec(B_FC2, CNN_FC_HID2), 0.0)
    vis = mm(x2, fc3w_ref[...]) + bvec(B_FC3, CNN_EMBED_DIM)   # (BT, 512)
    bbox = bbox_ref[...]                                       # (BT, 4)

    pos = jax.lax.broadcasted_iota(jnp.int32, (BT, 1), 0) % T  # time within seq

    def shift_rows(v, s):
      # causal shift by s steps within each length-T sequence (zero fill);
      # masking on `pos` prevents cross-batch leakage.
      if s == 0:
        return v
      z = jnp.zeros((s, v.shape[1]), v.dtype)
      shifted = jnp.concatenate([z, v[:BT - s, :]], axis=0)
      return jnp.where(pos >= s, shifted, 0.0)

    def tap_sum(prod, dilation):
      # prod: (BT, ksize*C) tap-concatenated products of the UNshifted input;
      # shift/mask the narrow 32-wide outputs instead of the wide inputs.
      acc = prod[:, (ksize - 1) * C:ksize * C]         # last tap: shift 0
      for j in range(ksize - 1):
        acc = acc + shift_rows(prod[:, j * C:(j + 1) * C],
                               (ksize - 1 - j) * dilation)
      return acc

    # TCN layer 0 (Cin=512+4 -> 32, dilation 1): conv1 taps and the 1x1
    # downsample residual come out of ONE 128-wide matmul per input stream.
    p0 = mm(vis, w512_ref[...]) + mm(bbox, wbbox_ref[...])     # (BT, 128)
    c1 = jnp.maximum(tap_sum(p0[:, :TAPS_W], 1) + bvec(B_L0B1, C), 0.0)
    c2 = jnp.maximum(tap_sum(mm(c1, tcnw_ref[0]), 1) + bvec(B_L0B2, C), 0.0)
    res = p0[:, TAPS_W:] + bvec(B_L0BD, C)                     # downsample(x)
    h = jnp.maximum(c2 + res, 0.0)                             # (BT, 32)

    # TCN layer 1 (32 -> 32, dilation 2, identity residual)
    c1 = jnp.maximum(tap_sum(mm(h, tcnw_ref[1]), 2) + bvec(B_L1B1, C), 0.0)
    c2 = jnp.maximum(tap_sum(mm(c1, tcnw_ref[2]), 2) + bvec(B_L1B2, C), 0.0)
    h = jnp.maximum(c2 + h, 0.0)                               # (BT, 32)

    # Output head.  PyTorch's channel-major flatten is folded into head1's
    # row layout (row = t*C + c), so a per-timestep row gather + small matmul
    # replaces any in-kernel transpose/reshape and the old masked matmuls.
    y = jnp.zeros((B, HEAD_HID), f32) + bvec(B_H1, HEAD_HID)
    for t in range(T):
      rows_t = jnp.concatenate(
          [h[b * T + t:b * T + t + 1, :] for b in range(B)], axis=0)  # (B, C)
      y = y + mm(rows_t, headw_ref[t * C:(t + 1) * C, :])
    y = _mish(y)                                                      # Lin+BN+Mish
    y = _mish(mm(y, headw_ref[HEAD1_ROWS:HEAD1_ROWS + HEAD_HID, :])
              + bvec(B_H2, HEAD_HID))                                 # Lin+BN+Mish
    y = mm(y, headw_ref[HEAD1_ROWS + HEAD_HID:HEAD_W_ROWS, :])[:, :N_OUT] \
        + bvec(B_H3, N_OUT)                                           # Linear
    out_ref[...] = jnp.tanh(y)                                        # (B, 16)


# ----------------------------------------------------------------------------
# pallas_call wrapper
# ----------------------------------------------------------------------------
def _full_spec(shape):
  nd = len(shape)
  return pl.BlockSpec(tuple(shape), lambda c, nd=nd: (0,) * nd)


@jax.jit
def tcn_traj_global_forward(packed, global_featmaps, bboxes):
  B, T, F = global_featmaps.shape
  feats = global_featmaps.reshape(B * T, F).astype(WEIGHT_DTYPE)  # bf16 DMA
  bbox = bboxes.reshape(B * T, bboxes.shape[-1]).astype(jnp.float32)

  n_chunks = CNN_FC_HID1 // FC_CHUNK                              # = 2
  kernel = functools.partial(_fused_forward_kernel, B=B, T=T, ksize=KERNEL_SIZE)

  in_specs = [
      _full_spec(feats.shape),                                    # feats
      _full_spec(bbox.shape),                                     # bbox
      pl.BlockSpec((FEAT_DIM, FC_CHUNK), lambda c: (0, c)),       # fc1_w chunk
      pl.BlockSpec((1, FC_CHUNK), lambda c: (0, c)),              # fc1_b chunk
      pl.BlockSpec((FC_CHUNK, CNN_FC_HID2), lambda c: (c, 0)),    # fc2_w chunk
      _full_spec(packed["fc3_w"].shape),                          # fc3_w
      _full_spec(packed["w512"].shape),                           # conv1 vis + downsample
      _full_spec(packed["wbbox"].shape),                          # conv1 bbox + downsample
      _full_spec(packed["tcn_w"].shape),                          # small TCN convs
      _full_spec(packed["head_w"].shape),                         # head weights
      _full_spec(packed["biases"].shape),                         # all biases
  ]

  out = pl.pallas_call(
      kernel,
      out_shape=jax.ShapeDtypeStruct((B, N_OUT), jnp.float32),
      grid=(n_chunks,),
      in_specs=in_specs,
      out_specs=pl.BlockSpec((B, N_OUT), lambda c: (0, 0)),
      scratch_shapes=[pltpu.VMEM((B * T, CNN_FC_HID2), jnp.float32)],
      compiler_params=pltpu.CompilerParams(
          dimension_semantics=("arbitrary",),
          vmem_limit_bytes=12 * 1024 * 1024),
  )(feats, bbox, packed["fc1_w"], packed["fc1_b"], packed["fc2_w"],
    packed["fc3_w"], packed["w512"], packed["wbbox"], packed["tcn_w"],
    packed["head_w"], packed["biases"])
  return out.reshape(B, PREDICT_LEN, OUTPUT_DIM)


# ----------------------------------------------------------------------------
# Deterministic parameter initialization (PyTorch-like raw params)
# ----------------------------------------------------------------------------
def init_linear(key, din, dout, scale=0.02):
  kw, kb = jax.random.split(key)
  W = scale * jax.random.normal(kw, (din, dout), jnp.float32)
  b = 0.01 * jax.random.normal(kb, (dout,), jnp.float32)
  return W, b


def init_bn(key, d):
  k1, k2, k3, k4 = jax.random.split(key, 4)
  gamma = 1.0 + 0.1 * jax.random.normal(k1, (d,), jnp.float32)
  beta = 0.05 * jax.random.normal(k2, (d,), jnp.float32)
  mean = 0.05 * jax.random.normal(k3, (d,), jnp.float32)
  var = 0.9 + 0.2 * jax.random.uniform(k4, (d,), jnp.float32)
  return gamma, beta, mean, var


def init_wn_conv(key, cin, cout, k):
  """weight_norm(Conv1d): w = g * v / ||v|| (norm over (cin, k) per out-channel)."""
  kv, kg, kb = jax.random.split(key, 3)
  v = 0.05 * jax.random.normal(kv, (cout, cin, k), jnp.float32)
  g = 1.0 + 0.1 * jax.random.normal(kg, (cout,), jnp.float32)
  norm = jnp.sqrt(jnp.sum(v * v, axis=(1, 2), keepdims=True) + 1e-12)
  w = v / norm * g[:, None, None]             # (cout, cin, k) -- PyTorch layout
  w_taps = jnp.transpose(w, (2, 1, 0))        # (k, cin, cout) -- kernel layout
  b = 0.01 * jax.random.normal(kb, (cout,), jnp.float32)
  return w_taps, b


def init_tcn_layer(key, cin, cout, k):
  k1, k2, k3 = jax.random.split(key, 3)
  w1, b1 = init_wn_conv(k1, cin, cout, k)
  w2, b2 = init_wn_conv(k2, cout, cout, k)
  layer = dict(w1=w1, b1=b1, w2=w2, b2=b2, has_down=cin != cout)
  if cin != cout:
    kd1, kd2 = jax.random.split(k3)
    layer["wd"] = 0.05 * jax.random.normal(kd1, (cin, cout), jnp.float32)
    layer["bd"] = 0.01 * jax.random.normal(kd2, (cout,), jnp.float32)
  return layer


def init_raw_params(key):
  keys = jax.random.split(key, 16)
  p = {}
  p["fc1"] = init_linear(keys[0], FEAT_DIM, CNN_FC_HID1)
  p["bn1"] = init_bn(keys[1], CNN_FC_HID1)
  p["fc2"] = init_linear(keys[2], CNN_FC_HID1, CNN_FC_HID2)
  p["bn2"] = init_bn(keys[3], CNN_FC_HID2)
  p["fc3"] = init_linear(keys[4], CNN_FC_HID2, CNN_EMBED_DIM)
  tcn_in = CNN_EMBED_DIM + ENC_IN_DIM
  p["tcn"] = []
  for li in range(N_LAYERS):
    cin = tcn_in if li == 0 else DEC_OUT_DIM
    p["tcn"].append(init_tcn_layer(keys[5 + li], cin, DEC_OUT_DIM, KERNEL_SIZE))
  p["head1"] = init_linear(keys[8], DEC_OUT_DIM * OBSERVE_LEN, HEAD_HID)
  p["hbn1"] = init_bn(keys[9], HEAD_HID)
  p["head2"] = init_linear(keys[10], HEAD_HID, HEAD_HID)
  p["hbn2"] = init_bn(keys[11], HEAD_HID)
  p["head3"] = init_linear(keys[12], HEAD_HID, OUTPUT_DIM * PREDICT_LEN)
  return p


# ----------------------------------------------------------------------------
# One-time parameter packing: BN fold + bf16 cast + consolidated layouts
# ----------------------------------------------------------------------------
def fold_bn_into_linear(W, b, bn):
  gamma, beta, mean, var = bn
  s = gamma / jnp.sqrt(var + BN_EPS)
  return W * s[None, :], (b - mean) * s + beta


def pack_params(p, weight_dtype=WEIGHT_DTYPE):
  """Done ONCE at init: fold eval-mode BatchNorm into Linear weights, cast
  weights to bf16, tap-concatenate all conv weights, fuse the layer-0 1x1
  downsample into the same matmul slab, fold the channel-major flatten into
  head1's row layout, and place every bias in one 128-aligned f32 vector."""
  def w(x): return x.astype(weight_dtype)
  C, T, K = DEC_OUT_DIM, OBSERVE_LEN, KERNEL_SIZE

  W1, B1 = fold_bn_into_linear(*p["fc1"], p["bn1"])
  W2, B2 = fold_bn_into_linear(*p["fc2"], p["bn2"])
  W3, B3 = p["fc3"]

  l0, l1 = p["tcn"]                 # exactly 2 layers; only layer 0 has a downsample

  def cat_taps(w_taps):
    # (k, cin, cout) -> (cin, k*cout): column block j holds tap j
    return jnp.transpose(w_taps, (1, 0, 2)).reshape(w_taps.shape[1], K * C)

  w1_cat = cat_taps(l0["w1"])                                       # (516, 96)
  w512 = jnp.concatenate(
      [w1_cat[:CNN_EMBED_DIM], l0["wd"][:CNN_EMBED_DIM]], axis=1)   # (512, 128)
  wbbox = jnp.concatenate(
      [w1_cat[CNN_EMBED_DIM:], l0["wd"][CNN_EMBED_DIM:]], axis=1)   # (4, 128)
  tcn_w = jnp.stack(
      [cat_taps(l0["w2"]), cat_taps(l1["w1"]), cat_taps(l1["w2"])]) # (3, 32, 96)

  H1, HB1 = fold_bn_into_linear(*p["head1"], p["hbn1"])
  H2, HB2 = fold_bn_into_linear(*p["head2"], p["hbn2"])
  H3, HB3 = p["head3"]
  # (C*T, 64) -> (C, T, 64) -> (T, C, 64) -> (T*C, 64): folds channel-major flatten
  H1p = jnp.transpose(H1.reshape(C, T, HEAD_HID), (1, 0, 2)).reshape(T * C, HEAD_HID)
  H3p = jnp.pad(H3, ((0, 0), (0, HEAD_HID - H3.shape[1])))          # 16 -> 64 cols
  head_w = jnp.concatenate([H1p, H2, H3p], axis=0)                  # (384, 64)

  biases = jnp.zeros((BIAS_LEN,), jnp.float32)
  def put(vec, off, v): return vec.at[off:off + v.shape[0]].set(v)
  biases = put(biases, B_FC2, B2)
  biases = put(biases, B_FC3, B3)
  biases = put(biases, B_L0B1, l0["b1"])
  biases = put(biases, B_L0B2, l0["b2"])
  biases = put(biases, B_L0BD, l0["bd"])
  biases = put(biases, B_L1B1, l1["b1"])
  biases = put(biases, B_L1B2, l1["b2"])
  biases = put(biases, B_H1, HB1)
  biases = put(biases, B_H2, HB2)
  biases = put(biases, B_H3, HB3)

  return dict(
      fc1_w=w(W1), fc1_b=B1.reshape(1, -1).astype(jnp.float32),
      fc2_w=w(W2), fc3_w=w(W3),
      w512=w(w512), wbbox=w(wbbox), tcn_w=w(tcn_w), head_w=w(head_w),
      biases=biases.reshape(1, -1),
  )


# ----------------------------------------------------------------------------
# Pure-JAX reference (direct dense formulation) for correctness checking
# ----------------------------------------------------------------------------
def reference_forward(pk, global_featmaps, bboxes):
  B, T, F = global_featmaps.shape
  f32 = jnp.float32
  C, K = DEC_OUT_DIM, KERNEL_SIZE
  bias = pk["biases"][0]

  def mm(x, w):
    return jnp.dot(x.astype(WEIGHT_DTYPE), w, preferred_element_type=f32)

  x = global_featmaps.reshape(B * T, F)
  x = jnp.maximum(mm(x, pk["fc1_w"]) + pk["fc1_b"], 0.0)
  x = jnp.maximum(mm(x, pk["fc2_w"]) + bias[B_FC2:B_FC2 + CNN_FC_HID2], 0.0)
  vis = mm(x, pk["fc3_w"]) + bias[B_FC3:B_FC3 + CNN_EMBED_DIM]
  h_in = jnp.concatenate([vis.reshape(B, T, CNN_EMBED_DIM),
                          bboxes.astype(f32)], axis=2)            # (B, T, 516)

  def causal_conv(v, w_taps, bvec, dilation):
    pad = (K - 1) * dilation
    vp = jnp.pad(v, ((0, 0), (pad, 0), (0, 0)))
    out = None
    for j in range(K):
      vs = vp[:, j * dilation:j * dilation + T, :]
      c = jnp.einsum("btc,co->bto", vs.astype(WEIGHT_DTYPE), w_taps[j],
                     preferred_element_type=f32)
      out = c if out is None else out + c
    return out + bvec

  w1_taps = [jnp.concatenate([pk["w512"][:, j * C:(j + 1) * C],
                              pk["wbbox"][:, j * C:(j + 1) * C]], axis=0)
             for j in range(K)]
  wd = jnp.concatenate([pk["w512"][:, TAPS_W:], pk["wbbox"][:, TAPS_W:]], axis=0)
  w2_taps = [pk["tcn_w"][0][:, j * C:(j + 1) * C] for j in range(K)]
  l1w1_taps = [pk["tcn_w"][1][:, j * C:(j + 1) * C] for j in range(K)]
  l1w2_taps = [pk["tcn_w"][2][:, j * C:(j + 1) * C] for j in range(K)]

  c1 = jnp.maximum(causal_conv(h_in, w1_taps, bias[B_L0B1:B_L0B1 + C], 1), 0.0)
  c2 = jnp.maximum(causal_conv(c1, w2_taps, bias[B_L0B2:B_L0B2 + C], 1), 0.0)
  res = jnp.einsum("btc,co->bto", h_in.astype(WEIGHT_DTYPE), wd,
                   preferred_element_type=f32) + bias[B_L0BD:B_L0BD + C]
  h0 = jnp.maximum(c2 + res, 0.0)
  c1 = jnp.maximum(causal_conv(h0, l1w1_taps, bias[B_L1B1:B_L1B1 + C], 2), 0.0)
  c2 = jnp.maximum(causal_conv(c1, l1w2_taps, bias[B_L1B2:B_L1B2 + C], 2), 0.0)
  h1 = jnp.maximum(c2 + h0, 0.0)                                  # (B, T, C)

  flat = jnp.transpose(h1, (0, 2, 1)).reshape(B, C * T)           # channel-major
  W1_ct = jnp.transpose(pk["head_w"][:T * C, :].reshape(T, C, HEAD_HID),
                        (1, 0, 2)).reshape(C * T, HEAD_HID)
  y = _mish(mm(flat, W1_ct) + bias[B_H1:B_H1 + HEAD_HID])
  y = _mish(mm(y, pk["head_w"][HEAD1_ROWS:HEAD1_ROWS + HEAD_HID, :])
            + bias[B_H2:B_H2 + HEAD_HID])
  y = jnp.tanh(mm(y, pk["head_w"][HEAD1_ROWS + HEAD_HID:HEAD_W_ROWS, :])[:, :N_OUT]
               + bias[B_H3:B_H3 + N_OUT])
  return y.reshape(B, PREDICT_LEN, OUTPUT_DIM)


# ----------------------------------------------------------------------------
if __name__ == "__main__":
  key = jax.random.PRNGKey(0)
  kp, kf, kb = jax.random.split(key, 3)

  raw_params = init_raw_params(kp)
  packed = pack_params(raw_params)   # BN fold + bf16 cast + consolidation: once

  global_featmaps = jax.random.normal(
      kf, (BATCH, OBSERVE_LEN, FEAT_DIM), jnp.float32)
  bboxes = jax.random.uniform(
      kb, (BATCH, OBSERVE_LEN, ENC_IN_DIM), jnp.float32)

  out = jax.block_until_ready(
      tcn_traj_global_forward(packed, global_featmaps, bboxes))
  assert out.shape == (BATCH, PREDICT_LEN, OUTPUT_DIM), out.shape
  assert bool(jnp.all(jnp.isfinite(out)))

  ref = jax.block_until_ready(
      jax.jit(reference_forward)(packed, global_featmaps, bboxes))
  max_err = float(jnp.max(jnp.abs(out - ref)))
  assert bool(jnp.allclose(out, ref, rtol=2e-2, atol=2e-3)), max_err

  print("KERNEL_OK")
</pallas_src>

<mosaic_0001>
module attributes {stable_mosaic.version = 11 : i64} {
  func.func @_fused_forward_kernel(%arg0: i32, %arg1: memref<16x512xbf16, #tpu.memory_space<vmem>>, %arg2: memref<16x4xf32, #tpu.memory_space<vmem>>, %arg3: memref<512x512xbf16, #tpu.memory_space<vmem>>, %arg4: memref<1x512xf32, #tpu.memory_space<vmem>>, %arg5: memref<512x768xbf16, #tpu.memory_space<vmem>>, %arg6: memref<768x512xbf16, #tpu.memory_space<vmem>>, %arg7: memref<512x128xbf16, #tpu.memory_space<vmem>>, %arg8: memref<4x128xbf16, #tpu.memory_space<vmem>>, %arg9: memref<3x32x96xbf16, #tpu.memory_space<vmem>>, %arg10: memref<384x64xbf16, #tpu.memory_space<vmem>>, %arg11: memref<1x2304xf32, #tpu.memory_space<vmem>>, %arg12: memref<2x16xf32, #tpu.memory_space<vmem>>, %arg13: memref<16x768xf32, #tpu.memory_space<vmem>>) attributes {dimension_semantics = [#tpu.dimension_semantics<arbitrary>], iteration_bounds = array<i64: 2>, scalar_prefetch = 0 : i64, scratch_operands = 1 : i64, tpu.core_type = #tpu.core_type<tc>, window_params = [{pipeline_mode = #tpu.pipeline_mode<synchronous>, transform_indices = @transform_0, window_bounds = array<i64: 16, 512>}, {pipeline_mode = #tpu.pipeline_mode<synchronous>, transform_indices = @transform_1, window_bounds = array<i64: 16, 4>}, {transform_indices = @transform_2, window_bounds = array<i64: 512, 512>}, {transform_indices = @transform_3, window_bounds = array<i64: 1, 512>}, {transform_indices = @transform_4, window_bounds = array<i64: 512, 768>}, {pipeline_mode = #tpu.pipeline_mode<synchronous>, transform_indices = @transform_5, window_bounds = array<i64: 768, 512>}, {pipeline_mode = #tpu.pipeline_mode<synchronous>, transform_indices = @transform_6, window_bounds = array<i64: 512, 128>}, {pipeline_mode = #tpu.pipeline_mode<synchronous>, transform_indices = @transform_7, window_bounds = array<i64: 4, 128>}, {pipeline_mode = #tpu.pipeline_mode<synchronous>, transform_indices = @transform_8, window_bounds = array<i64: 3, 32, 96>}, {pipeline_mode = #tpu.pipeline_mode<synchronous>, transform_indices = @transform_9, window_bounds = array<i64: 384, 64>}, {pipeline_mode = #tpu.pipeline_mode<synchronous>, transform_indices = @transform_10, window_bounds = array<i64: 1, 2304>}, {pipeline_mode = #tpu.pipeline_mode<synchronous>, transform_indices = @transform_11, window_bounds = array<i64: 2, 16>}]} {
    %c0 = arith.constant 0 : index
    %c0_0 = arith.constant 0 : index
    %0 = vector.load %arg1[%c0, %c0_0] : memref<16x512xbf16, #tpu.memory_space<vmem>>, vector<16x512xbf16>
    %c0_1 = arith.constant 0 : index
    %c0_2 = arith.constant 0 : index
    %1 = vector.load %arg3[%c0_1, %c0_2] : memref<512x512xbf16, #tpu.memory_space<vmem>>, vector<512x512xbf16>
    %cst = arith.constant dense<0.000000e+00> : vector<16x512xf32>
    %2 = tpu.matmul %0, %1, %cst {dimension_numbers = #tpu.dot_dimension_numbers<[1], [0], [0], [1], [0, 0, 1, 1], [], []>} : vector<16x512xbf16>, vector<512x512xbf16>, vector<16x512xf32> -> vector<16x512xf32>
    %c0_3 = arith.constant 0 : index
    %c0_4 = arith.constant 0 : index
    %3 = vector.load %arg4[%c0_3, %c0_4] : memref<1x512xf32, #tpu.memory_space<vmem>>, vector<1x512xf32>
    %4 = vector.broadcast %3 : vector<1x512xf32> to vector<16x512xf32>
    %5 = arith.addf %2, %4 : vector<16x512xf32>
    %cst_5 = arith.constant 0.000000e+00 : f32
    %6 = vector.broadcast %cst_5 : f32 to vector<16x512xf32>
    %7 = arith.maximumf %5, %6 : vector<16x512xf32>
    %c0_6 = arith.constant 0 : index
    %c0_7 = arith.constant 0 : index
    %8 = vector.load %arg5[%c0_6, %c0_7] : memref<512x768xbf16, #tpu.memory_space<vmem>>, vector<512x768xbf16>
    %9 = arith.truncf %7 : vector<16x512xf32> to vector<16x512xbf16>
    %cst_8 = arith.constant dense<0.000000e+00> : vector<16x768xf32>
    %10 = tpu.matmul %9, %8, %cst_8 {dimension_numbers = #tpu.dot_dimension_numbers<[1], [0], [0], [1], [0, 0, 1, 1], [], []>} : vector<16x512xbf16>, vector<512x768xbf16>, vector<16x768xf32> -> vector<16x768xf32>
    %c0_i32 = arith.constant 0 : i32
    %11 = arith.cmpi eq, %arg0, %c0_i32 : i32
    %12 = arith.extui %11 : i1 to i32
    %c0_i32_9 = arith.constant 0 : i32
    %13 = arith.cmpi ne, %12, %c0_i32_9 : i32
    scf.if %13 {
      %c0_13 = arith.constant 0 : index
      %c0_14 = arith.constant 0 : index
      %20 = vector.load %arg13[%c0_13, %c0_14] : memref<16x768xf32, #tpu.memory_space<vmem>>, vector<16x768xf32>
      tpu.vector_store %arg13[%c0_13, %c0_14], %10 {strides = array<i32>} : memref<16x768xf32, #tpu.memory_space<vmem>>, vector<16x768xf32>,
    } else {
    }
    %c0_i32_10 = arith.constant 0 : i32
    %14 = arith.cmpi sgt, %arg0, %c0_i32_10 : i32
    %15 = arith.extui %14 : i1 to i32
    %c0_i32_11 = arith.constant 0 : i32
    %16 = arith.cmpi ne, %15, %c0_i32_11 : i32
    scf.if %16 {
      %c0_13 = arith.constant 0 : index
      %c0_14 = arith.constant 0 : index
      %20 = vector.load %arg13[%c0_13, %c0_14] : memref<16x768xf32, #tpu.memory_space<vmem>>, vector<16x768xf32>
      %21 = arith.addf %20, %10 : vector<16x768xf32>
      %c0_15 = arith.constant 0 : index
      %c0_16 = arith.constant 0 : index
      %22 = vector.load %arg13[%c0_15, %c0_16] : memref<16x768xf32, #tpu.memory_space<vmem>>, vector<16x768xf32>
      tpu.vector_store %arg13[%c0_15, %c0_16], %21 {strides = array<i32>} : memref<16x768xf32, #tpu.memory_space<vmem>>, vector<16x768xf32>,
    } else {
    }
    %c1_i32 = arith.constant 1 : i32
    %17 = arith.cmpi eq, %arg0, %c1_i32 : i32
    %18 = arith.extui %17 : i1 to i32
    %c0_i32_12 = arith.constant 0 : i32
    %19 = arith.cmpi ne, %18, %c0_i32_12 : i32
    scf.if %19 {
      %c0_13 = arith.constant 0 : index
      %c0_14 = arith.constant 0 : index
      %20 = vector.load %arg13[%c0_13, %c0_14] : memref<16x768xf32, #tpu.memory_space<vmem>>, vector<16x768xf32>
      %c0_15 = arith.constant 0 : index
      %c0_16 = arith.constant 0 : index
      %21 = vector.load %arg11[%c0_15, %c0_16] : memref<1x2304xf32, #tpu.memory_space<vmem>>, vector<1x768xf32>
      %22 = vector.broadcast %21 : vector<1x768xf32> to vector<16x768xf32>
      %23 = arith.addf %20, %22 : vector<16x768xf32>
      %cst_17 = arith.constant 0.000000e+00 : f32
      %24 = vector.broadcast %cst_17 : f32 to vector<16x768xf32>
      %25 = arith.maximumf %23, %24 : vector<16x768xf32>
      %c0_18 = arith.constant 0 : index
      %c0_19 = arith.constant 0 : index
      %26 = vector.load %arg6[%c0_18, %c0_19] : memref<768x512xbf16, #tpu.memory_space<vmem>>, vector<768x512xbf16>
      %27 = arith.truncf %25 : vector<16x768xf32> to vector<16x768xbf16>
      %cst_20 = arith.constant dense<0.000000e+00> : vector<16x512xf32>
      %28 = tpu.matmul %27, %26, %cst_20 {dimension_numbers = #tpu.dot_dimension_numbers<[1], [0], [0], [1], [0, 0, 1, 1], [], []>} : vector<16x768xbf16>, vector<768x512xbf16>, vector<16x512xf32> -> vector<16x512xf32>
      %c0_21 = arith.constant 0 : index
      %c768 = arith.constant 768 : index
      %29 = vector.load %arg11[%c0_21, %c768] : memref<1x2304xf32, #tpu.memory_space<vmem>>, vector<1x512xf32>
      %30 = vector.broadcast %29 : vector<1x512xf32> to vector<16x512xf32>
      %31 = arith.addf %28, %30 : vector<16x512xf32>
      %c0_22 = arith.constant 0 : index
      %c0_23 = arith.constant 0 : index
      %32 = vector.load %arg2[%c0_22, %c0_23] : memref<16x4xf32, #tpu.memory_space<vmem>>, vector<16x4xf32>
      %33 = tpu.iota {dimensions = array<i32: 0>} : vector<16x1xi32>
      %c8_i32 = arith.constant 8 : i32
      %c0_i32_24 = arith.constant 0 : i32
      %34 = arith.cmpi eq, %c8_i32, %c0_i32_24 : i32
      %c1_i32_25 = arith.constant 1 : i32
      %35 = arith.select %34, %c1_i32_25, %c8_i32 : i32
      %36 = vector.broadcast %35 : i32 to vector<16x1xi32>
      %37 = arith.remsi %33, %36 : vector<16x1xi32>
      %c0_i32_26 = arith.constant 0 : i32
      %38 = vector.broadcast %c0_i32_26 : i32 to vector<16x1xi32>
      %39 = arith.cmpi ne, %37, %38 : vector<16x1xi32>
      %c0_i32_27 = arith.constant 0 : i32
      %40 = vector.broadcast %c0_i32_27 : i32 to vector<16x1xi32>
      %41 = arith.cmpi slt, %37, %40 : vector<16x1xi32>
      %c0_i32_28 = arith.constant 0 : i32
      %42 = arith.cmpi slt, %35, %c0_i32_28 : i32
      %43 = vector.broadcast %42 : i1 to vector<16x1xi1>
      %44 = vector.broadcast %43 : vector<16x1xi1> to vector<16x1xi1>
      %45 = arith.xori %41, %44 : vector<16x1xi1>
      %46 = arith.andi %45, %39 : vector<16x1xi1>
      %47 = vector.broadcast %35 : i32 to vector<16x1xi32>
      %48 = arith.addi %37, %47 : vector<16x1xi32>
      %49 = arith.select %46, %48, %37 : vector<16x1xi1>, vector<16x1xi32>
      %c0_29 = arith.constant 0 : index
      %c0_30 = arith.constant 0 : index
      %50 = vector.load %arg7[%c0_29, %c0_30] : memref<512x128xbf16, #tpu.memory_space<vmem>>, vector<512x128xbf16>
      %51 = arith.truncf %31 : vector<16x512xf32> to vector<16x512xbf16>
      %cst_31 = arith.constant dense<0.000000e+00> : vector<16x128xf32>
      %52 = tpu.matmul %51, %50, %cst_31 {dimension_numbers = #tpu.dot_dimension_numbers<[1], [0], [0], [1], [0, 0, 1, 1], [], []>} : vector<16x512xbf16>, vector<512x128xbf16>, vector<16x128xf32> -> vector<16x128xf32>
      %c0_32 = arith.constant 0 : index
      %c0_33 = arith.constant 0 : index
      %53 = vector.load %arg8[%c0_32, %c0_33] : memref<4x128xbf16, #tpu.memory_space<vmem>>, vector<4x128xbf16>
      %54 = arith.truncf %32 : vector<16x4xf32> to vector<16x4xbf16>
      %cst_34 = arith.constant dense<0.000000e+00> : vector<16x128xf32>
      %55 = tpu.matmul %54, %53, %cst_34 {dimension_numbers = #tpu.dot_dimension_numbers<[1], [0], [0], [1], [0, 0, 1, 1], [], []>} : vector<16x4xbf16>, vector<4x128xbf16>, vector<16x128xf32> -> vector<16x128xf32>
      %56 = arith.addf %52, %55 : vector<16x128xf32>
      %57 = vector.extract_strided_slice %56 {offsets = [0, 0], sizes = [16, 96], strides = [1, 1]} : vector<16x128xf32> to vector<16x96xf32>
      %58 = vector.extract_strided_slice %57 {offsets = [0, 64], sizes = [16, 32], strides = [1, 1]} : vector<16x96xf32> to vector<16x32xf32>
      %59 = vector.extract_strided_slice %57 {offsets = [0, 0], sizes = [16, 32], strides = [1, 1]} : vector<16x96xf32> to vector<16x32xf32>
      %cst_35 = arith.constant 0.000000e+00 : f32
      %60 = vector.broadcast %cst_35 : f32 to vector<2x32xf32>
      %61 = vector.extract_strided_slice %59 {offsets = [0, 0], sizes = [14, 32], strides = [1, 1]} : vector<16x32xf32> to vector<14x32xf32>
      %62 = tpu.concatenate %60, %61 in 0 : vector<2x32xf32>, vector<14x32xf32> -> vector<16x32xf32>
      %c2_i32 = arith.constant 2 : i32
      %63 = vector.broadcast %c2_i32 : i32 to vector<16x1xi32>
      %64 = arith.cmpi sge, %49, %63 : vector<16x1xi32>
      %cst_36 = arith.constant 0.000000e+00 : f32
      %65 = vector.shape_cast %64 : vector<16x1xi1> to vector<16x1xi1>
      %66 = vector.broadcast %65 : vector<16x1xi1> to vector<16x32xi1>
      %67 = vector.broadcast %cst_36 : f32 to vector<16x32xf32>
      %68 = arith.select %66, %62, %67 : vector<16x32xi1>, vector<16x32xf32>
      %69 = arith.addf %58, %68 : vector<16x32xf32>
      %70 = vector.extract_strided_slice %57 {offsets = [0, 32], sizes = [16, 32], strides = [1, 1]} : vector<16x96xf32> to vector<16x32xf32>
      %cst_37 = arith.constant 0.000000e+00 : f32
      %71 = vector.broadcast %cst_37 : f32 to vector<1x32xf32>
      %72 = vector.extract_strided_slice %70 {offsets = [0, 0], sizes = [15, 32], strides = [1, 1]} : vector<16x32xf32> to vector<15x32xf32>
      %73 = tpu.concatenate %71, %72 in 0 : vector<1x32xf32>, vector<15x32xf32> -> vector<16x32xf32>
      %c1_i32_38 = arith.constant 1 : i32
      %74 = vector.broadcast %c1_i32_38 : i32 to vector<16x1xi32>
      %75 = arith.cmpi sge, %49, %74 : vector<16x1xi32>
      %cst_39 = arith.constant 0.000000e+00 : f32
      %76 = vector.shape_cast %75 : vector<16x1xi1> to vector<16x1xi1>
      %77 = vector.broadcast %76 : vector<16x1xi1> to vector<16x32xi1>
      %78 = vector.broadcast %cst_39 : f32 to vector<16x32xf32>
      %79 = arith.select %77, %73, %78 : vector<16x32xi1>, vector<16x32xf32>
      %80 = arith.addf %69, %79 : vector<16x32xf32>
      %c0_40 = arith.constant 0 : index
      %c1280 = arith.constant 1280 : index
      %81 = vector.load %arg11[%c0_40, %c1280] : memref<1x2304xf32, #tpu.memory_space<vmem>>, vector<1x32xf32>
      %82 = vector.broadcast %81 : vector<1x32xf32> to vector<16x32xf32>
      %83 = arith.addf %80, %82 : vector<16x32xf32>
      %cst_41 = arith.constant 0.000000e+00 : f32
      %84 = vector.broadcast %cst_41 : f32 to vector<16x32xf32>
      %85 = arith.maximumf %83, %84 : vector<16x32xf32>
      %c0_42 = arith.constant 0 : index
      %c0_43 = arith.constant 0 : index
      %c0_44 = arith.constant 0 : index
      %86 = vector.load %arg9[%c0_42, %c0_43, %c0_44] : memref<3x32x96xbf16, #tpu.memory_space<vmem>>, vector<1x32x96xbf16>
      %87 = vector.shape_cast %86 : vector<1x32x96xbf16> to vector<32x96xbf16>
      %88 = arith.truncf %85 : vector<16x32xf32> to vector<16x32xbf16>
      %cst_45 = arith.constant dense<0.000000e+00> : vector<16x96xf32>
      %89 = tpu.matmul %88, %87, %cst_45 {dimension_numbers = #tpu.dot_dimension_numbers<[1], [0], [0], [1], [0, 0, 1, 1], [], []>} : vector<16x32xbf16>, vector<32x96xbf16>, vector<16x96xf32> -> vector<16x96xf32>
      %90 = vector.extract_strided_slice %89 {offsets = [0, 64], sizes = [16, 32], strides = [1, 1]} : vector<16x96xf32> to vector<16x32xf32>
      %91 = vector.extract_strided_slice %89 {offsets = [0, 0], sizes = [16, 32], strides = [1, 1]} : vector<16x96xf32> to vector<16x32xf32>
      %cst_46 = arith.constant 0.000000e+00 : f32
      %92 = vector.broadcast %cst_46 : f32 to vector<2x32xf32>
      %93 = vector.extract_strided_slice %91 {offsets = [0, 0], sizes = [14, 32], strides = [1, 1]} : vector<16x32xf32> to vector<14x32xf32>
      %94 = tpu.concatenate %92, %93 in 0 : vector<2x32xf32>, vector<14x32xf32> -> vector<16x32xf32>
      %c2_i32_47 = arith.constant 2 : i32
      %95 = vector.broadcast %c2_i32_47 : i32 to vector<16x1xi32>
      %96 = arith.cmpi sge, %49, %95 : vector<16x1xi32>
      %cst_48 = arith.constant 0.000000e+00 : f32
      %97 = vector.shape_cast %96 : vector<16x1xi1> to vector<16x1xi1>
      %98 = vector.broadcast %97 : vector<16x1xi1> to vector<16x32xi1>
      %99 = vector.broadcast %cst_48 : f32 to vector<16x32xf32>
      %100 = arith.select %98, %94, %99 : vector<16x32xi1>, vector<16x32xf32>
      %101 = arith.addf %90, %100 : vector<16x32xf32>
      %102 = vector.extract_strided_slice %89 {offsets = [0, 32], sizes = [16, 32], strides = [1, 1]} : vector<16x96xf32> to vector<16x32xf32>
      %cst_49 = arith.constant 0.000000e+00 : f32
      %103 = vector.broadcast %cst_49 : f32 to vector<1x32xf32>
      %104 = vector.extract_strided_slice %102 {offsets = [0, 0], sizes = [15, 32], strides = [1, 1]} : vector<16x32xf32> to vector<15x32xf32>
      %105 = tpu.concatenate %103, %104 in 0 : vector<1x32xf32>, vector<15x32xf32> -> vector<16x32xf32>
      %c1_i32_50 = arith.constant 1 : i32
      %106 = vector.broadcast %c1_i32_50 : i32 to vector<16x1xi32>
      %107 = arith.cmpi sge, %49, %106 : vector<16x1xi32>
      %cst_51 = arith.constant 0.000000e+00 : f32
      %108 = vector.shape_cast %107 : vector<16x1xi1> to vector<16x1xi1>
      %109 = vector.broadcast %108 : vector<16x1xi1> to vector<16x32xi1>
      %110 = vector.broadcast %cst_51 : f32 to vector<16x32xf32>
      %111 = arith.select %109, %105, %110 : vector<16x32xi1>, vector<16x32xf32>
      %112 = arith.addf %101, %111 : vector<16x32xf32>
      %c0_52 = arith.constant 0 : index
      %c1408 = arith.constant 1408 : index
      %113 = vector.load %arg11[%c0_52, %c1408] : memref<1x2304xf32, #tpu.memory_space<vmem>>, vector<1x32xf32>
      %114 = vector.broadcast %113 : vector<1x32xf32> to vector<16x32xf32>
      %115 = arith.addf %112, %114 : vector<16x32xf32>
      %cst_53 = arith.constant 0.000000e+00 : f32
      %116 = vector.broadcast %cst_53 : f32 to vector<16x32xf32>
      %117 = arith.maximumf %115, %116 : vector<16x32xf32>
      %118 = vector.extract_strided_slice %56 {offsets = [0, 96], sizes = [16, 32], strides = [1, 1]} : vector<16x128xf32> to vector<16x32xf32>
      %c0_54 = arith.constant 0 : index
      %c1536 = arith.constant 1536 : index
      %119 = vector.load %arg11[%c0_54, %c1536] : memref<1x2304xf32, #tpu.memory_space<vmem>>, vector<1x32xf32>
      %120 = vector.broadcast %119 : vector<1x32xf32> to vector<16x32xf32>
      %121 = arith.addf %118, %120 : vector<16x32xf32>
      %122 = arith.addf %117, %121 : vector<16x32xf32>
      %cst_55 = arith.constant 0.000000e+00 : f32
      %123 = vector.broadcast %cst_55 : f32 to vector<16x32xf32>
      %124 = arith.maximumf %122, %123 : vector<16x32xf32>
      %c1 = arith.constant 1 : index
      %c0_56 = arith.constant 0 : index
      %c0_57 = arith.constant 0 : index
      %125 = vector.load %arg9[%c1, %c0_56, %c0_57] : memref<3x32x96xbf16, #tpu.memory_space<vmem>>, vector<1x32x96xbf16>
      %126 = vector.shape_cast %125 : vector<1x32x96xbf16> to vector<32x96xbf16>
      %127 = arith.truncf %124 : vector<16x32xf32> to vector<16x32xbf16>
      %cst_58 = arith.constant dense<0.000000e+00> : vector<16x96xf32>
      %128 = tpu.matmul %127, %126, %cst_58 {dimension_numbers = #tpu.dot_dimension_numbers<[1], [0], [0], [1], [0, 0, 1, 1], [], []>} : vector<16x32xbf16>, vector<32x96xbf16>, vector<16x96xf32> -> vector<16x96xf32>
      %129 = vector.extract_strided_slice %128 {offsets = [0, 64], sizes = [16, 32], strides = [1, 1]} : vector<16x96xf32> to vector<16x32xf32>
      %130 = vector.extract_strided_slice %128 {offsets = [0, 0], sizes = [16, 32], strides = [1, 1]} : vector<16x96xf32> to vector<16x32xf32>
      %cst_59 = arith.constant 0.000000e+00 : f32
      %131 = vector.broadcast %cst_59 : f32 to vector<4x32xf32>
      %132 = vector.extract_strided_slice %130 {offsets = [0, 0], sizes = [12, 32], strides = [1, 1]} : vector<16x32xf32> to vector<12x32xf32>
      %133 = tpu.concatenate %131, %132 in 0 : vector<4x32xf32>, vector<12x32xf32> -> vector<16x32xf32>
      %c4_i32 = arith.constant 4 : i32
      %134 = vector.broadcast %c4_i32 : i32 to vector<16x1xi32>
      %135 = arith.cmpi sge, %49, %134 : vector<16x1xi32>
      %cst_60 = arith.constant 0.000000e+00 : f32
      %136 = vector.shape_cast %135 : vector<16x1xi1> to vector<16x1xi1>
      %137 = vector.broadcast %136 : vector<16x1xi1> to vector<16x32xi1>
      %138 = vector.broadcast %cst_60 : f32 to vector<16x32xf32>
      %139 = arith.select %137, %133, %138 : vector<16x32xi1>, vector<16x32xf32>
      %140 = arith.addf %129, %139 : vector<16x32xf32>
      %141 = vector.extract_strided_slice %128 {offsets = [0, 32], sizes = [16, 32], strides = [1, 1]} : vector<16x96xf32> to vector<16x32xf32>
      %cst_61 = arith.constant 0.000000e+00 : f32
      %142 = vector.broadcast %cst_61 : f32 to vector<2x32xf32>
      %143 = vector.extract_strided_slice %141 {offsets = [0, 0], sizes = [14, 32], strides = [1, 1]} : vector<16x32xf32> to vector<14x32xf32>
      %144 = tpu.concatenate %142, %143 in 0 : vector<2x32xf32>, vector<14x32xf32> -> vector<16x32xf32>
      %c2_i32_62 = arith.constant 2 : i32
      %145 = vector.broadcast %c2_i32_62 : i32 to vector<16x1xi32>
      %146 = arith.cmpi sge, %49, %145 : vector<16x1xi32>
      %cst_63 = arith.constant 0.000000e+00 : f32
      %147 = vector.shape_cast %146 : vector<16x1xi1> to vector<16x1xi1>
      %148 = vector.broadcast %147 : vector<16x1xi1> to vector<16x32xi1>
      %149 = vector.broadcast %cst_63 : f32 to vector<16x32xf32>
      %150 = arith.select %148, %144, %149 : vector<16x32xi1>, vector<16x32xf32>
      %151 = arith.addf %140, %150 : vector<16x32xf32>
      %c0_64 = arith.constant 0 : index
      %c1664 = arith.constant 1664 : index
      %152 = vector.load %arg11[%c0_64, %c1664] : memref<1x2304xf32, #tpu.memory_space<vmem>>, vector<1x32xf32>
      %153 = vector.broadcast %152 : vector<1x32xf32> to vector<16x32xf32>
      %154 = arith.addf %151, %153 : vector<16x32xf32>
      %cst_65 = arith.constant 0.000000e+00 : f32
      %155 = vector.broadcast %cst_65 : f32 to vector<16x32xf32>
      %156 = arith.maximumf %154, %155 : vector<16x32xf32>
      %c2 = arith.constant 2 : index
      %c0_66 = arith.constant 0 : index
      %c0_67 = arith.constant 0 : index
      %157 = vector.load %arg9[%c2, %c0_66, %c0_67] : memref<3x32x96xbf16, #tpu.memory_space<vmem>>, vector<1x32x96xbf16>
      %158 = vector.shape_cast %157 : vector<1x32x96xbf16> to vector<32x96xbf16>
      %159 = arith.truncf %156 : vector<16x32xf32> to vector<16x32xbf16>
      %cst_68 = arith.constant dense<0.000000e+00> : vector<16x96xf32>
      %160 = tpu.matmul %159, %158, %cst_68 {dimension_numbers = #tpu.dot_dimension_numbers<[1], [0], [0], [1], [0, 0, 1, 1], [], []>} : vector<16x32xbf16>, vector<32x96xbf16>, vector<16x96xf32> -> vector<16x96xf32>
      %161 = vector.extract_strided_slice %160 {offsets = [0, 64], sizes = [16, 32], strides = [1, 1]} : vector<16x96xf32> to vector<16x32xf32>
      %162 = vector.extract_strided_slice %160 {offsets = [0, 0], sizes = [16, 32], strides = [1, 1]} : vector<16x96xf32> to vector<16x32xf32>
      %cst_69 = arith.constant 0.000000e+00 : f32
      %163 = vector.broadcast %cst_69 : f32 to vector<4x32xf32>
      %164 = vector.extract_strided_slice %162 {offsets = [0, 0], sizes = [12, 32], strides = [1, 1]} : vector<16x32xf32> to vector<12x32xf32>
      %165 = tpu.concatenate %163, %164 in 0 : vector<4x32xf32>, vector<12x32xf32> -> vector<16x32xf32>
      %c4_i32_70 = arith.constant 4 : i32
      %166 = vector.broadcast %c4_i32_70 : i32 to vector<16x1xi32>
      %167 = arith.cmpi sge, %49, %166 : vector<16x1xi32>
      %cst_71 = arith.constant 0.000000e+00 : f32
      %168 = vector.shape_cast %167 : vector<16x1xi1> to vector<16x1xi1>
      %169 = vector.broadcast %168 : vector<16x1xi1> to vector<16x32xi1>
      %170 = vector.broadcast %cst_71 : f32 to vector<16x32xf32>
      %171 = arith.select %169, %165, %170 : vector<16x32xi1>, vector<16x32xf32>
      %172 = arith.addf %161, %171 : vector<16x32xf32>
      %173 = vector.extract_strided_slice %160 {offsets = [0, 32], sizes = [16, 32], strides = [1, 1]} : vector<16x96xf32> to vector<16x32xf32>
      %cst_72 = arith.constant 0.000000e+00 : f32
      %174 = vector.broadcast %cst_72 : f32 to vector<2x32xf32>
      %175 = vector.extract_strided_slice %173 {offsets = [0, 0], sizes = [14, 32], strides = [1, 1]} : vector<16x32xf32> to vector<14x32xf32>
      %176 = tpu.concatenate %174, %175 in 0 : vector<2x32xf32>, vector<14x32xf32> -> vector<16x32xf32>
      %c2_i32_73 = arith.constant 2 : i32
      %177 = vector.broadcast %c2_i32_73 : i32 to vector<16x1xi32>
      %178 = arith.cmpi sge, %49, %177 : vector<16x1xi32>
      %cst_74 = arith.constant 0.000000e+00 : f32
      %179 = vector.shape_cast %178 : vector<16x1xi1> to vector<16x1xi1>
      %180 = vector.broadcast %179 : vector<16x1xi1> to vector<16x32xi1>
      %181 = vector.broadcast %cst_74 : f32 to vector<16x32xf32>
      %182 = arith.select %180, %176, %181 : vector<16x32xi1>, vector<16x32xf32>
      %183 = arith.addf %172, %182 : vector<16x32xf32>
      %c0_75 = arith.constant 0 : index
      %c1792 = arith.constant 1792 : index
      %184 = vector.load %arg11[%c0_75, %c1792] : memref<1x2304xf32, #tpu.memory_space<vmem>>, vector<1x32xf32>
      %185 = vector.broadcast %184 : vector<1x32xf32> to vector<16x32xf32>
      %186 = arith.addf %183, %185 : vector<16x32xf32>
      %cst_76 = arith.constant 0.000000e+00 : f32
      %187 = vector.broadcast %cst_76 : f32 to vector<16x32xf32>
      %188 = arith.maximumf %186, %187 : vector<16x32xf32>
      %189 = arith.addf %188, %124 : vector<16x32xf32>
      %cst_77 = arith.constant 0.000000e+00 : f32
      %190 = vector.broadcast %cst_77 : f32 to vector<16x32xf32>
      %191 = arith.maximumf %189, %190 : vector<16x32xf32>
      %cst_78 = arith.constant 0.000000e+00 : f32
      %192 = vector.broadcast %cst_78 : f32 to vector<2x64xf32>
      %c0_79 = arith.constant 0 : index
      %c1920 = arith.constant 1920 : index
      %193 = vector.load %arg11[%c0_79, %c1920] : memref<1x2304xf32, #tpu.memory_space<vmem>>, vector<1x64xf32>
      %194 = vector.broadcast %193 : vector<1x64xf32> to vector<2x64xf32>
      %195 = arith.addf %192, %194 : vector<2x64xf32>
      %196 = vector.extract_strided_slice %191 {offsets = [0, 0], sizes = [1, 32], strides = [1, 1]} : vector<16x32xf32> to vector<1x32xf32>
      %197 = vector.extract_strided_slice %191 {offsets = [8, 0], sizes = [1, 32], strides = [1, 1]} : vector<16x32xf32> to vector<1x32xf32>
      %198 = tpu.concatenate %196, %197 in 0 : vector<1x32xf32>, vector<1x32xf32> -> vector<2x32xf32>
      %c0_80 = arith.constant 0 : index
      %c0_81 = arith.constant 0 : index
      %199 = vector.load %arg10[%c0_80, %c0_81] : memref<384x64xbf16, #tpu.memory_space<vmem>>, vector<32x64xbf16>
      %200 = arith.truncf %198 : vector<2x32xf32> to vector<2x32xbf16>
      %cst_82 = arith.constant dense<0.000000e+00> : vector<2x64xf32>
      %201 = tpu.matmul %200, %199, %cst_82 {dimension_numbers = #tpu.dot_dimension_numbers<[1], [0], [0], [1], [0, 0, 1, 1], [], []>} : vector<2x32xbf16>, vector<32x64xbf16>, vector<2x64xf32> -> vector<2x64xf32>
      %202 = arith.addf %195, %201 : vector<2x64xf32>
      %203 = vector.extract_strided_slice %191 {offsets = [1, 0], sizes = [1, 32], strides = [1, 1]} : vector<16x32xf32> to vector<1x32xf32>
      %204 = vector.extract_strided_slice %191 {offsets = [9, 0], sizes = [1, 32], strides = [1, 1]} : vector<16x32xf32> to vector<1x32xf32>
      %205 = tpu.concatenate %203, %204 in 0 : vector<1x32xf32>, vector<1x32xf32> -> vector<2x32xf32>
      %c32 = arith.constant 32 : index
      %c0_83 = arith.constant 0 : index
      %206 = vector.load %arg10[%c32, %c0_83] : memref<384x64xbf16, #tpu.memory_space<vmem>>, vector<32x64xbf16>
      %207 = arith.truncf %205 : vector<2x32xf32> to vector<2x32xbf16>
      %cst_84 = arith.constant dense<0.000000e+00> : vector<2x64xf32>
      %208 = tpu.matmul %207, %206, %cst_84 {dimension_numbers = #tpu.dot_dimension_numbers<[1], [0], [0], [1], [0, 0, 1, 1], [], []>} : vector<2x32xbf16>, vector<32x64xbf16>, vector<2x64xf32> -> vector<2x64xf32>
      %209 = arith.addf %202, %208 : vector<2x64xf32>
      %210 = vector.extract_strided_slice %191 {offsets = [2, 0], sizes = [1, 32], strides = [1, 1]} : vector<16x32xf32> to vector<1x32xf32>
      %211 = vector.extract_strided_slice %191 {offsets = [10, 0], sizes = [1, 32], strides = [1, 1]} : vector<16x32xf32> to vector<1x32xf32>
      %212 = tpu.concatenate %210, %211 in 0 : vector<1x32xf32>, vector<1x32xf32> -> vector<2x32xf32>
      %c64 = arith.constant 64 : index
      %c0_85 = arith.constant 0 : index
      %213 = vector.load %arg10[%c64, %c0_85] : memref<384x64xbf16, #tpu.memory_space<vmem>>, vector<32x64xbf16>
      %214 = arith.truncf %212 : vector<2x32xf32> to vector<2x32xbf16>
      %cst_86 = arith.constant dense<0.000000e+00> : vector<2x64xf32>
      %215 = tpu.matmul %214, %213, %cst_86 {dimension_numbers = #tpu.dot_dimension_numbers<[1], [0], [0], [1], [0, 0, 1, 1], [], []>} : vector<2x32xbf16>, vector<32x64xbf16>, vector<2x64xf32> -> vector<2x64xf32>
      %216 = arith.addf %209, %215 : vector<2x64xf32>
      %217 = vector.extract_strided_slice %191 {offsets = [3, 0], sizes = [1, 32], strides = [1, 1]} : vector<16x32xf32> to vector<1x32xf32>
      %218 = vector.extract_strided_slice %191 {offsets = [11, 0], sizes = [1, 32], strides = [1, 1]} : vector<16x32xf32> to vector<1x32xf32>
      %219 = tpu.concatenate %217, %218 in 0 : vector<1x32xf32>, vector<1x32xf32> -> vector<2x32xf32>
      %c96 = arith.constant 96 : index
      %c0_87 = arith.constant 0 : index
      %220 = vector.load %arg10[%c96, %c0_87] : memref<384x64xbf16, #tpu.memory_space<vmem>>, vector<32x64xbf16>
      %221 = arith.truncf %219 : vector<2x32xf32> to vector<2x32xbf16>
      %cst_88 = arith.constant dense<0.000000e+00> : vector<2x64xf32>
      %222 = tpu.matmul %221, %220, %cst_88 {dimension_numbers = #tpu.dot_dimension_numbers<[1], [0], [0], [1], [0, 0, 1, 1], [], []>} : vector<2x32xbf16>, vector<32x64xbf16>, vector<2x64xf32> -> vector<2x64xf32>
      %223 = arith.addf %216, %222 : vector<2x64xf32>
      %224 = vector.extract_strided_slice %191 {offsets = [4, 0], sizes = [1, 32], strides = [1, 1]} : vector<16x32xf32> to vector<1x32xf32>
      %225 = vector.extract_strided_slice %191 {offsets = [12, 0], sizes = [1, 32], strides = [1, 1]} : vector<16x32xf32> to vector<1x32xf32>
      %226 = tpu.concatenate %224, %225 in 0 : vector<1x32xf32>, vector<1x32xf32> -> vector<2x32xf32>
      %c128 = arith.constant 128 : index
      %c0_89 = arith.constant 0 : index
      %227 = vector.load %arg10[%c128, %c0_89] : memref<384x64xbf16, #tpu.memory_space<vmem>>, vector<32x64xbf16>
      %228 = arith.truncf %226 : vector<2x32xf32> to vector<2x32xbf16>
      %cst_90 = arith.constant dense<0.000000e+00> : vector<2x64xf32>
      %229 = tpu.matmul %228, %227, %cst_90 {dimension_numbers = #tpu.dot_dimension_numbers<[1], [0], [0], [1], [0, 0, 1, 1], [], []>} : vector<2x32xbf16>, vector<32x64xbf16>, vector<2x64xf32> -> vector<2x64xf32>
      %230 = arith.addf %223, %229 : vector<2x64xf32>
      %231 = vector.extract_strided_slice %191 {offsets = [5, 0], sizes = [1, 32], strides = [1, 1]} : vector<16x32xf32> to vector<1x32xf32>
      %232 = vector.extract_strided_slice %191 {offsets = [13, 0], sizes = [1, 32], strides = [1, 1]} : vector<16x32xf32> to vector<1x32xf32>
      %233 = tpu.concatenate %231, %232 in 0 : vector<1x32xf32>, vector<1x32xf32> -> vector<2x32xf32>
      %c160 = arith.constant 160 : index
      %c0_91 = arith.constant 0 : index
      %234 = vector.load %arg10[%c160, %c0_91] : memref<384x64xbf16, #tpu.memory_space<vmem>>, vector<32x64xbf16>
      %235 = arith.truncf %233 : vector<2x32xf32> to vector<2x32xbf16>
      %cst_92 = arith.constant dense<0.000000e+00> : vector<2x64xf32>
      %236 = tpu.matmul %235, %234, %cst_92 {dimension_numbers = #tpu.dot_dimension_numbers<[1], [0], [0], [1], [0, 0, 1, 1], [], []>} : vector<2x32xbf16>, vector<32x64xbf16>, vector<2x64xf32> -> vector<2x64xf32>
      %237 = arith.addf %230, %236 : vector<2x64xf32>
      %238 = vector.extract_strided_slice %191 {offsets = [6, 0], sizes = [1, 32], strides = [1, 1]} : vector<16x32xf32> to vector<1x32xf32>
      %239 = vector.extract_strided_slice %191 {offsets = [14, 0], sizes = [1, 32], strides = [1, 1]} : vector<16x32xf32> to vector<1x32xf32>
      %240 = tpu.concatenate %238, %239 in 0 : vector<1x32xf32>, vector<1x32xf32> -> vector<2x32xf32>
      %c192 = arith.constant 192 : index
      %c0_93 = arith.constant 0 : index
      %241 = vector.load %arg10[%c192, %c0_93] : memref<384x64xbf16, #tpu.memory_space<vmem>>, vector<32x64xbf16>
      %242 = arith.truncf %240 : vector<2x32xf32> to vector<2x32xbf16>
      %cst_94 = arith.constant dense<0.000000e+00> : vector<2x64xf32>
      %243 = tpu.matmul %242, %241, %cst_94 {dimension_numbers = #tpu.dot_dimension_numbers<[1], [0], [0], [1], [0, 0, 1, 1], [], []>} : vector<2x32xbf16>, vector<32x64xbf16>, vector<2x64xf32> -> vector<2x64xf32>
      %244 = arith.addf %237, %243 : vector<2x64xf32>
      %245 = vector.extract_strided_slice %191 {offsets = [7, 0], sizes = [1, 32], strides = [1, 1]} : vector<16x32xf32> to vector<1x32xf32>
      %246 = vector.extract_strided_slice %191 {offsets = [15, 0], sizes = [1, 32], strides = [1, 1]} : vector<16x32xf32> to vector<1x32xf32>
      %247 = tpu.concatenate %245, %246 in 0 : vector<1x32xf32>, vector<1x32xf32> -> vector<2x32xf32>
      %c224 = arith.constant 224 : index
      %c0_95 = arith.constant 0 : index
      %248 = vector.load %arg10[%c224, %c0_95] : memref<384x64xbf16, #tpu.memory_space<vmem>>, vector<32x64xbf16>
      %249 = arith.truncf %247 : vector<2x32xf32> to vector<2x32xbf16>
      %cst_96 = arith.constant dense<0.000000e+00> : vector<2x64xf32>
      %250 = tpu.matmul %249, %248, %cst_96 {dimension_numbers = #tpu.dot_dimension_numbers<[1], [0], [0], [1], [0, 0, 1, 1], [], []>} : vector<2x32xbf16>, vector<32x64xbf16>, vector<2x64xf32> -> vector<2x64xf32>
      %251 = arith.addf %244, %250 : vector<2x64xf32>
      %252 = math.absf %251 : vector<2x64xf32>
      %cst_97 = arith.constant 0.000000e+00 : f32
      %253 = vector.broadcast %cst_97 : f32 to vector<2x64xf32>
      %254 = arith.subf %253, %252 : vector<2x64xf32>
      %255 = math.exp %254 : vector<2x64xf32>
      %cst_98 = arith.constant 1.000000e+00 : f32
      %256 = vector.broadcast %cst_98 : f32 to vector<2x64xf32>
      %257 = arith.addf %256, %255 : vector<2x64xf32>
      %258 = math.log %257 : vector<2x64xf32>
      %cst_99 = arith.constant 0.000000e+00 : f32
      %259 = vector.broadcast %cst_99 : f32 to vector<2x64xf32>
      %260 = arith.maximumf %251, %259 : vector<2x64xf32>
      %261 = arith.addf %258, %260 : vector<2x64xf32>
      %262 = math.tanh %261 : vector<2x64xf32>
      %263 = arith.mulf %251, %262 : vector<2x64xf32>
      %c256 = arith.constant 256 : index
      %c0_100 = arith.constant 0 : index
      %264 = vector.load %arg10[%c256, %c0_100] : memref<384x64xbf16, #tpu.memory_space<vmem>>, vector<64x64xbf16>
      %265 = arith.truncf %263 : vector<2x64xf32> to vector<2x64xbf16>
      %cst_101 = arith.constant dense<0.000000e+00> : vector<2x64xf32>
      %266 = tpu.matmul %265, %264, %cst_101 {dimension_numbers = #tpu.dot_dimension_numbers<[1], [0], [0], [1], [0, 0, 1, 1], [], []>} : vector<2x64xbf16>, vector<64x64xbf16>, vector<2x64xf32> -> vector<2x64xf32>
      %c0_102 = arith.constant 0 : index
      %c2048 = arith.constant 2048 : index
      %267 = vector.load %arg11[%c0_102, %c2048] : memref<1x2304xf32, #tpu.memory_space<vmem>>, vector<1x64xf32>
      %268 = vector.broadcast %267 : vector<1x64xf32> to vector<2x64xf32>
      %269 = arith.addf %266, %268 : vector<2x64xf32>
      %270 = math.absf %269 : vector<2x64xf32>
      %cst_103 = arith.constant 0.000000e+00 : f32
      %271 = vector.broadcast %cst_103 : f32 to vector<2x64xf32>
      %272 = arith.subf %271, %270 : vector<2x64xf32>
      %273 = math.exp %272 : vector<2x64xf32>
      %cst_104 = arith.constant 1.000000e+00 : f32
      %274 = vector.broadcast %cst_104 : f32 to vector<2x64xf32>
      %275 = arith.addf %274, %273 : vector<2x64xf32>
      %276 = math.log %275 : vector<2x64xf32>
      %cst_105 = arith.constant 0.000000e+00 : f32
      %277 = vector.broadcast %cst_105 : f32 to vector<2x64xf32>
      %278 = arith.maximumf %269, %277 : vector<2x64xf32>
      %279 = arith.addf %276, %278 : vector<2x64xf32>
      %280 = math.tanh %279 : vector<2x64xf32>
      %281 = arith.mulf %269, %280 : vector<2x64xf32>
      %c320 = arith.constant 320 : index
      %c0_106 = arith.constant 0 : index
      %282 = vector.load %arg10[%c320, %c0_106] : memref<384x64xbf16, #tpu.memory_space<vmem>>, vector<64x64xbf16>
      %283 = arith.truncf %281 : vector<2x64xf32> to vector<2x64xbf16>
      %cst_107 = arith.constant dense<0.000000e+00> : vector<2x64xf32>
      %284 = tpu.matmul %283, %282, %cst_107 {dimension_numbers = #tpu.dot_dimension_numbers<[1], [0], [0], [1], [0, 0, 1, 1], [], []>} : vector<2x64xbf16>, vector<64x64xbf16>, vector<2x64xf32> -> vector<2x64xf32>
      %285 = vector.extract_strided_slice %284 {offsets = [0, 0], sizes = [2, 16], strides = [1, 1]} : vector<2x64xf32> to vector<2x16xf32>
      %c0_108 = arith.constant 0 : index
      %c2176 = arith.constant 2176 : index
      %286 = vector.load %arg11[%c0_108, %c2176] : memref<1x2304xf32, #tpu.memory_space<vmem>>, vector<1x16xf32>
      %287 = vector.broadcast %286 : vector<1x16xf32> to vector<2x16xf32>
      %288 = arith.addf %285, %287 : vector<2x16xf32>
      %289 = math.tanh %288 : vector<2x16xf32>
      %c0_109 = arith.constant 0 : index
      %c0_110 = arith.constant 0 : index
      %290 = vector.load %arg12[%c0_109, %c0_110] : memref<2x16xf32, #tpu.memory_space<vmem>>, vector<2x16xf32>
      tpu.vector_store %arg12[%c0_109, %c0_110], %289 {strides = array<i32>} : memref<2x16xf32, #tpu.memory_space<vmem>>, vector<2x16xf32>,
    } else {
    }
    return
  }
  func.func @transform_0(%arg0: i32) -> (i32, i32) {
    %c0_i32 = arith.constant 0 : i32
    %c0_i32_0 = arith.constant 0 : i32
    %c0_i32_1 = arith.constant 0 : i32
    return %c0_i32, %c0_i32_0 : i32, i32
  }
  func.func @transform_1(%arg0: i32) -> (i32, i32) {
    %c0_i32 = arith.constant 0 : i32
    %c0_i32_0 = arith.constant 0 : i32
    %c0_i32_1 = arith.constant 0 : i32
    return %c0_i32, %c0_i32_0 : i32, i32
  }
  func.func @transform_2(%arg0: i32) -> (i32, i32) {
    %c0_i32 = arith.constant 0 : i32
    %c0_i32_0 = arith.constant 0 : i32
    return %c0_i32, %arg0 : i32, i32
  }
  func.func @transform_3(%arg0: i32) -> (i32, i32) {
    %c0_i32 = arith.constant 0 : i32
    %c0_i32_0 = arith.constant 0 : i32
    return %c0_i32, %arg0 : i32, i32
  }
  func.func @transform_4(%arg0: i32) -> (i32, i32) {
    %c0_i32 = arith.constant 0 : i32
    %c0_i32_0 = arith.constant 0 : i32
    return %arg0, %c0_i32 : i32, i32
  }
  func.func @transform_5(%arg0: i32) -> (i32, i32) {
    %c0_i32 = arith.constant 0 : i32
    %c0_i32_0 = arith.constant 0 : i32
    %c0_i32_1 = arith.constant 0 : i32
    return %c0_i32, %c0_i32_0 : i32, i32
  }
  func.func @transform_6(%arg0: i32) -> (i32, i32) {
    %c0_i32 = arith.constant 0 : i32
    %c0_i32_0 = arith.constant 0 : i32
    %c0_i32_1 = arith.constant 0 : i32
    return %c0_i32, %c0_i32_0 : i32, i32
  }
  func.func @transform_7(%arg0: i32) -> (i32, i32) {
    %c0_i32 = arith.constant 0 : i32
    %c0_i32_0 = arith.constant 0 : i32
    %c0_i32_1 = arith.constant 0 : i32
    return %c0_i32, %c0_i32_0 : i32, i32
  }
  func.func @transform_8(%arg0: i32) -> (i32, i32, i32) {
    %c0_i32 = arith.constant 0 : i32
    %c0_i32_0 = arith.constant 0 : i32
    %c0_i32_1 = arith.constant 0 : i32
    %c0_i32_2 = arith.constant 0 : i32
    return %c0_i32, %c0_i32_0, %c0_i32_1 : i32, i32, i32
  }
  func.func @transform_9(%arg0: i32) -> (i32, i32) {
    %c0_i32 = arith.constant 0 : i32
    %c0_i32_0 = arith.constant 0 : i32
    %c0_i32_1 = arith.constant 0 : i32
    return %c0_i32, %c0_i32_0 : i32, i32
  }
  func.func @transform_10(%arg0: i32) -> (i32, i32) {
    %c0_i32 = arith.constant 0 : i32
    %c0_i32_0 = arith.constant 0 : i32
    %c0_i32_1 = arith.constant 0 : i32
    return %c0_i32, %c0_i32_0 : i32, i32
  }
  func.func @transform_11(%arg0: i32) -> (i32, i32) {
    %c0_i32 = arith.constant 0 : i32
    %c0_i32_0 = arith.constant 0 : i32
    %c0_i32_1 = arith.constant 0 : i32
    return %c0_i32, %c0_i32_0 : i32, i32
  }
}

</mosaic_0001>

<bundles_post_ra>
// kernel: tcn_traj_global_forward.1
= control target key start
LH: loop header
LB: loop body
LE: loop exit
PB: predicated region body
PF: predicated region fallthrough
CT: control target
= control target key end

     0   :  { %s10708_s0 = inlined_call_operand.vmem [shape: bf16[16,512], index: 0, kind: input, shape index: {}]   ;;  %s10709_s1 = inlined_call_operand.vmem [shape: f32[16,4], index: 1, kind: input, shape index: {}]   ;;  %s10710_s2 = inlined_call_operand.hbm [shape: bf16[512,1024], index: 2, kind: input, shape index: {}]   ;;  %s10711_s3 = inlined_call_operand.hbm [shape: f32[1,1024], index: 3, kind: input, shape index: {}]   ;;  %s10712_s4 = inlined_call_operand.hbm [shape: bf16[1024,768], index: 4, kind: input, shape index: {}]   ;;  %s10713_s5 = inlined_call_operand.hbm [shape: bf16[768,512], index: 5, kind: input, shape index: {}]   ;;  %s10714_s6 = inlined_call_operand.hbm [shape: bf16[512,128], index: 6, kind: input, shape index: {}]   ;;  %s10715_s7 = inlined_call_operand.hbm [shape: bf16[4,128], index: 7, kind: input, shape index: {}]   ;;  %s10716_s8 = inlined_call_operand.hbm [shape: bf16[3,32,96], index: 8, kind: input, shape index: {}]   ;;  %s10717_s9 = inlined_call_operand.vmem [shape: bf16[384,64], index: 9, kind: input, shape index: {}]   ;;  %s10718_s10 = inlined_call_operand.hbm [shape: f32[1,2304], index: 10, kind: input, shape index: {}]   ;;  %s10719_s11 = inlined_call_operand.vmem [shape: f32[2,16], index: 11, kind: output, shape index: {}]  }
   0x1   :  { %10727 = sst [smem:[#allocation24_spill]] %s10709_s1 }
   0x2   :  { %10728 = sst [smem:[#allocation25_spill]] %s10711_s3 }
   0x3   :  { %10729 = sst [smem:[#allocation26_spill]] %s10713_s5 }
   0x4   :  { %10730 = sst [smem:[#allocation27_spill]] %s10715_s7 }
   0x5   :  { %10731 = sst [smem:[#allocation28_spill]] %s10717_s9 }
   0x6   :  { %10732 = sst [smem:[#allocation29_spill]] %s10719_s11 }
   0x7   :  { %16 = vsyncpa [#allocation4], 0 }
   0x8   :  { %18 = vsyncpa [#allocation4 + $0x1], 0 }
   0x9   :  { %19 = vsyncpa [#allocation6], 0 }
   0xa   :  { %21 = vsyncpa [#allocation6 + $0x1], 0 }
   0xb   :  { %22 = vsyncpa [#allocation9], 0 }
   0xc   :  { %23 = vsyncpa [#allocation12], 0 }
   0xd   :  { %24 = vsyncpa [#allocation15], 0  ;;  %s9467_s17 = smov 0   ;;  %s9469_s18 = smov 0  }
   0xe   :  { %s9471_s19 = smov 0   ;;  %s9473_s20 = smov 0  }
   0xf LB: > { %10733 = sst [smem:[#allocation21_spill]] %s9387_s19  ;;  %s9491_s24 = sadd.s32 4294967295, %s9391_s20   ;;  %s9391_s20 = sphi %s9473_s20, %s10750_s20   ;;  %s9387_s19 = sphi %s9471_s19, %s10752_s19   ;;  %s9383_s18 = sphi %s9469_s18, %s10754_s18   ;;  %s9379_s17 = sphi %s9467_s17, %s10753_s17  }
  0x10   : > { %s10734_s5 = sld [smem:[#allocation26_spill]]  ;;  %p6034_p0 = scmp.ge.s32.totalorder %s9391_s20, 1 }
  0x11   : > { %p93_p1 = scmp.eq.s32.totalorder %s9491_s24, 0  ;;  %p302_p2 = scmp.lt.s32.totalorder %s9391_s20, 3 }
  0x12   : > { %p6035_p3 = scmp.ne.s32.totalorder %s9491_s24, 0  ;;  %s9393_s26 = smov [#allocation8]  }
  0x13   : > { %p9497_p4 = pnand %p6034_p0, %p302_p2  ;;  %s321_s27 = sshll.u32 %s9393_s26, 4  ;;  %s322_s27 = int_to_ptr.vmem [resolvable:$true] %s321_s27 }
  0x14   : > { %s10736_s7 = sld [smem:[#allocation27_spill]]  ;;  %s9394_s13 = smov [#allocation11]  }
  0x15   : > { %p8996_p5 = pneg %p9497_p4  ;;  %s350_s14 = sshll.u32 %s9394_s13, 4  ;;  %s351_s14 = int_to_ptr.vmem [resolvable:$true] %s350_s14 }
  0x16   : > { %s319_s23 = sshll.u32 %s10734_s5, 4  ;;  %s10720_s15 = smov 256   ;;  %s320_s23 = int_to_ptr.hbm [resolvable:$true] %s319_s23 }
  0x17   : > { %p9508_p6 = pnand %p8996_p5, %p93_p1  ;;  %s10721_s16 = smov 16  }
  0x18   : > { %s9520_s21 = sadd.s32 1, %s9391_s20   ;;  %s79_s22 = sadd.s32 1, %s9387_s19 }
  0x19   : > { %8999 = dma.hbm_to_vmem [thread:$0]  (!%p9508_p6), %s320_s23, 24576, %s322_s27, [#allocation9], %s10720_s15, %s10720_s15, %s10721_s16  }
  0x1a   : > { %s348_s30 = sshll.u32 %s10736_s7, 4  ;;  %10738 = sst [smem:[#allocation22_spill]] %s9520_s21  ;;  %s349_s30 = int_to_ptr.hbm [resolvable:$true] %s348_s30 }
  0x1b   : > { %9005 = dma.hbm_to_vmem [thread:$0]  (!%p9508_p6), %s349_s30, 32, %s351_s14, [#allocation12]  }
  0x1c   : > { %s76_s26 = ssub.s32 %s9391_s20, %s9520_s21  ;;  %p86_p7 = scmp.ne.s32.totalorder %s9387_s19, %s9383_s18 }
  0x1d   : > { %p77_p8 = scmp.eq.s32.totalorder %s76_s26, 0  ;;  %p87_p9 = scmp.eq.s32.totalorder %s9391_s20, 0 }
  0x1e   : > { %p92_p10 = scmp.ne.s32.totalorder %s9383_s18, %s9379_s17  ;;  %p9027_p11 = scmp.lt.s32.totalorder %s9391_s20, 2 }
  0x1f   : > { %s9532_s28 = scalar_select %p77_p8, %s9387_s19, %s79_s22  }
  0x20   : > { %p88_p12 = por %p87_p9, %p86_p7  ;;  %p9536_p13 = por %p93_p1, %p92_p10 }
  0x21   : > { %10739 = sst [smem:[#allocation23_spill]] %s9532_s28  ;;  %s9541_s27 = sand.u32 1, %s9387_s19  }
  0x22   : > { %s412_s29 = sand.u32 1, %s9391_s20   ;;  %p9545_p0 = pnand %p9027_p11, %p88_p12 }
  0x23   : > { %s6044_s17 = sshll.u32 %s9541_s27, 2  ;;  %s6045_s14 = sshll.u32 %s9391_s20, 2 }
  0x24   : > { %s416_s22 = scalar_lea.vmem [#allocation5], %s6044_s17  ;;  %s10742_s3 = sld [smem:[#allocation25_spill]] }
  0x25   : > { %s424_s26 = sshll.u32 %s416_s22, 4  ;;  %s333_s21 = sshll.u32 %s10714_s6, 4  ;;  %s425_s26 = int_to_ptr.vmem [resolvable:$true] %s424_s26  ;;  %s334_s21 = int_to_ptr.hbm [resolvable:$true] %s333_s21 }
  0x26   : > { %s9558_s11 = scalar_lea.sflag [#allocation6], %s412_s29  ;;  %p9165_p5 = pneg %p9545_p0 }
  0x2a   : > { %s420_s5 = scalar_lea.hbm %s10742_s3, %s6045_s14  ;;  %s9168_s16 = scalar_lea.hbm %s10742_s3, 8 }
  0x2b   : > { %s422_s7 = sshll.u32 %s420_s5, 4  ;;  %s423_s7 = int_to_ptr.hbm [resolvable:$true] %s422_s7 }
  0x2c   : > { %s9161_s9 = sshra.s32 %s423_s7, 4  ;;  %s9162_s9 = int_to_ptr.hbm [resolvable:$true] %s9161_s9 }
  0x2d   : > { %s9163_s1 = scalar_lea.hbm %s9162_s9, 4  ;;  %p9169_p9 = scmp.lt.s32.totalorder %s9162_s9, %s10742_s3 }
  0x2e   : > { %p9164_p2 = scmp.ne.s32.totalorder %s9162_s9, %s9163_s1  ;;  %p9170_p10 = scmp.lt.s32.totalorder %s9168_s16, %s9163_s1 }
  0x30   : > { %p9166_p7 = pnand %p9165_p5, %p9164_p2  ;;  %p9171_p11 = por %p9170_p10, %p9169_p9 }
  0x32   : > { %p9167_p8 = pneg %p9166_p7 }
  0x34   : > { %p9172_p12 = pnand %p9171_p11, %p9167_p8 }
  0x36   : > { %9175 = shalt.err (!%p9172_p12)
}
  0x37   : > { %9018 = dma.hbm_to_vmem [thread:$0]  (!%p9545_p0), %s423_s7, 64, %s425_s26, %s9558_s11  }
  0x38   : > { %s9397_s19 = smov [#allocation10]   ;;  %s9398_s30 = smov 64  }
  0x39   : > { %s335_s29 = sshll.u32 %s9397_s19, 4  ;;  %s9399_s22 = smov 4   ;;  %s336_s29 = int_to_ptr.vmem [resolvable:$true] %s335_s29 }
  0x3a   : > { %9002 = dma.hbm_to_vmem [thread:$0]  (!%p9508_p6), %s334_s21, 4096, %s336_s29, [#allocation9], %s9398_s30, %s9398_s30, %s9399_s22  }
  0x3b   : > { %s359_s15 = sshll.u32 %s10716_s8, 4  ;;  %s9400_s5 = smov [#allocation13]   ;;  %s360_s15 = int_to_ptr.hbm [resolvable:$true] %s359_s15 }
  0x3c   : > { %s361_s16 = sshll.u32 %s9400_s5, 4  ;;  %s377_s17 = sshll.u32 %s10718_s10, 4  ;;  %s362_s16 = int_to_ptr.vmem [resolvable:$true] %s361_s16  ;;  %s378_s17 = int_to_ptr.hbm [resolvable:$true] %s377_s17 }
  0x3d   : > { %9008 = dma.hbm_to_vmem [thread:$0]  (!%p9508_p6), %s360_s15, 768, %s362_s16, [#allocation12], %s9398_s30, %s9398_s30, %s9399_s22  }
  0x3e   : > { %s9401_s14 = smov [#allocation14]   ;;  %s8388_s21 = sshll.u32 %s9391_s20, 4 }
  0x3f   : > { %s379_s19 = sshll.u32 %s9401_s14, 4  ;;  %s10743_s29 = sshll.u32 %s9541_s27, 10  ;;  %s380_s19 = int_to_ptr.vmem [resolvable:$true] %s379_s19 }
  0x40   : > { %9011 = dma.hbm_to_vmem [thread:$0]  (!%p9508_p6), %s378_s17, 288, %s380_s19, [#allocation15]  }
  0x41   : > { %s394_s1 = scalar_lea.vmem [#allocation3], %s10743_s29  ;;  %s399_s3 = scalar_lea.hbm %s10710_s2, %s8388_s21 }
  0x42   : > { %s402_s9 = sshll.u32 %s394_s1, 4  ;;  %s400_s7 = sshll.u32 %s399_s3, 4  ;;  %s403_s9 = int_to_ptr.vmem [resolvable:$true] %s402_s9  ;;  %s401_s7 = int_to_ptr.hbm [resolvable:$true] %s400_s7 }
  0x43   : > { %s391_s26 = scalar_lea.sflag [#allocation4], %s9541_s27  ;;  %s9281_s30 = sshra.s32 %s401_s7, 4  ;;  %s9282_s30 = int_to_ptr.hbm [resolvable:$true] %s9281_s30 }
  0x44   : > { %s9283_s22 = scalar_lea.hbm %s9282_s30, 1024  ;;  %s9288_s16 = scalar_lea.hbm %s10710_s2, 2048 }
  0x45   : > { %p9284_p2 = scmp.ne.s32.totalorder %s9282_s30, %s9283_s22  ;;  %p9289_p8 = scmp.lt.s32.totalorder %s9282_s30, %s10710_s2 }
  0x46   : > { %p9290_p9 = scmp.lt.s32.totalorder %s9288_s16, %s9283_s22 }
  0x47   : > { %p9286_p7 = pnand %p9284_p2, %p9165_p5 }
  0x48   : > { %p9291_p10 = por %p9290_p9, %p9289_p8 }
  0x49   : > { %p9287_p6 = pneg %p9286_p7 }
  0x4b   : > { %p9292_p11 = pnand %p9291_p10, %p9287_p6 }
  0x4d   : > { %9295 = shalt.err (!%p9292_p11)
}
  0x4e   : > { %s9402_s3 = smov 512   ;;  %s10744_s28 = smov 16  }
  0x4f   : > { %s10745_s19 = smov 256   ;;  %s8968_s21 = smul.u32 1536, %s9391_s20 }
  0x50   : > { %9015 = dma.hbm_to_vmem [thread:$0]  (!%p9545_p0), %s401_s7, 16384, %s403_s9, %s391_s26, %s9402_s3, %s10745_s19, %s10744_s28  }
  0x51   : > { %s10746_s29 = smul.u32 1536, %s9541_s27  ;;  %s441_s22 = scalar_lea.hbm %s10712_s4, %s8968_s21 }
  0x52   : > { %s442_s15 = sshll.u32 %s441_s22, 4  ;;  %s9318_s27 = scalar_lea.hbm %s10712_s4, 3072  ;;  %s443_s15 = int_to_ptr.hbm [resolvable:$true] %s442_s15 }
  0x53   : > { %s435_s1 = scalar_lea.vmem [#allocation7], %s10746_s29  ;;  %s9311_s16 = sshra.s32 %s443_s15, 4  ;;  %s9312_s16 = int_to_ptr.hbm [resolvable:$true] %s9311_s16 }
  0x54   : > { %s444_s5 = sshll.u32 %s435_s1, 4  ;;  %s9313_s17 = scalar_lea.hbm %s9312_s16, 1536  ;;  %s445_s5 = int_to_ptr.vmem [resolvable:$true] %s444_s5 }
  0x55   : > { %p9314_p12 = scmp.ne.s32.totalorder %s9312_s16, %s9313_s17  ;;  %p9319_p6 = scmp.lt.s32.totalorder %s9312_s16, %s10712_s4 }
  0x56   : > { %p9320_p8 = scmp.lt.s32.totalorder %s9318_s27, %s9313_s17 }
  0x57   : > { %p9316_p2 = pnand %p9314_p12, %p9165_p5 }
  0x58   : > { %p9321_p9 = por %p9320_p8, %p9319_p6 }
  0x59   : > { %p9317_p7 = pneg %p9316_p2 }
  0x5b   : > { %p9322_p10 = pnand %p9321_p9, %p9317_p7 }
  0x5d   : > { %9325 = shalt.err (!%p9322_p10)
}
  0x5e   : > { %s9403_s14 = smov 384   ;;  %s9404_s3 = smov 24  }
  0x5f   : > { %9021 = dma.hbm_to_vmem [thread:$0]  (!%p9545_p0), %s443_s15, 24576, %s445_s5, %s9558_s11, %s9403_s14, %s9403_s14, %s9404_s3  }
  0x60   : > { %456 = sbr.rel (%p9497_p4) target bundleno = 3427 (0xd63), region = 64  ;;  %s458_s28 = sand.u32 (!%p9497_p4), 1, %s9383_s18  }
  0x61   : > { %s6050_s19 = sshll.u32 (!%p9497_p4), %s458_s28, 10  ;;  %s459_s21 = scalar_lea.sflag (!%p9497_p4), [#allocation4], %s458_s28 }
  0x62   : > { %s9627_s29 = scalar_lea.vmem (!%p9497_p4), [#allocation3], %s6050_s19 }
  0x65   : > { %9358 = dma.done.wait (%p9536_p13), %s459_s21, 16384  }
  0x66   : > { %9360 = vsyncadd (%p9536_p13), %s459_s21, 4294950912  ;;  %s468_s1 = sand.u32 1, %s9491_s24   ;;  %s6051_s13 = sshll.u32 %s458_s28, 2 }
  0x67   : > { %s469_s11 = scalar_lea.sflag [#allocation6], %s468_s1  ;;  %s9634_s5 = scalar_lea.vmem [#allocation5], %s6051_s13 }
  0x68   : > { %9362 = dma.done.wait (%p9536_p13), %s469_s11, 24640  }
  0x69   : > { %9364 = vsyncadd (%p9536_p13), %s469_s11, 4294942656  ;;  %s8969_s25 = smul.u32 1536, %s458_s28 }
  0x6b   : > { %s9640_s12 = scalar_lea.vmem [#allocation7], %s8969_s25 }
  0x6c   : > { %9366 = dma.done.wait (%p93_p1), [#allocation9], 28672  }
  0x6d   : > { %9368 = vsyncadd (%p93_p1), [#allocation9], 4294938624 }
  0x6e   : > { %9370 = dma.done.wait (%p93_p1), [#allocation12], 800  }
  0x6f   : > { %9372 = vsyncadd (%p93_p1), [#allocation12], 4294966496 }
  0x70   : > { %9374 = dma.done.wait (%p93_p1), [#allocation15], 288  }
  0x71   : > { %9376 = vsyncadd (%p93_p1), [#allocation15], 4294967008  ;;  %v6187_v0 = vld [vmem:[%s9627_s29 + $0xe0] sm:$0xf]  ;;  %v8423_v1 = vld [vmem:[%s9627_s29 + $0xec] sm:$0xf0] }
  0x72   : > { %v6315_v2 = vld [vmem:[%s9627_s29 + $0x1e0] sm:$0xf]  ;;  %v6188_v3 = vor.u32 %v8423_v1, %v6187_v0  ;;  %v8455_v4 = vld [vmem:[%s9627_s29 + $0x1ec] sm:$0xf0] }
  0x73   : > { %v6443_v5 = vld [vmem:[%s9627_s29 + $0x2e0] sm:$0xf]  ;;  %v8487_v6 = vld [vmem:[%s9627_s29 + $0x2ec] sm:$0xf0]  ;;  %v6316_v7 = vor.u32 %v8455_v4, %v6315_v2 }
  0x74   : > { %v6444_v8 = vor.u32 %v8487_v6, %v6443_v5  ;;  %v6571_v9 = vld [vmem:[%s9627_s29 + $0x3e0] sm:$0xf]  ;;  %v8519_v10 = vld [vmem:[%s9627_s29 + $0x3ec] sm:$0xf0]  ;;  %1358 = vmatpush.bf16.msra.mxu0 %v6188_v3 }
  0x75   : > { %v6171_v11 = vld [vmem:[%s9627_s29 + $0xc0] sm:$0xf]  ;;  %v6572_v12 = vor.u32 %v8519_v10, %v6571_v9  ;;  %v8419_v13 = vld [vmem:[%s9627_s29 + $0xcc] sm:$0xf0]  ;;  %1372 = vmatpush.bf16.msra.mxu1 %v6316_v7 }
  0x76   : > { %v6299_v14 = vld [vmem:[%s9627_s29 + $0x1c0] sm:$0xf]  ;;  %v8451_v15 = vld [vmem:[%s9627_s29 + $0x1cc] sm:$0xf0]  ;;  %1386 = vmatpush.bf16.msra.mxu2 %v6444_v8  ;;  %v6172_v16 = vor.u32 %v8419_v13, %v6171_v11 }
  0x77   : > { %v6300_v17 = vor.u32 %v8451_v15, %v6299_v14  ;;  %v6427_v18 = vld [vmem:[%s9627_s29 + $0x2c0] sm:$0xf]  ;;  %v8483_v19 = vld [vmem:[%s9627_s29 + $0x2cc] sm:$0xf0]  ;;  %1400 = vmatpush.bf16.msra.mxu3 %v6572_v12 }
  0x78   : > { %v6555_v20 = vld [vmem:[%s9627_s29 + $0x3c0] sm:$0xf]  ;;  %v6428_v21 = vor.u32 %v8483_v19, %v6427_v18  ;;  %v8515_v22 = vld [vmem:[%s9627_s29 + $0x3cc] sm:$0xf0]  ;;  %1359 = vmatpush.bf16.msra.mxu0 %v6172_v16 }
  0x79   : > { %v6155_v23 = vld [vmem:[%s9627_s29 + $0xa0] sm:$0xf]  ;;  %v8415_v24 = vld [vmem:[%s9627_s29 + $0xac] sm:$0xf0]  ;;  %v6556_v25 = vor.u32 %v8515_v22, %v6555_v20  ;;  %1373 = vmatpush.bf16.msra.mxu1 %v6300_v17 }
  0x7a   : > { %v6283_v26 = vld [vmem:[%s9627_s29 + $0x1a0] sm:$0xf]  ;;  %v8447_v27 = vld [vmem:[%s9627_s29 + $0x1ac] sm:$0xf0]  ;;  %v6156_v29 = vor.u32 %v8415_v24, %v6155_v23  ;;  %1387 = vmatpush.bf16.msra.mxu2 %v6428_v21 }
  0x7b   : > { %v6411_v28 = vld [vmem:[%s9627_s29 + $0x2a0] sm:$0xf]  ;;  %v8479_v30 = vld [vmem:[%s9627_s29 + $0x2ac] sm:$0xf0]  ;;  %v6284_v33 = vor.u32 %v8447_v27, %v6283_v26  ;;  %1401 = vmatpush.bf16.msra.mxu3 %v6556_v25  ;;  %v8421_v27 = vld [vmem:[%s9627_s29 + $0xe4] sm:$0xf] }
  0x7c   : > { %v6539_v31 = vld [vmem:[%s9627_s29 + $0x3a0] sm:$0xf]  ;;  %v8511_v32 = vld [vmem:[%s9627_s29 + $0x3ac] sm:$0xf0]  ;;  %v6412_v34 = vor.u32 %v8479_v30, %v6411_v28  ;;  %1360 = vmatpush.bf16.msra.mxu0 %v6156_v29  ;;  %v6189_v29 = vld [vmem:[%s9627_s29 + $0xf0] sm:$0xf0] }
  0x7d   : > { %v6139_v35 = vld [vmem:[%s9627_s29 + $0x80] sm:$0xf]  ;;  %v8411_v36 = vld [vmem:[%s9627_s29 + $0x8c] sm:$0xf0]  ;;  %v6540_v38 = vor.u32 %v8511_v32, %v6539_v31  ;;  %1374 = vmatpush.bf16.msra.mxu1 %v6284_v33  ;;  %v8453_v30 = vld [vmem:[%s9627_s29 + $0x1e4] sm:$0xf] }
  0x7e   : > { %v6267_v37 = vld [vmem:[%s9627_s29 + $0x180] sm:$0xf]  ;;  %v8443_v39 = vld [vmem:[%s9627_s29 + $0x18c] sm:$0xf0]  ;;  %v6140_v44 = vor.u32 %v8411_v36, %v6139_v35  ;;  %1388 = vmatpush.bf16.msra.mxu2 %v6412_v34  ;;  %v6317_v31 = vld [vmem:[%s9627_s29 + $0x1f0] sm:$0xf0] }
  0x7f   : > { %v6395_v40 = vld [vmem:[%s9627_s29 + $0x280] sm:$0xf]  ;;  %v8475_v41 = vld [vmem:[%s9627_s29 + $0x28c] sm:$0xf0]  ;;  %v6268_v45 = vor.u32 %v8443_v39, %v6267_v37  ;;  %1402 = vmatpush.bf16.msra.mxu3 %v6540_v38  ;;  %v8485_v32 = vld [vmem:[%s9627_s29 + $0x2e4] sm:$0xf] }
  0x80   : > { %v6523_v42 = vld [vmem:[%s9627_s29 + $0x380] sm:$0xf]  ;;  %v8507_v43 = vld [vmem:[%s9627_s29 + $0x38c] sm:$0xf0]  ;;  %v6396_v46 = vor.u32 %v8475_v41, %v6395_v40  ;;  %1361 = vmatpush.bf16.msra.mxu0 %v6140_v44  ;;  %v6445_v33 = vld [vmem:[%s9627_s29 + $0x2f0] sm:$0xf0] }
  0x81   : > { %v6123_v47 = vld [vmem:[%s9627_s29 + $0x60] sm:$0xf]  ;;  %v8407_v48 = vld [vmem:[%s9627_s29 + $0x6c] sm:$0xf0]  ;;  %v6524_v50 = vor.u32 %v8507_v43, %v6523_v42  ;;  %1375 = vmatpush.bf16.msra.mxu1 %v6268_v45  ;;  %v8517_v34 = vld [vmem:[%s9627_s29 + $0x3e4] sm:$0xf]  ;;  %v6192_v45 = vor.u32 %v8421_v27, %v6189_v29 }
  0x82   : > { %v6251_v49 = vld [vmem:[%s9627_s29 + $0x160] sm:$0xf]  ;;  %v8439_v51 = vld [vmem:[%s9627_s29 + $0x16c] sm:$0xf0]  ;;  %v6124_v56 = vor.u32 %v8407_v48, %v6123_v47  ;;  %1389 = vmatpush.bf16.msra.mxu2 %v6396_v46  ;;  %v6573_v36 = vld [vmem:[%s9627_s29 + $0x3f0] sm:$0xf0] }
  0x83   : > { %v6379_v52 = vld [vmem:[%s9627_s29 + $0x260] sm:$0xf]  ;;  %v8471_v53 = vld [vmem:[%s9627_s29 + $0x26c] sm:$0xf0]  ;;  %v6252_v57 = vor.u32 %v8439_v51, %v6251_v49  ;;  %1403 = vmatpush.bf16.msra.mxu3 %v6524_v50  ;;  %v6067_v37 = vld [vmem:[%s10708_s0 + $0x8] sm:$0xf]  ;;  %v6320_v49 = vor.u32 %v8453_v30, %v6317_v31  ;;  %v6448_v50 = vor.u32 %v8485_v32, %v6445_v33 }
  0x84   : > { %v6507_v54 = vld [vmem:[%s9627_s29 + $0x360] sm:$0xf]  ;;  %v8503_v55 = vld [vmem:[%s9627_s29 + $0x36c] sm:$0xf0]  ;;  %v6380_v58 = vor.u32 %v8471_v53, %v6379_v52  ;;  %1362 = vmatpush.bf16.msra.mxu0 %v6124_v56  ;;  %v8392_v38 = vld [vmem:[%s10708_s0 + $0x14] sm:$0xf0] }
  0x85   : > { %v6107_v59 = vld [vmem:[%s9627_s29 + $0x40] sm:$0xf]  ;;  %v8403_v60 = vld [vmem:[%s9627_s29 + $0x4c] sm:$0xf0]  ;;  %v6508_v62 = vor.u32 %v8503_v55, %v6507_v54  ;;  %1376 = vmatpush.bf16.msra.mxu1 %v6252_v57  ;;  %v8390_v43 = vld [vmem:[%s10708_s0 + $0xc] sm:$0xf]  ;;  %v6576_v54 = vor.u32 %v8517_v34, %v6573_v36  ;;  %v9753_v55 = vor.u32 %v8392_v38, %v6067_v37 }
  0x86   : > { %v6235_v61 = vld [vmem:[%s9627_s29 + $0x140] sm:$0xf]  ;;  %v8435_v63 = vld [vmem:[%s9627_s29 + $0x14c] sm:$0xf0]  ;;  %v6108_v4 = vor.u32 %v8403_v60, %v6107_v59  ;;  %1390 = vmatpush.bf16.msra.mxu2 %v6380_v58  ;;  %v6069_v46 = vld [vmem:[%s10708_s0 + $0x18] sm:$0xf0] }
  0x87   : > { %v6363_v0 = vld [vmem:[%s9627_s29 + $0x240] sm:$0xf]  ;;  %v8467_v1 = vld [vmem:[%s9627_s29 + $0x24c] sm:$0xf0]  ;;  %v6236_v6 = vor.u32 %v8435_v63, %v6235_v61  ;;  %1404 = vmatpush.bf16.msra.mxu3 %v6508_v62  ;;  %v8417_v47 = vld [vmem:[%s9627_s29 + $0xc4] sm:$0xf]  ;;  %v9760_v60 = vor.u32 %v8390_v43, %v6069_v46 }
  0x88   : > { %v6491_v2 = vld [vmem:[%s9627_s29 + $0x340] sm:$0xf]  ;;  %v8499_v3 = vld [vmem:[%s9627_s29 + $0x34c] sm:$0xf0]  ;;  %v6364_v7 = vor.u32 %v8467_v1, %v6363_v0  ;;  %1363 = vmatpush.bf16.msra.mxu0 %v6108_v4  ;;  %v6173_v48 = vld [vmem:[%s9627_s29 + $0xd0] sm:$0xf0] }
  0x89   : > { %v6091_v5 = vld [vmem:[%s9627_s29 + $0x20] sm:$0xf]  ;;  %v8399_v8 = vld [vmem:[%s9627_s29 + $0x2c] sm:$0xf0]  ;;  %v6492_v11 = vor.u32 %v8499_v3, %v6491_v2  ;;  %1377 = vmatpush.bf16.msra.mxu1 %v6236_v6  ;;  %v8449_v51 = vld [vmem:[%s9627_s29 + $0x1c4] sm:$0xf]  ;;  %v6176_v63 = vor.u32 %v8417_v47, %v6173_v48 }
  0x8a   : > { %v6219_v9 = vld [vmem:[%s9627_s29 + $0x120] sm:$0xf]  ;;  %v8431_v10 = vld [vmem:[%s9627_s29 + $0x12c] sm:$0xf0]  ;;  %v6092_v18 = vor.u32 %v8399_v8, %v6091_v5  ;;  %1391 = vmatpush.bf16.msra.mxu2 %v6364_v7  ;;  %v8389_v52 = vld [vmem:[%s10708_s0 + $0x4] sm:$0xf] }
  0x8b   : > { %v6347_v12 = vld [vmem:[%s9627_s29 + $0x220] sm:$0xf]  ;;  %v8463_v13 = vld [vmem:[%s9627_s29 + $0x22c] sm:$0xf0]  ;;  %v6220_v23 = vor.u32 %v8431_v10, %v6219_v9  ;;  %1405 = vmatpush.bf16.msra.mxu3 %v6492_v11  ;;  %v6061_v53 = vld [vmem:[%s10708_s0 + $0x10] sm:$0xf0] }
  0x8c   : > { %v6475_v14 = vld [vmem:[%s9627_s29 + $0x320] sm:$0xf]  ;;  %v8495_v15 = vld [vmem:[%s9627_s29 + $0x32c] sm:$0xf0]  ;;  %v6348_v24 = vor.u32 %v8463_v13, %v6347_v12  ;;  %1364 = vmatpush.bf16.msra.mxu0 %v6092_v18  ;;  %v6301_v56 = vld [vmem:[%s9627_s29 + $0x1d0] sm:$0xf0]  ;;  %v9764_v0 = vor.u32 %v8389_v52, %v6061_v53 }
  0x8d   : > { %v6075_v16 = vld [vmem:[%s9627_s29] sm:$0xf]  ;;  %v8395_v17 = vld [vmem:[%s9627_s29 + $0xc] sm:$0xf0]  ;;  %v6476_v28 = vor.u32 %v8495_v15, %v6475_v14  ;;  %1378 = vmatpush.bf16.msra.mxu1 %v6220_v23  ;;  %v8481_v57 = vld [vmem:[%s9627_s29 + $0x2c4] sm:$0xf]  ;;  %v6304_v1 = vor.u32 %v8449_v51, %v6301_v56 }
  0x8e   : > { %v6203_v19 = vld [vmem:[%s9627_s29 + $0x100] sm:$0xf]  ;;  %v8427_v20 = vld [vmem:[%s9627_s29 + $0x10c] sm:$0xf0]  ;;  %v6076_v35 = vor.u32 %v8395_v17, %v6075_v16  ;;  %1392 = vmatpush.bf16.msra.mxu2 %v6348_v24  ;;  %v6429_v58 = vld [vmem:[%s9627_s29 + $0x2d0] sm:$0xf0] }
  0x8f   : > { %v6331_v21 = vld [vmem:[%s9627_s29 + $0x200] sm:$0xf]  ;;  %v8459_v22 = vld [vmem:[%s9627_s29 + $0x20c] sm:$0xf0]  ;;  %v6204_v39 = vor.u32 %v8427_v20, %v6203_v19  ;;  %1406 = vmatpush.bf16.msra.mxu3 %v6476_v28  ;;  %v8513_v61 = vld [vmem:[%s9627_s29 + $0x3c4] sm:$0xf]  ;;  %v6432_v2 = vor.u32 %v8481_v57, %v6429_v58 }
  0x90   : > { %v6459_v25 = vld [vmem:[%s9627_s29 + $0x300] sm:$0xf]  ;;  %v8491_v26 = vld [vmem:[%s9627_s29 + $0x30c] sm:$0xf0]  ;;  %v6332_v40 = vor.u32 %v8459_v22, %v6331_v21  ;;  %1365 = vmatpush.bf16.msra.mxu0 %v6076_v35  ;;  %v6557_v62 = vld [vmem:[%s9627_s29 + $0x3d0] sm:$0xf0] }
  0x91   : > { %v6059_v41 = vld [vmem:[%s10708_s0] sm:$0xf]  ;;  %v8391_v42 = vld [vmem:[%s10708_s0 + $0xc] sm:$0xf0]  ;;  %v6460_v44 = vor.u32 %v8491_v26, %v6459_v25  ;;  %1379 = vmatpush.bf16.msra.mxu1 %v6204_v39  ;;  %v8413_v3 = vld [vmem:[%s9627_s29 + $0xa4] sm:$0xf]  ;;  %v6560_v6 = vor.u32 %v8513_v61, %v6557_v62 }
  0x92   : > { %1393 = vmatpush.bf16.msra.mxu2 %v6332_v40  ;;  %v9758_v59 = vor.u32 %v8391_v42, %v6059_v41  ;;  %v6157_v4 = vld [vmem:[%s9627_s29 + $0xb0] sm:$0xf0]  ;;  %v8445_v5 = vld [vmem:[%s9627_s29 + $0x1a4] sm:$0xf] }
  0x93   : > { %1407 = vmatpush.bf16.msra.mxu3 %v6460_v44  ;;  %v6285_v7 = vld [vmem:[%s9627_s29 + $0x1b0] sm:$0xf0]  ;;  %v8477_v8 = vld [vmem:[%s9627_s29 + $0x2a4] sm:$0xf]  ;;  %v6160_v12 = vor.u32 %v8413_v3, %v6157_v4 }
  0x94   : > { %1414 = vmatpush.bf16.msrb.mxu0 %v6192_v45  ;;  %v6413_v9 = vld [vmem:[%s9627_s29 + $0x2b0] sm:$0xf0]  ;;  %v8509_v10 = vld [vmem:[%s9627_s29 + $0x3a4] sm:$0xf]  ;;  %1380 = vmatmul.bf16.vlgmr.msra.gmra.mxu1 %v9764_v0  ;;  %v6288_v13 = vor.u32 %v8445_v5, %v6285_v7 }
  0x95   : > { %1428 = vmatpush.bf16.msrb.mxu1 %v6320_v49  ;;  %1394 = vmatmul.bf16.vlgmr.msra.gmra.mxu2 %v9753_v55  ;;  %v6541_v11 = vld [vmem:[%s9627_s29 + $0x3b0] sm:$0xf0]  ;;  %v6416_v14 = vor.u32 %v8477_v8, %v6413_v9  ;;  %v8409_v15 = vld [vmem:[%s9627_s29 + $0x84] sm:$0xf] }
  0x96   : > { %1442 = vmatpush.bf16.msrb.mxu2 %v6448_v50  ;;  %1366 = vmatmul.bf16.vlgmr.msra.gmra.mxu0 %v9758_v59  ;;  %v6141_v16 = vld [vmem:[%s9627_s29 + $0x90] sm:$0xf0]  ;;  %v8441_v17 = vld [vmem:[%s9627_s29 + $0x184] sm:$0xf]  ;;  %v6544_v18 = vor.u32 %v8509_v10, %v6541_v11 }
  0x97   : > { %1456 = vmatpush.bf16.msrb.mxu3 %v6576_v54  ;;  %v6269_v19 = vld [vmem:[%s9627_s29 + $0x190] sm:$0xf0]  ;;  %v8473_v20 = vld [vmem:[%s9627_s29 + $0x284] sm:$0xf]  ;;  %v6144_v24 = vor.u32 %v8409_v15, %v6141_v16  ;;  %v8456_v16 = vld [vmem:[%s9627_s29 + $0x1f4] sm:$0xf0] }
  0x98   : > { %1408 = vmatmul.bf16.vlgmr.msra.gmra.mxu3 %v9760_v60  ;;  %1415 = vmatpush.bf16.msrb.mxu0 %v6176_v63  ;;  %v6397_v21 = vld [vmem:[%s9627_s29 + $0x290] sm:$0xf0]  ;;  %v8505_v22 = vld [vmem:[%s9627_s29 + $0x384] sm:$0xf]  ;;  %v6272_v25 = vor.u32 %v8441_v17, %v6269_v19  ;;  %v6451_v17 = vld [vmem:[%s9627_s29 + $0x2e8] sm:$0xf] }
  0x99   : > { %1429 = vmatpush.bf16.msrb.mxu1 %v6304_v1  ;;  %v6525_v23 = vld [vmem:[%s9627_s29 + $0x390] sm:$0xf0]  ;;  %v6400_v26 = vor.u32 %v8473_v20, %v6397_v21  ;;  %v8405_v27 = vld [vmem:[%s9627_s29 + $0x64] sm:$0xf]  ;;  %v6579_v21 = vld [vmem:[%s9627_s29 + $0x3e8] sm:$0xf] }
  0x9a   : > { %1443 = vmatpush.bf16.msrb.mxu2 %v6432_v2  ;;  %v6125_v28 = vld [vmem:[%s9627_s29 + $0x70] sm:$0xf0]  ;;  %v8437_v29 = vld [vmem:[%s9627_s29 + $0x164] sm:$0xf]  ;;  %v6528_v30 = vor.u32 %v8505_v22, %v6525_v23  ;;  %v8520_v22 = vld [vmem:[%s9627_s29 + $0x3f4] sm:$0xf0] }
  0x9b   : > { %1457 = vmatpush.bf16.msrb.mxu3 %v6560_v6  ;;  %v6253_v31 = vld [vmem:[%s9627_s29 + $0x170] sm:$0xf0]  ;;  %v8469_v32 = vld [vmem:[%s9627_s29 + $0x264] sm:$0xf]  ;;  %v6128_v36 = vor.u32 %v8405_v27, %v6125_v28  ;;  %v6179_v27 = vld [vmem:[%s9627_s29 + $0xc8] sm:$0xf] }
  0x9c   : > { %1416 = vmatpush.bf16.msrb.mxu0 %v6160_v12  ;;  %v6381_v33 = vld [vmem:[%s9627_s29 + $0x270] sm:$0xf0]  ;;  %v8501_v34 = vld [vmem:[%s9627_s29 + $0x364] sm:$0xf]  ;;  %v6256_v37 = vor.u32 %v8437_v29, %v6253_v31  ;;  %v6195_v12 = vld [vmem:[%s9627_s29 + $0xe8] sm:$0xf] }
  0x9d   : > { %1430 = vmatpush.bf16.msrb.mxu1 %v6288_v13  ;;  %v6509_v35 = vld [vmem:[%s9627_s29 + $0x370] sm:$0xf0]  ;;  %v6384_v38 = vor.u32 %v8469_v32, %v6381_v33  ;;  %v8401_v39 = vld [vmem:[%s9627_s29 + $0x44] sm:$0xf]  ;;  %v8424_v13 = vld [vmem:[%s9627_s29 + $0xf4] sm:$0xf0] }
  0x9e   : > { %1444 = vmatpush.bf16.msrb.mxu2 %v6416_v14  ;;  %v6109_v40 = vld [vmem:[%s9627_s29 + $0x50] sm:$0xf0]  ;;  %v8433_v41 = vld [vmem:[%s9627_s29 + $0x144] sm:$0xf]  ;;  %v6512_v42 = vor.u32 %v8501_v34, %v6509_v35  ;;  %v6323_v14 = vld [vmem:[%s9627_s29 + $0x1e8] sm:$0xf] }
  0x9f   : > { %1458 = vmatpush.bf16.msrb.mxu3 %v6544_v18  ;;  %v6237_v43 = vld [vmem:[%s9627_s29 + $0x150] sm:$0xf0]  ;;  %v8465_v44 = vld [vmem:[%s9627_s29 + $0x244] sm:$0xf]  ;;  %v6112_v48 = vor.u32 %v8401_v39, %v6109_v40  ;;  %v8488_v18 = vld [vmem:[%s9627_s29 + $0x2f4] sm:$0xf0] }
  0xa0   : > { %1417 = vmatpush.bf16.msrb.mxu0 %v6144_v24  ;;  %v6365_v45 = vld [vmem:[%s9627_s29 + $0x250] sm:$0xf0]  ;;  %v8497_v46 = vld [vmem:[%s9627_s29 + $0x344] sm:$0xf]  ;;  %v6240_v49 = vor.u32 %v8433_v41, %v6237_v43  ;;  %v6196_v24 = vor.u32 %v8424_v13, %v6195_v12  ;;  %v8420_v28 = vld [vmem:[%s9627_s29 + $0xd4] sm:$0xf0] }
  0xa1   : > { %1431 = vmatpush.bf16.msrb.mxu1 %v6272_v25  ;;  %v6493_v47 = vld [vmem:[%s9627_s29 + $0x350] sm:$0xf0]  ;;  %v6368_v50 = vor.u32 %v8465_v44, %v6365_v45  ;;  %v8397_v51 = vld [vmem:[%s9627_s29 + $0x24] sm:$0xf]  ;;  %v6324_v25 = vor.u32 %v8456_v16, %v6323_v14  ;;  %v6307_v29 = vld [vmem:[%s9627_s29 + $0x1c8] sm:$0xf] }
  0xa2   : > { %1445 = vmatpush.bf16.msrb.mxu2 %v6400_v26  ;;  %v6093_v52 = vld [vmem:[%s9627_s29 + $0x30] sm:$0xf0]  ;;  %v8429_v53 = vld [vmem:[%s9627_s29 + $0x124] sm:$0xf]  ;;  %v6496_v54 = vor.u32 %v8497_v46, %v6493_v47  ;;  %v6452_v26 = vor.u32 %v8488_v18, %v6451_v17  ;;  %v8452_v31 = vld [vmem:[%s9627_s29 + $0x1d4] sm:$0xf0] }
  0xa3   : > { %1459 = vmatpush.bf16.msrb.mxu3 %v6528_v30  ;;  %v6221_v56 = vld [vmem:[%s9627_s29 + $0x130] sm:$0xf0]  ;;  %v8461_v57 = vld [vmem:[%s9627_s29 + $0x224] sm:$0xf]  ;;  %v6096_v63 = vor.u32 %v8397_v51, %v6093_v52  ;;  %v6580_v30 = vor.u32 %v8520_v22, %v6579_v21  ;;  %v6435_v32 = vld [vmem:[%s9627_s29 + $0x2c8] sm:$0xf] }
  0xa4   : > { %1418 = vmatpush.bf16.msrb.mxu0 %v6128_v36  ;;  %v6349_v58 = vld [vmem:[%s9627_s29 + $0x230] sm:$0xf0]  ;;  %v8493_v61 = vld [vmem:[%s9627_s29 + $0x324] sm:$0xf]  ;;  %v6224_v3 = vor.u32 %v8429_v53, %v6221_v56  ;;  %v8484_v33 = vld [vmem:[%s9627_s29 + $0x2d4] sm:$0xf0]  ;;  %v6180_v36 = vor.u32 %v8420_v28, %v6179_v27 }
  0xa5   : > { %1432 = vmatpush.bf16.msrb.mxu1 %v6256_v37  ;;  %v6477_v62 = vld [vmem:[%s9627_s29 + $0x330] sm:$0xf0]  ;;  %v8393_v1 = vld [vmem:[%s9627_s29 + $0x4] sm:$0xf]  ;;  %v6352_v4 = vor.u32 %v8461_v57, %v6349_v58  ;;  %v6563_v34 = vld [vmem:[%s9627_s29 + $0x3c8] sm:$0xf]  ;;  %v6308_v37 = vor.u32 %v8452_v31, %v6307_v29 }
  0xa6   : > { %1446 = vmatpush.bf16.msrb.mxu2 %v6384_v38  ;;  %v6077_v2 = vld [vmem:[%s9627_s29 + $0x10] sm:$0xf0]  ;;  %v8425_v5 = vld [vmem:[%s9627_s29 + $0x104] sm:$0xf]  ;;  %v6480_v8 = vor.u32 %v8493_v61, %v6477_v62  ;;  %v8516_v35 = vld [vmem:[%s9627_s29 + $0x3d4] sm:$0xf0]  ;;  %v6436_v38 = vor.u32 %v8484_v33, %v6435_v32 }
  0xa7   : > { %1460 = vmatpush.bf16.msrb.mxu3 %v6512_v42  ;;  %v6205_v6 = vld [vmem:[%s9627_s29 + $0x110] sm:$0xf0]  ;;  %v8457_v7 = vld [vmem:[%s9627_s29 + $0x204] sm:$0xf]  ;;  %v6080_v15 = vor.u32 %v8393_v1, %v6077_v2  ;;  %v6163_v39 = vld [vmem:[%s9627_s29 + $0xa8] sm:$0xf]  ;;  %v6564_v42 = vor.u32 %v8516_v35, %v6563_v34 }
  0xa8   : > { %1419 = vmatpush.bf16.msrb.mxu0 %v6112_v48  ;;  %v6333_v9 = vld [vmem:[%s9627_s29 + $0x210] sm:$0xf0]  ;;  %v8489_v10 = vld [vmem:[%s9627_s29 + $0x304] sm:$0xf]  ;;  %v6208_v19 = vor.u32 %v8425_v5, %v6205_v6  ;;  %v8416_v40 = vld [vmem:[%s9627_s29 + $0xb4] sm:$0xf0] }
  0xa9   : > { %1433 = vmatpush.bf16.msrb.mxu1 %v6240_v49  ;;  %v6461_v11 = vld [vmem:[%s9627_s29 + $0x310] sm:$0xf0]  ;;  %v6336_v20 = vor.u32 %v8457_v7, %v6333_v9  ;;  %v6291_v41 = vld [vmem:[%s9627_s29 + $0x1a8] sm:$0xf]  ;;  %v8448_v43 = vld [vmem:[%s9627_s29 + $0x1b4] sm:$0xf0]  ;;  %v6164_v48 = vor.u32 %v8416_v40, %v6163_v39 }
  0xaa   : > { %1447 = vmatpush.bf16.msrb.mxu2 %v6368_v50  ;;  %v6464_v23 = vor.u32 %v8489_v10, %v6461_v11  ;;  %v6419_v44 = vld [vmem:[%s9627_s29 + $0x2a8] sm:$0xf]  ;;  %v8480_v45 = vld [vmem:[%s9627_s29 + $0x2b4] sm:$0xf0]  ;;  %v6292_v49 = vor.u32 %v8448_v43, %v6291_v41 }
  0xab   : > { %1461 = vmatpush.bf16.msrb.mxu3 %v6496_v54  ;;  %v6547_v46 = vld [vmem:[%s9627_s29 + $0x3a8] sm:$0xf]  ;;  %v8512_v47 = vld [vmem:[%s9627_s29 + $0x3b4] sm:$0xf0]  ;;  %v6420_v50 = vor.u32 %v8480_v45, %v6419_v44 }
  0xac   : > { %1420 = vmatpush.bf16.msrb.mxu0 %v6096_v63  ;;  %v6147_v51 = vld [vmem:[%s9627_s29 + $0x88] sm:$0xf]  ;;  %v8412_v52 = vld [vmem:[%s9627_s29 + $0x94] sm:$0xf0]  ;;  %v6548_v54 = vor.u32 %v8512_v47, %v6547_v46 }
  0xad   : > { %1434 = vmatpush.bf16.msrb.mxu1 %v6224_v3  ;;  %v6275_v53 = vld [vmem:[%s9627_s29 + $0x188] sm:$0xf]  ;;  %v8444_v56 = vld [vmem:[%s9627_s29 + $0x194] sm:$0xf0]  ;;  %v6148_v63 = vor.u32 %v8412_v52, %v6147_v51  ;;  %v6325_v52 = vld [vmem:[%s9627_s29 + $0x1f8] sm:$0xf0] }
  0xae   : > { %1448 = vmatpush.bf16.msrb.mxu2 %v6352_v4  ;;  %v6403_v57 = vld [vmem:[%s9627_s29 + $0x288] sm:$0xf]  ;;  %v8476_v58 = vld [vmem:[%s9627_s29 + $0x294] sm:$0xf0]  ;;  %v6276_v1 = vor.u32 %v8444_v56, %v6275_v53  ;;  %v8486_v53 = vld [vmem:[%s9627_s29 + $0x2ec] sm:$0xf] }
  0xaf   : > { %1462 = vmatpush.bf16.msrb.mxu3 %v6480_v8  ;;  %v6531_v61 = vld [vmem:[%s9627_s29 + $0x388] sm:$0xf]  ;;  %v8508_v62 = vld [vmem:[%s9627_s29 + $0x394] sm:$0xf0]  ;;  %v6404_v2 = vor.u32 %v8476_v58, %v6403_v57  ;;  %v8518_v58 = vld [vmem:[%s9627_s29 + $0x3ec] sm:$0xf] }
  0xb0   : > { %1421 = vmatpush.bf16.msrb.mxu0 %v6080_v15  ;;  %v6131_v3 = vld [vmem:[%s9627_s29 + $0x68] sm:$0xf]  ;;  %v8408_v4 = vld [vmem:[%s9627_s29 + $0x74] sm:$0xf0]  ;;  %v6532_v6 = vor.u32 %v8508_v62, %v6531_v61  ;;  %v6581_v61 = vld [vmem:[%s9627_s29 + $0x3f8] sm:$0xf0] }
  0xb1   : > { %1435 = vmatpush.bf16.msrb.mxu1 %v6208_v19  ;;  %v6259_v5 = vld [vmem:[%s9627_s29 + $0x168] sm:$0xf]  ;;  %v8440_v7 = vld [vmem:[%s9627_s29 + $0x174] sm:$0xf0]  ;;  %v6132_v12 = vor.u32 %v8408_v4, %v6131_v3  ;;  %v8418_v3 = vld [vmem:[%s9627_s29 + $0xcc] sm:$0xf] }
  0xb2   : > { %1449 = vmatpush.bf16.msrb.mxu2 %v6336_v20  ;;  %v6387_v8 = vld [vmem:[%s9627_s29 + $0x268] sm:$0xf]  ;;  %v8472_v9 = vld [vmem:[%s9627_s29 + $0x274] sm:$0xf0]  ;;  %v6260_v13 = vor.u32 %v8440_v7, %v6259_v5  ;;  %v6181_v4 = vld [vmem:[%s9627_s29 + $0xd8] sm:$0xf0] }
  0xb3   : > { %1463 = vmatpush.bf16.msrb.mxu3 %v6464_v23  ;;  %1422 = vmatmul.bf16.vlgmr.msrb.gmra.mxu0 %v9758_v59  ;;  %v6515_v10 = vld [vmem:[%s9627_s29 + $0x368] sm:$0xf]  ;;  %v8504_v11 = vld [vmem:[%s9627_s29 + $0x374] sm:$0xf0]  ;;  %v6388_v14 = vor.u32 %v8472_v9, %v6387_v8  ;;  %v8450_v5 = vld [vmem:[%s9627_s29 + $0x1cc] sm:$0xf] }
  0xb4   : > { %1470 = vmatpush.bf16.msra.mxu0 %v6196_v24  ;;  %1436 = vmatmul.bf16.vlgmr.msrb.gmra.mxu1 %v9764_v0  ;;  %v6115_v15 = vld [vmem:[%s9627_s29 + $0x48] sm:$0xf]  ;;  %v8404_v16 = vld [vmem:[%s9627_s29 + $0x54] sm:$0xf0]  ;;  %v6516_v18 = vor.u32 %v8504_v11, %v6515_v10  ;;  %v6309_v7 = vld [vmem:[%s9627_s29 + $0x1d8] sm:$0xf0] }
  0xb5   : > { %1484 = vmatpush.bf16.msra.mxu1 %v6324_v25  ;;  %1450 = vmatmul.bf16.vlgmr.msrb.gmra.mxu2 %v9753_v55  ;;  %v6243_v17 = vld [vmem:[%s9627_s29 + $0x148] sm:$0xf]  ;;  %v8436_v19 = vld [vmem:[%s9627_s29 + $0x154] sm:$0xf0]  ;;  %v6116_v24 = vor.u32 %v8404_v16, %v6115_v15  ;;  %v8482_v8 = vld [vmem:[%s9627_s29 + $0x2cc] sm:$0xf] }
  0xb6   : > { %1498 = vmatpush.bf16.msra.mxu2 %v6452_v26  ;;  %1464 = vmatmul.bf16.vlgmr.msrb.gmra.mxu3 %v9760_v60  ;;  %v6371_v20 = vld [vmem:[%s9627_s29 + $0x248] sm:$0xf]  ;;  %v8468_v21 = vld [vmem:[%s9627_s29 + $0x254] sm:$0xf0]  ;;  %v6244_v25 = vor.u32 %v8436_v19, %v6243_v17  ;;  %v6437_v9 = vld [vmem:[%s9627_s29 + $0x2d8] sm:$0xf0] }
  0xb7   : > { %1512 = vmatpush.bf16.msra.mxu3 %v6580_v30  ;;  %v6499_v22 = vld [vmem:[%s9627_s29 + $0x348] sm:$0xf]  ;;  %v8500_v23 = vld [vmem:[%s9627_s29 + $0x354] sm:$0xf0]  ;;  %v6372_v26 = vor.u32 %v8468_v21, %v6371_v20  ;;  %v8514_v10 = vld [vmem:[%s9627_s29 + $0x3cc] sm:$0xf] }
  0xb8   : > { %1471 = vmatpush.bf16.msra.mxu0 %v6180_v36  ;;  %v6099_v27 = vld [vmem:[%s9627_s29 + $0x28] sm:$0xf]  ;;  %v8400_v28 = vld [vmem:[%s9627_s29 + $0x34] sm:$0xf0]  ;;  %v6500_v30 = vor.u32 %v8500_v23, %v6499_v22  ;;  %v6565_v11 = vld [vmem:[%s9627_s29 + $0x3d8] sm:$0xf0] }
  0xb9   : > { %1485 = vmatpush.bf16.msra.mxu1 %v6308_v37  ;;  %v6227_v29 = vld [vmem:[%s9627_s29 + $0x128] sm:$0xf]  ;;  %v8432_v31 = vld [vmem:[%s9627_s29 + $0x134] sm:$0xf0]  ;;  %v6100_v36 = vor.u32 %v8400_v28, %v6099_v27  ;;  %v8414_v15 = vld [vmem:[%s9627_s29 + $0xac] sm:$0xf] }
  0xba   : > { %1499 = vmatpush.bf16.msra.mxu2 %v6436_v38  ;;  %v6355_v32 = vld [vmem:[%s9627_s29 + $0x228] sm:$0xf]  ;;  %v8464_v33 = vld [vmem:[%s9627_s29 + $0x234] sm:$0xf0]  ;;  %v6228_v39 = vor.u32 %v8432_v31, %v6227_v29  ;;  %v6165_v16 = vld [vmem:[%s9627_s29 + $0xb8] sm:$0xf0] }
  0xbb   : > { %1513 = vmatpush.bf16.msra.mxu3 %v6564_v42  ;;  %v6483_v34 = vld [vmem:[%s9627_s29 + $0x328] sm:$0xf]  ;;  %v8496_v35 = vld [vmem:[%s9627_s29 + $0x334] sm:$0xf0]  ;;  %v6356_v40 = vor.u32 %v8464_v33, %v6355_v32  ;;  %v8446_v17 = vld [vmem:[%s9627_s29 + $0x1ac] sm:$0xf] }
  0xbc   : > { %1472 = vmatpush.bf16.msra.mxu0 %v6164_v48  ;;  %v6083_v37 = vld [vmem:[%s9627_s29 + $0x8] sm:$0xf]  ;;  %v8396_v38 = vld [vmem:[%s9627_s29 + $0x14] sm:$0xf0]  ;;  %v6484_v44 = vor.u32 %v8496_v35, %v6483_v34  ;;  %v8422_v48 = vld [vmem:[%s9627_s29 + $0xec] sm:$0xf] }
  0xbd   : > { %1486 = vmatpush.bf16.msra.mxu1 %v6292_v49  ;;  %v6211_v41 = vld [vmem:[%s9627_s29 + $0x108] sm:$0xf]  ;;  %v8428_v42 = vld [vmem:[%s9627_s29 + $0x114] sm:$0xf0]  ;;  %v6197_v49 = vld [vmem:[%s9627_s29 + $0xf8] sm:$0xf0]  ;;  %v6084_v51 = vor.u32 %v8396_v38, %v6083_v37 }
  0xbe   : > { %1500 = vmatpush.bf16.msra.mxu2 %v6420_v50  ;;  %v6339_v43 = vld [vmem:[%s9627_s29 + $0x208] sm:$0xf]  ;;  %v8460_v45 = vld [vmem:[%s9627_s29 + $0x214] sm:$0xf0]  ;;  %v8454_v50 = vld [vmem:[%s9627_s29 + $0x1ec] sm:$0xf]  ;;  %v6212_v56 = vor.u32 %v8428_v42, %v6211_v41 }
  0xbf   : > { %1514 = vmatpush.bf16.msra.mxu3 %v6548_v54  ;;  %v6467_v46 = vld [vmem:[%s9627_s29 + $0x308] sm:$0xf]  ;;  %v8492_v47 = vld [vmem:[%s9627_s29 + $0x314] sm:$0xf0]  ;;  %v6453_v54 = vld [vmem:[%s9627_s29 + $0x2f8] sm:$0xf0]  ;;  %v6340_v57 = vor.u32 %v8460_v45, %v6339_v43 }
  0xc0   : > { %1473 = vmatpush.bf16.msra.mxu0 %v6148_v63  ;;  %v6468_v62 = vor.u32 %v8492_v47, %v6467_v46  ;;  %v6200_v63 = vor.u32 %v8422_v48, %v6197_v49  ;;  %v6293_v19 = vld [vmem:[%s9627_s29 + $0x1b8] sm:$0xf0]  ;;  %v8478_v20 = vld [vmem:[%s9627_s29 + $0x2ac] sm:$0xf] }
  0xc1   : > { %1487 = vmatpush.bf16.msra.mxu1 %v6276_v1  ;;  %v6328_v1 = vor.u32 %v8454_v50, %v6325_v52  ;;  %v6421_v21 = vld [vmem:[%s9627_s29 + $0x2b8] sm:$0xf0]  ;;  %v8510_v22 = vld [vmem:[%s9627_s29 + $0x3ac] sm:$0xf] }
  0xc2   : > { %1501 = vmatpush.bf16.msra.mxu2 %v6404_v2  ;;  %v6456_v2 = vor.u32 %v8486_v53, %v6453_v54  ;;  %v6549_v23 = vld [vmem:[%s9627_s29 + $0x3b8] sm:$0xf0]  ;;  %v8410_v27 = vld [vmem:[%s9627_s29 + $0x8c] sm:$0xf] }
  0xc3   : > { %1515 = vmatpush.bf16.msra.mxu3 %v6532_v6  ;;  %v6584_v6 = vor.u32 %v8518_v58, %v6581_v61  ;;  %v6149_v28 = vld [vmem:[%s9627_s29 + $0x98] sm:$0xf0]  ;;  %v8442_v29 = vld [vmem:[%s9627_s29 + $0x18c] sm:$0xf] }
  0xc4   : > { %1474 = vmatpush.bf16.msra.mxu0 %v6132_v12  ;;  %v6184_v12 = vor.u32 %v8418_v3, %v6181_v4  ;;  %v6277_v31 = vld [vmem:[%s9627_s29 + $0x198] sm:$0xf0]  ;;  %v8474_v32 = vld [vmem:[%s9627_s29 + $0x28c] sm:$0xf] }
  0xc5   : > { %1488 = vmatpush.bf16.msra.mxu1 %v6260_v13  ;;  %v6312_v13 = vor.u32 %v8450_v5, %v6309_v7  ;;  %v6405_v33 = vld [vmem:[%s9627_s29 + $0x298] sm:$0xf0]  ;;  %v8506_v34 = vld [vmem:[%s9627_s29 + $0x38c] sm:$0xf]  ;;  %v6280_v37 = vor.u32 %v8442_v29, %v6277_v31  ;;  %v6947_v31 = vld [vmem:[%s9640_s12 + $0x2d0] sm:$0xf] }
  0xc6   : > { %1502 = vmatpush.bf16.msra.mxu2 %v6388_v14  ;;  %v6440_v14 = vor.u32 %v8482_v8, %v6437_v9  ;;  %v6533_v35 = vld [vmem:[%s9627_s29 + $0x398] sm:$0xf0]  ;;  %v6408_v38 = vor.u32 %v8474_v32, %v6405_v33  ;;  %v8438_v41 = vld [vmem:[%s9627_s29 + $0x16c] sm:$0xf]  ;;  %v8614_v32 = vld [vmem:[%s9640_s12 + $0x2e4] sm:$0xf0] }
  0xc7   : > { %1516 = vmatpush.bf16.msra.mxu3 %v6516_v18  ;;  %v6568_v18 = vor.u32 %v8514_v10, %v6565_v11  ;;  %v6536_v42 = vor.u32 %v8506_v34, %v6533_v35  ;;  %v6261_v43 = vld [vmem:[%s9627_s29 + $0x178] sm:$0xf0]  ;;  %v8502_v46 = vld [vmem:[%s9627_s29 + $0x36c] sm:$0xf]  ;;  %v6731_v33 = vld [vmem:[%s9640_s12 + $0x120] sm:$0xf]  ;;  %v6948_v35 = vor.u32 %v8614_v32, %v6947_v31 }
  0xc8   : > { %1475 = vmatpush.bf16.msra.mxu0 %v6116_v24  ;;  %v6168_v24 = vor.u32 %v8414_v15, %v6165_v16  ;;  %v6389_v45 = vld [vmem:[%s9627_s29 + $0x278] sm:$0xf0]  ;;  %v6264_v49 = vor.u32 %v8438_v41, %v6261_v43  ;;  %v8434_v53 = vld [vmem:[%s9627_s29 + $0x14c] sm:$0xf]  ;;  %v8560_v34 = vld [vmem:[%s9640_s12 + $0x134] sm:$0xf0] }
  0xc9   : > { %1489 = vmatpush.bf16.msra.mxu1 %v6244_v25  ;;  %v6296_v25 = vor.u32 %v8446_v17, %v6293_v19  ;;  %v6517_v47 = vld [vmem:[%s9627_s29 + $0x378] sm:$0xf0]  ;;  %v8498_v61 = vld [vmem:[%s9627_s29 + $0x34c] sm:$0xf]  ;;  %v6683_v43 = vld [vmem:[%s9640_s12 + $0xc0] sm:$0xf] }
  0xca   : > { %1503 = vmatpush.bf16.msra.mxu2 %v6372_v26  ;;  %v6424_v26 = vor.u32 %v8478_v20, %v6421_v21  ;;  %v6117_v52 = vld [vmem:[%s9627_s29 + $0x58] sm:$0xf0]  ;;  %v6520_v54 = vor.u32 %v8502_v46, %v6517_v47  ;;  %v8398_v3 = vld [vmem:[%s9627_s29 + $0x2c] sm:$0xf]  ;;  %v10005_v31 = vld [vmem:[%s9634_s5] sm:$0xf] }
  0xcb   : > { %1517 = vmatpush.bf16.msra.mxu3 %v6500_v30  ;;  %v6552_v30 = vor.u32 %v8510_v22, %v6549_v23  ;;  %v6373_v58 = vld [vmem:[%s9627_s29 + $0x258] sm:$0xf0]  ;;  %v8430_v5 = vld [vmem:[%s9627_s29 + $0x12c] sm:$0xf] }
  0xcc   : > { %1476 = vmatpush.bf16.msra.mxu0 %v6100_v36  ;;  %v6152_v36 = vor.u32 %v8410_v27, %v6149_v28  ;;  %v6101_v4 = vld [vmem:[%s9627_s29 + $0x38] sm:$0xf0]  ;;  %v8462_v8 = vld [vmem:[%s9627_s29 + $0x22c] sm:$0xf] }
  0xcd   : > { %1490 = vmatpush.bf16.msra.mxu1 %v6228_v39  ;;  %v8406_v39 = vld [vmem:[%s9627_s29 + $0x6c] sm:$0xf]  ;;  %v6229_v7 = vld [vmem:[%s9627_s29 + $0x138] sm:$0xf0] }
  0xce   : > { %1504 = vmatpush.bf16.msra.mxu2 %v6356_v40  ;;  %v6133_v40 = vld [vmem:[%s9627_s29 + $0x78] sm:$0xf0]  ;;  %v8494_v10 = vld [vmem:[%s9627_s29 + $0x32c] sm:$0xf] }
  0xcf   : > { %1518 = vmatpush.bf16.msra.mxu3 %v6484_v44  ;;  %v8470_v44 = vld [vmem:[%s9627_s29 + $0x26c] sm:$0xf]  ;;  %v6136_v48 = vor.u32 %v8406_v39, %v6133_v40  ;;  %v6357_v9 = vld [vmem:[%s9627_s29 + $0x238] sm:$0xf0]  ;;  %v6707_v39 = vld [vmem:[%s9640_s12 + $0xf0] sm:$0xf] }
  0xd0   : > { %1477 = vmatpush.bf16.msra.mxu0 %v6084_v51  ;;  %v6392_v50 = vor.u32 %v8470_v44, %v6389_v45  ;;  %v8402_v51 = vld [vmem:[%s9627_s29 + $0x4c] sm:$0xf]  ;;  %v6485_v11 = vld [vmem:[%s9627_s29 + $0x338] sm:$0xf0]  ;;  %v6360_v15 = vor.u32 %v8462_v8, %v6357_v9  ;;  %v8554_v40 = vld [vmem:[%s9640_s12 + $0x104] sm:$0xf0] }
  0xd1   : > { %1491 = vmatpush.bf16.msra.mxu1 %v6212_v56  ;;  %v6245_v56 = vld [vmem:[%s9627_s29 + $0x158] sm:$0xf0]  ;;  %v8426_v17 = vld [vmem:[%s9627_s29 + $0x10c] sm:$0xf]  ;;  %v6488_v19 = vor.u32 %v8494_v10, %v6485_v11  ;;  %v6899_v44 = vld [vmem:[%s9640_s12 + $0x270] sm:$0xf] }
  0xd2   : > { %1505 = vmatpush.bf16.msra.mxu2 %v6340_v57  ;;  %v8466_v57 = vld [vmem:[%s9627_s29 + $0x24c] sm:$0xf]  ;;  %v6085_v16 = vld [vmem:[%s9627_s29 + $0x18] sm:$0xf0]  ;;  %v8602_v45 = vld [vmem:[%s9640_s12 + $0x284] sm:$0xf0] }
  0xd3   : > { %1519 = vmatpush.bf16.msra.mxu3 %v6468_v62  ;;  %1478 = vmatmul.bf16.vlgmr.msra.gmra.mxu0 %v9758_v59  ;;  %v6501_v62 = vld [vmem:[%s9627_s29 + $0x358] sm:$0xf0]  ;;  %v8458_v20 = vld [vmem:[%s9627_s29 + $0x20c] sm:$0xf]  ;;  %v6803_v8 = vld [vmem:[%s9640_s12 + $0x1b0] sm:$0xf] }
  0xd4   : > { %1526 = vmatpush.bf16.msrb.mxu0 %v6200_v63  ;;  %1492 = vmatmul.bf16.vlgmr.msra.gmra.mxu1 %v9764_v0  ;;  %v6120_v63 = vor.u32 %v8402_v51, %v6117_v52  ;;  %v6341_v21 = vld [vmem:[%s9627_s29 + $0x218] sm:$0xf0]  ;;  %v8490_v22 = vld [vmem:[%s9627_s29 + $0x30c] sm:$0xf]  ;;  %v8536_v51 = vld [vmem:[%s9640_s12 + $0x74] sm:$0xf0] }
  0xd5   : > { %1540 = vmatpush.bf16.msrb.mxu1 %v6328_v1  ;;  %1506 = vmatmul.bf16.vlgmr.msra.gmra.mxu2 %v9753_v55  ;;  %v6248_v1 = vor.u32 %v8434_v53, %v6245_v56  ;;  %v6469_v23 = vld [vmem:[%s9627_s29 + $0x318] sm:$0xf0]  ;;  %v6344_v28 = vor.u32 %v8458_v20, %v6341_v21  ;;  %v8590_v56 = vld [vmem:[%s9640_s12 + $0x224] sm:$0xf0]  ;;  %v8557_v11 = vld [vmem:[%s9640_s12 + $0x124] sm:$0xf] }
  0xd6   : > { %1554 = vmatpush.bf16.msrb.mxu2 %v6456_v2  ;;  %1520 = vmatmul.bf16.vlgmr.msra.gmra.mxu3 %v9760_v60  ;;  %v6376_v2 = vor.u32 %v8466_v57, %v6373_v58  ;;  %v6472_v29 = vor.u32 %v8490_v22, %v6469_v23  ;;  %v6611_v57 = vld [vmem:[%s9640_s12 + $0x30] sm:$0xf]  ;;  %v8530_v58 = vld [vmem:[%s9640_s12 + $0x44] sm:$0xf0]  ;;  %v8551_v21 = vld [vmem:[%s9640_s12 + $0xf4] sm:$0xf] }
  0xd7   : > { %1568 = vmatpush.bf16.msrb.mxu3 %v6584_v6  ;;  %v6504_v6 = vor.u32 %v8498_v61, %v6501_v62  ;;  %v6612_v62 = vor.u32 %v8530_v58, %v6611_v57  ;;  %v8578_v9 = vld [vmem:[%s9640_s12 + $0x1c4] sm:$0xf0]  ;;  %v6709_v22 = vld [vmem:[%s9640_s12 + $0x108] sm:$0xf0] }
  0xd8   : > { %1527 = vmatpush.bf16.msrb.mxu0 %v6184_v12  ;;  %v6104_v12 = vor.u32 %v8398_v3, %v6101_v4  ;;  %v8524_v3 = vld [vmem:[%s9640_s12 + $0x14] sm:$0xf0] }
  0xd9   : > { %1541 = vmatpush.bf16.msrb.mxu1 %v6312_v13  ;;  %v8394_v13 = vld [vmem:[%s9627_s29 + $0xc] sm:$0xf] }
  0xda   : > { %1555 = vmatpush.bf16.msrb.mxu2 %v6440_v14  ;;  %v6232_v14 = vor.u32 %v8430_v5, %v6229_v7  ;;  %v8563_v5 = vld [vmem:[%s9640_s12 + $0x154] sm:$0xf] }
  0xdb   : > { %1569 = vmatpush.bf16.msrb.mxu3 %v6568_v18  ;;  %v6213_v18 = vld [vmem:[%s9627_s29 + $0x118] sm:$0xf0] }
  0xdc   : > { %1528 = vmatpush.bf16.msrb.mxu0 %v6168_v24  ;;  %v6755_v24 = vld [vmem:[%s9640_s12 + $0x150] sm:$0xf]  ;;  %v6216_v27 = vor.u32 %v8426_v17, %v6213_v18  ;;  %v8662_v18 = vld [vmem:[%s9640_s12 + $0x464] sm:$0xf0] }
  0xdd   : > { %1542 = vmatpush.bf16.msrb.mxu1 %v6296_v25  ;;  %v8566_v25 = vld [vmem:[%s9640_s12 + $0x164] sm:$0xf0]  ;;  %v7139_v17 = vld [vmem:[%s9640_s12 + $0x450] sm:$0xf] }
  0xde   : > { %1556 = vmatpush.bf16.msrb.mxu2 %v6424_v26  ;;  %v6088_v26 = vor.u32 %v8394_v13, %v6085_v16  ;;  %v6733_v13 = vld [vmem:[%s9640_s12 + $0x138] sm:$0xf0]  ;;  %v7140_v23 = vor.u32 %v8662_v18, %v7139_v17 }
  0xdf   : > { %1570 = vmatpush.bf16.msrb.mxu3 %v6552_v30  ;;  %v6756_v30 = vor.u32 %v8566_v25, %v6755_v24  ;;  %v6736_v20 = vor.u32 %v8557_v11, %v6733_v13  ;;  %v6949_v24 = vld [vmem:[%s9640_s12 + $0x2e8] sm:$0xf0]  ;;  %v8632_v13 = vld [vmem:[%s9640_s12 + $0x374] sm:$0xf0]  ;;  %v6589_v17 = vld [vmem:[%s9640_s12 + $0x18] sm:$0xf0] }
  0xe0   : > { %1529 = vmatpush.bf16.msrb.mxu0 %v6152_v36  ;;  %v6923_v36 = vld [vmem:[%s9640_s12 + $0x2a0] sm:$0xf] }
  0xe1   : > { %1543 = vmatpush.bf16.msrb.mxu1 %v6280_v37  ;;  %v8608_v37 = vld [vmem:[%s9640_s12 + $0x2b4] sm:$0xf0] }
  0xe2   : > { %1557 = vmatpush.bf16.msrb.mxu2 %v6408_v38  ;;  %v6732_v38 = vor.u32 %v8560_v34, %v6731_v33  ;;  %v6924_v41 = vor.u32 %v8608_v37, %v6923_v36  ;;  %v6712_v33 = vor.u32 %v8551_v21, %v6709_v22  ;;  %v8545_v34 = vld [vmem:[%s9640_s12 + $0xc4] sm:$0xf]  ;;  %v690_v36 = vperm.slane %v10005_v31, 0 }
  0xe3   : > { %1571 = vmatpush.bf16.msrb.mxu3 %v6536_v42  ;;  %v6708_v42 = vor.u32 %v8554_v40, %v6707_v39  ;;  %v8650_v39 = vld [vmem:[%s9640_s12 + $0x404] sm:$0xf0]  ;;  %v8599_v40 = vld [vmem:[%s9640_s12 + $0x274] sm:$0xf] }
  0xe4   : > { %1530 = vmatpush.bf16.msrb.mxu0 %v6136_v48  ;;  %v6875_v48 = vld [vmem:[%s9640_s12 + $0x240] sm:$0xf] }
  0xe5   : > { %1544 = vmatpush.bf16.msrb.mxu1 %v6264_v49  ;;  %v8596_v49 = vld [vmem:[%s9640_s12 + $0x254] sm:$0xf0] }
  0xe6   : > { %1558 = vmatpush.bf16.msrb.mxu2 %v6392_v50  ;;  %v6635_v50 = vld [vmem:[%s9640_s12 + $0x60] sm:$0xf]  ;;  %v6876_v52 = vor.u32 %v8596_v49, %v6875_v48  ;;  %v8593_v48 = vld [vmem:[%s9640_s12 + $0x244] sm:$0xf] }
  0xe7   : > { %1572 = vmatpush.bf16.msrb.mxu3 %v6520_v54  ;;  %v6636_v53 = vor.u32 %v8536_v51, %v6635_v50  ;;  %v6851_v54 = vld [vmem:[%s9640_s12 + $0x210] sm:$0xf]  ;;  %v8533_v50 = vld [vmem:[%s9640_s12 + $0x64] sm:$0xf]  ;;  %v6637_v51 = vld [vmem:[%s9640_s12 + $0x78] sm:$0xf0] }
  0xe8   : > { %1531 = vmatpush.bf16.msrb.mxu0 %v6120_v63  ;;  %v6852_v61 = vor.u32 %v8590_v56, %v6851_v54  ;;  %v6827_v63 = vld [vmem:[%s9640_s12 + $0x1e0] sm:$0xf]  ;;  %v6640_v58 = vor.u32 %v8533_v50, %v6637_v51  ;;  %v8704_v51 = vld [vmem:[%s9640_s12 + $0x5b4] sm:$0xf0] }
  0xe9   : > { %1545 = vmatpush.bf16.msrb.mxu1 %v6248_v1  ;;  %v8584_v1 = vld [vmem:[%s9640_s12 + $0x1f4] sm:$0xf0]  ;;  %v7307_v50 = vld [vmem:[%s9640_s12 + $0x5a0] sm:$0xf] }
  0xea   : > { %1559 = vmatpush.bf16.msrb.mxu2 %v6376_v2  ;;  %v6587_v2 = vld [vmem:[%s9640_s12] sm:$0xf]  ;;  %v6828_v4 = vor.u32 %v8584_v1, %v6827_v63  ;;  %v8587_v63 = vld [vmem:[%s9640_s12 + $0x214] sm:$0xf] }
  0xeb   : > { %1573 = vmatpush.bf16.msrb.mxu3 %v6504_v6  ;;  %v6757_v6 = vld [vmem:[%s9640_s12 + $0x168] sm:$0xf0]  ;;  %v6588_v7 = vor.u32 %v8524_v3, %v6587_v2  ;;  %v8527_v3 = vld [vmem:[%s9640_s12 + $0x34] sm:$0xf] }
  0xec   : > { %1532 = vmatpush.bf16.msrb.mxu0 %v6104_v12  ;;  %v6760_v10 = vor.u32 %v8563_v5, %v6757_v6  ;;  %v6804_v12 = vor.u32 %v8578_v9, %v6803_v8  ;;  %v6853_v6 = vld [vmem:[%s9640_s12 + $0x228] sm:$0xf0] }
  0xed   : > { %1546 = vmatpush.bf16.msrb.mxu1 %v6232_v14  ;;  %v6779_v14 = vld [vmem:[%s9640_s12 + $0x180] sm:$0xf]  ;;  %v6856_v9 = vor.u32 %v8587_v63, %v6853_v6  ;;  %v6691_v63 = vld [vmem:[%s9640_s12 + $0xc8] sm:$0xf]  ;;  %v7093_v6 = vld [vmem:[%s9640_s12 + $0x408] sm:$0xf0] }
  0xee   : > { %1560 = vmatpush.bf16.msrb.mxu2 %v6360_v15  ;;  %v8572_v15 = vld [vmem:[%s9640_s12 + $0x194] sm:$0xf0] }
  0xef   : > { %1574 = vmatpush.bf16.msrb.mxu3 %v6488_v19  ;;  %v6780_v16 = vor.u32 %v8572_v15, %v6779_v14  ;;  %v8611_v19 = vld [vmem:[%s9640_s12 + $0x2d4] sm:$0xf]  ;;  %v8581_v14 = vld [vmem:[%s9640_s12 + $0x1e4] sm:$0xf] }
  0xf0   : > { %1533 = vmatpush.bf16.msrb.mxu0 %v6088_v26  ;;  %v6952_v25 = vor.u32 %v8611_v19, %v6949_v24  ;;  %v7115_v26 = vld [vmem:[%s9640_s12 + $0x420] sm:$0xf]  ;;  %v6829_v19 = vld [vmem:[%s9640_s12 + $0x1f8] sm:$0xf0]  ;;  %v6763_v24 = vld [vmem:[%s9640_s12 + $0x158] sm:$0xf] }
  0xf1   : > { %1547 = vmatpush.bf16.msrb.mxu1 %v6216_v27  ;;  %v8656_v27 = vld [vmem:[%s9640_s12 + $0x434] sm:$0xf0]  ;;  %v6832_v21 = vor.u32 %v8581_v14, %v6829_v19  ;;  %v7259_v14 = vld [vmem:[%s9640_s12 + $0x540] sm:$0xf] }
  0xf2   : > { %1561 = vmatpush.bf16.msrb.mxu2 %v6344_v28  ;;  %v8605_v28 = vld [vmem:[%s9640_s12 + $0x2a4] sm:$0xf] }
  0xf3   : > { %1575 = vmatpush.bf16.msrb.mxu3 %v6472_v29  ;;  %1534 = vmatmul.bf16.vlgmr.msrb.gmra.mxu0 %v9758_v59  ;;  %v8548_v59 = vld [vmem:[%s9640_s12 + $0xd4] sm:$0xf0]  ;;  %v7116_v29 = vor.u32 %v8656_v27, %v7115_v26  ;;  %v6995_v26 = vld [vmem:[%s9640_s12 + $0x330] sm:$0xf]  ;;  %v8626_v27 = vld [vmem:[%s9640_s12 + $0x344] sm:$0xf0] }
  0xf4   : > { %2746 = vmatpush.bf16.msra.mxu0 %v6756_v30  ;;  %1548 = vmatmul.bf16.vlgmr.msrb.gmra.mxu1 %v9764_v0  ;;  %v6684_v46 = vor.u32 %v8548_v59, %v6683_v43  ;;  %v6900_v0 = vor.u32 %v8602_v45, %v6899_v44  ;;  %v6925_v30 = vld [vmem:[%s9640_s12 + $0x2b8] sm:$0xf0]  ;;  %v6661_v43 = vld [vmem:[%s9640_s12 + $0xa8] sm:$0xf0] }
  0xf5   : > { %2760 = vmatpush.bf16.msra.mxu1 %v6948_v35  ;;  %1562 = vmatmul.bf16.vlgmr.msrb.gmra.mxu2 %v9753_v55  ;;  %v6659_v55 = vld [vmem:[%s9640_s12 + $0x90] sm:$0xf]  ;;  %v6928_v32 = vor.u32 %v8605_v28, %v6925_v30  ;;  %v6685_v35 = vld [vmem:[%s9640_s12 + $0xd8] sm:$0xf0]  ;;  %v6901_v44 = vld [vmem:[%s9640_s12 + $0x288] sm:$0xf0] }
  0xf6   : > { %1576 = vmatmul.bf16.vlgmr.msrb.gmra.mxu3 %v9760_v60  ;;  %v8542_v60 = vld [vmem:[%s9640_s12 + $0xa4] sm:$0xf0]  ;;  %2774 = vmatpush.bf16.msra.mxu2 %v7140_v23  ;;  %v6688_v37 = vor.u32 %v8545_v34, %v6685_v35  ;;  %v8575_v28 = vld [vmem:[%s9640_s12 + $0x1b4] sm:$0xf]  ;;  %v6805_v34 = vld [vmem:[%s9640_s12 + $0x1c8] sm:$0xf0] }
  0xf7   : > { %v6660_v47 = vor.u32 %v8542_v60, %v6659_v55  ;;  %v7067_v60 = vld [vmem:[%s9640_s12 + $0x3c0] sm:$0xf]  ;;  %v6808_v35 = vor.u32 %v8575_v28, %v6805_v34  ;;  %v8635_v28 = vld [vmem:[%s9640_s12 + $0x394] sm:$0xf] }
  0xf8   : > { %2747 = vmatpush.bf16.msra.mxu0 %v6732_v38  ;;  %v7091_v38 = vld [vmem:[%s9640_s12 + $0x3f0] sm:$0xf] }
  0xf9   : > { %2761 = vmatpush.bf16.msra.mxu1 %v6924_v41  ;;  %v7092_v59 = vor.u32 %v8650_v39, %v7091_v38  ;;  %v8620_v38 = vld [vmem:[%s9640_s12 + $0x314] sm:$0xf0] }
  0xfa   : > { %2775 = vmatpush.bf16.msra.mxu2 %v7116_v29 }
  0xfc   : > { %2748 = vmatpush.bf16.msra.mxu0 %v6708_v42  ;;  %v8539_v42 = vld [vmem:[%s9640_s12 + $0x94] sm:$0xf] }
  0xfd   : > { %2762 = vmatpush.bf16.msra.mxu1 %v6900_v0  ;;  %v6904_v0 = vor.u32 %v8599_v40, %v6901_v44  ;;  %v6664_v55 = vor.u32 %v8539_v42, %v6661_v43  ;;  %v6739_v40 = vld [vmem:[%s9640_s12 + $0x128] sm:$0xf]  ;;  %v8569_v42 = vld [vmem:[%s9640_s12 + $0x184] sm:$0xf]  ;;  %v6781_v43 = vld [vmem:[%s9640_s12 + $0x198] sm:$0xf0] }
  0xfe   : > { %2776 = vmatpush.bf16.msra.mxu2 %v7092_v59  ;;  %v8561_v44 = vld [vmem:[%s9640_s12 + $0x13c] sm:$0xf0] }
 0x100   : > { %2749 = vmatpush.bf16.msra.mxu0 %v6684_v46 }
 0x101   : > { %2763 = vmatpush.bf16.msra.mxu1 %v6876_v52 }
 0x104   : > { %2750 = vmatpush.bf16.msra.mxu0 %v6660_v47  ;;  %v8644_v47 = vld [vmem:[%s9640_s12 + $0x3d4] sm:$0xf0] }
 0x105   : > { %2764 = vmatpush.bf16.msra.mxu1 %v6852_v61  ;;  %v7068_v52 = vor.u32 %v8644_v47, %v7067_v60  ;;  %v7043_v61 = vld [vmem:[%s9640_s12 + $0x390] sm:$0xf]  ;;  %v8659_v60 = vld [vmem:[%s9640_s12 + $0x454] sm:$0xf]  ;;  %v7141_v47 = vld [vmem:[%s9640_s12 + $0x468] sm:$0xf0] }
 0x107   : > { %2777 = vmatpush.bf16.msra.mxu2 %v7068_v52  ;;  %v8653_v52 = vld [vmem:[%s9640_s12 + $0x424] sm:$0xf] }
 0x108   : > { %2751 = vmatpush.bf16.msra.mxu0 %v6636_v53  ;;  %v6877_v53 = vld [vmem:[%s9640_s12 + $0x258] sm:$0xf0] }
 0x109   : > { %2765 = vmatpush.bf16.msra.mxu1 %v6828_v4  ;;  %v6880_v56 = vor.u32 %v8593_v48, %v6877_v53  ;;  %v6613_v4 = vld [vmem:[%s9640_s12 + $0x48] sm:$0xf0]  ;;  %v7144_v48 = vor.u32 %v8659_v60, %v7141_v47  ;;  %v6715_v53 = vld [vmem:[%s9640_s12 + $0xf8] sm:$0xf]  ;;  %v6595_v47 = vld [vmem:[%s9640_s12 + $0x8] sm:$0xf] }
 0x10a   : > { %v6616_v11 = vor.u32 %v8527_v3, %v6613_v4  ;;  %v8698_v3 = vld [vmem:[%s9640_s12 + $0x584] sm:$0xf0]  ;;  %v8647_v4 = vld [vmem:[%s9640_s12 + $0x3f4] sm:$0xf] }
 0x10c   : > { %2752 = vmatpush.bf16.msra.mxu0 %v6612_v62  ;;  %v8638_v62 = vld [vmem:[%s9640_s12 + $0x3a4] sm:$0xf0] }
 0x10d   : > { %2766 = vmatpush.bf16.msra.mxu1 %v6804_v12  ;;  %v7044_v5 = vor.u32 %v8638_v62, %v7043_v61  ;;  %v7019_v12 = vld [vmem:[%s9640_s12 + $0x360] sm:$0xf]  ;;  %v691_v61 = vperm.slane %v10005_v31, 1 }
 0x10e   : > { %v7020_v18 = vor.u32 %v8632_v13, %v7019_v12  ;;  %v6667_v12 = vld [vmem:[%s9640_s12 + $0x98] sm:$0xf]  ;;  %v8543_v13 = vld [vmem:[%s9640_s12 + $0xac] sm:$0xf0] }
 0x10f   : > { %2778 = vmatpush.bf16.msra.mxu2 %v7044_v5 }
 0x110   : > { %2753 = vmatpush.bf16.msra.mxu0 %v6588_v7 }
 0x111   : > { %2767 = vmatpush.bf16.msra.mxu1 %v6780_v16  ;;  %v1381_v46 = vpop.f32.mrf.mxu1  ;;  %v8521_v16 = vld [vmem:[%s9640_s12 + $0x4] sm:$0xf] }
 0x113   : > { %v1367_v41 = vpop.f32.mrf.mxu0  ;;  %2779 = vmatpush.bf16.msra.mxu2 %v7020_v18  ;;  %v7069_v18 = vld [vmem:[%s9640_s12 + $0x3d8] sm:$0xf0] }
 0x114   : > { %2802 = vmatpush.bf16.msrb.mxu0 %v6760_v10  ;;  %v1368_v45 = vadd.f32 %v1367_v41, %v690_v36 }
 0x115   : > { %2816 = vmatpush.bf16.msrb.mxu1 %v6952_v25  ;;  %v6592_v25 = vor.u32 %v8521_v16, %v6589_v17  ;;  %v8641_v16 = vld [vmem:[%s9640_s12 + $0x3c4] sm:$0xf] }
 0x116   : > { %v1382_v49 = vadd.f32 %v1381_v46, %v1368_v45  ;;  %v6784_v45 = vor.u32 %v8569_v42, %v6781_v43  ;;  %v7331_v46 = vld [vmem:[%s9640_s12 + $0x5d0] sm:$0xf] }
 0x118   : > { %2803 = vmatpush.bf16.msrb.mxu0 %v6736_v20  ;;  %v1395_v54 = vpop.f32.mrf.mxu2 }
 0x119   : > { %2817 = vmatpush.bf16.msrb.mxu1 %v6928_v32  ;;  %v1396_v1 = vadd.f32 %v1395_v54, %v1382_v49  ;;  %v1383_v8 = vpop.f32.mrf.mxu1  ;;  %v8567_v32 = vld [vmem:[%s9640_s12 + $0x16c] sm:$0xf0]  ;;  %v6740_v49 = vor.u32 %v8561_v44, %v6739_v40  ;;  %v7211_v40 = vld [vmem:[%s9640_s12 + $0x4e0] sm:$0xf]  ;;  %v8629_v44 = vld [vmem:[%s9640_s12 + $0x364] sm:$0xf] }
 0x11a   : > { %v6764_v39 = vor.u32 %v8567_v32, %v6763_v24  ;;  %v8555_v54 = vld [vmem:[%s9640_s12 + $0x10c] sm:$0xf0]  ;;  %v8537_v24 = vld [vmem:[%s9640_s12 + $0x7c] sm:$0xf0] }
 0x11b   : > { %v1409_v57 = vpop.f32.mrf.mxu3  ;;  %v1369_v2 = vpop.f32.mrf.mxu0  ;;  %v6716_v62 = vor.u32 %v8555_v54, %v6715_v53  ;;  %v8623_v53 = vld [vmem:[%s9640_s12 + $0x334] sm:$0xf]  ;;  %v8564_v54 = vld [vmem:[%s9640_s12 + $0x15c] sm:$0xf] }
 0x11c   : > { %2804 = vmatpush.bf16.msrb.mxu0 %v6712_v33  ;;  %v1370_v7 = vadd.f32 %v1369_v2, %v690_v36  ;;  %v1410_v15 = vadd.f32 %v1409_v57, %v1396_v1  ;;  %v6996_v33 = vor.u32 %v8626_v27, %v6995_v26  ;;  %v7117_v57 = vld [vmem:[%s9640_s12 + $0x438] sm:$0xf0]  ;;  %v8549_v1 = vld [vmem:[%s9640_s12 + $0xdc] sm:$0xf0]  ;;  %v7283_v2 = vld [vmem:[%s9640_s12 + $0x570] sm:$0xf] }
 0x11d   : > { %2818 = vmatpush.bf16.msrb.mxu1 %v6904_v0  ;;  %v8710_v0 = vld [vmem:[%s9640_s12 + $0x5e4] sm:$0xf0]  ;;  %v7284_v5 = vor.u32 %v8698_v3, %v7283_v2  ;;  %v7235_v26 = vld [vmem:[%s9640_s12 + $0x510] sm:$0xf] }
 0x11e   : > { %v1384_v10 = vadd.f32 %v1383_v8, %v1370_v7  ;;  %v1582_v29 = vmax.f32 %v1410_v15, 0.0  ;;  %2780 = vmatpush.bf16.msra.mxu2 %v6996_v33  ;;  %v7096_v8 = vor.u32 %v8647_v4, %v7093_v6  ;;  %v8692_v15 = vld [vmem:[%s9640_s12 + $0x554] sm:$0xf0]  ;;  %v8686_v27 = vld [vmem:[%s9640_s12 + $0x524] sm:$0xf0] }
 0x11f   : > { %v7260_v17 = vor.u32 %v8692_v15, %v7259_v14  ;;  %v8558_v4 = vld [vmem:[%s9640_s12 + $0x12c] sm:$0xf]  ;;  %v6931_v15 = vld [vmem:[%s9640_s12 + $0x2a8] sm:$0xf] }
 0x120   : > { %2805 = vmatpush.bf16.msrb.mxu0 %v6688_v37  ;;  %v1397_v20 = vpop.f32.mrf.mxu2  ;;  %v6971_v37 = vld [vmem:[%s9640_s12 + $0x300] sm:$0xf] }
 0x121   : > { %2819 = vmatpush.bf16.msrb.mxu1 %v6880_v56  ;;  %v1398_v22 = vadd.f32 %v1397_v20, %v1384_v10  ;;  %v6972_v41 = vor.u32 %v8620_v38, %v6971_v37  ;;  %v7308_v56 = vor.u32 %v8704_v51, %v7307_v50  ;;  %v7072_v20 = vor.u32 %v8641_v16, %v7069_v18  ;;  %v6619_v38 = vld [vmem:[%s9640_s12 + $0x38] sm:$0xf]  ;;  %v7187_v51 = vld [vmem:[%s9640_s12 + $0x4b0] sm:$0xf]  ;;  %v8609_v16 = vld [vmem:[%s9640_s12 + $0x2bc] sm:$0xf0] }
 0x122   : > { %v8707_v18 = vld [vmem:[%s9640_s12 + $0x5d4] sm:$0xf] }
 0x123   : > { %v1411_v23 = vpop.f32.mrf.mxu3  ;;  %2781 = vmatpush.bf16.msra.mxu2 %v6972_v41  ;;  %v8680_v41 = vld [vmem:[%s9640_s12 + $0x4f4] sm:$0xf0] }
 0x124   : > { %2806 = vmatpush.bf16.msrb.mxu0 %v6664_v55  ;;  %v1412_v30 = vadd.f32 %v1411_v23, %v1398_v22  ;;  %v7332_v55 = vor.u32 %v8710_v0, %v7331_v46  ;;  %v6668_v22 = vor.u32 %v8543_v13, %v6667_v12  ;;  %v6643_v23 = vld [vmem:[%s9640_s12 + $0x68] sm:$0xf]  ;;  %v7212_v43 = vor.u32 %v8680_v41, %v7211_v40  ;;  %v8617_v12 = vld [vmem:[%s9640_s12 + $0x304] sm:$0xf]  ;;  %v6973_v13 = vld [vmem:[%s9640_s12 + $0x318] sm:$0xf0] }
 0x125   : > { %2820 = vmatpush.bf16.msrb.mxu1 %v6856_v9  ;;  %v6644_v37 = vor.u32 %v8537_v24, %v6643_v23  ;;  %v8552_v23 = vld [vmem:[%s9640_s12 + $0xfc] sm:$0xf]  ;;  %v6717_v24 = vld [vmem:[%s9640_s12 + $0x110] sm:$0xf0] }
 0x126   : > { %v1586_v36 = vmax.f32 %v1412_v30, 0.0  ;;  %2788 = vmatpush.bf16.msra.mxu3 %v7332_v55  ;;  %v7045_v30 = vld [vmem:[%s9640_s12 + $0x3a8] sm:$0xf0] }
 0x127   : > { %2830 = vmatpush.bf16.msrb.mxu2 %v7144_v48  ;;  %v7048_v34 = vor.u32 %v8635_v28, %v7045_v30  ;;  %v8525_v48 = vld [vmem:[%s9640_s12 + $0x1c] sm:$0xf0]  ;;  %v7309_v28 = vld [vmem:[%s9640_s12 + $0x5b8] sm:$0xf0]  ;;  %v692_v30 = vperm.slane %v10005_v31, 2 }
 0x128   : > { %2807 = vmatpush.bf16.msrb.mxu0 %v6640_v58  ;;  %v10045_v59 = vpack.c.bf16 %v1586_v36, %v1582_v29  ;;  %v7120_v58 = vor.u32 %v8653_v52, %v7117_v57  ;;  %v7236_v29 = vor.u32 %v8686_v27, %v7235_v26  ;;  %v8674_v52 = vld [vmem:[%s9640_s12 + $0x4c4] sm:$0xf0]  ;;  %v6596_v3 = vor.u32 %v8525_v48, %v6595_v47  ;;  %v6907_v26 = vld [vmem:[%s9640_s12 + $0x278] sm:$0xf]  ;;  %v8603_v27 = vld [vmem:[%s9640_s12 + $0x28c] sm:$0xf0] }
 0x129   : > { %2821 = vmatpush.bf16.msrb.mxu1 %v6832_v21  ;;  %v7188_v57 = vor.u32 %v8674_v52, %v7187_v51  ;;  %v6859_v47 = vld [vmem:[%s9640_s12 + $0x218] sm:$0xf]  ;;  %v8591_v48 = vld [vmem:[%s9640_s12 + $0x22c] sm:$0xf0]  ;;  %v8534_v52 = vld [vmem:[%s9640_s12 + $0x6c] sm:$0xf] }
 0x12a   : > { %2754 = vmatmul.bf16.vlgmr.msra.gmra.mxu0 %v10045_v59  ;;  %2789 = vmatpush.bf16.msra.mxu3 %v7308_v56  ;;  %v6765_v56 = vld [vmem:[%s9640_s12 + $0x170] sm:$0xf0] }
 0x12b   : > { %2831 = vmatpush.bf16.msrb.mxu2 %v7120_v58  ;;  %v6997_v58 = vld [vmem:[%s9640_s12 + $0x348] sm:$0xf0]  ;;  %v6768_v6 = vor.u32 %v8564_v54, %v6765_v56  ;;  %v6860_v54 = vor.u32 %v8591_v48, %v6859_v47  ;;  %v6645_v56 = vld [vmem:[%s9640_s12 + $0x80] sm:$0xf0] }
 0x12c   : > { %2808 = vmatpush.bf16.msrb.mxu0 %v6616_v11  ;;  %v6692_v11 = vor.u32 %v8549_v1, %v6691_v63  ;;  %v6955_v63 = vld [vmem:[%s9640_s12 + $0x2d8] sm:$0xf]  ;;  %v8615_v1 = vld [vmem:[%s9640_s12 + $0x2ec] sm:$0xf0]  ;;  %v7000_v2 = vor.u32 %v8623_v53, %v6997_v58  ;;  %v7237_v58 = vld [vmem:[%s9640_s12 + $0x528] sm:$0xf0] }
 0x12d   : > { %2822 = vmatpush.bf16.msrb.mxu1 %v6808_v35  ;;  %v6933_v47 = vld [vmem:[%s9640_s12 + $0x2c0] sm:$0xf0] }
 0x12e   : > { %2790 = vmatpush.bf16.msra.mxu3 %v7284_v5 }
 0x12f   : > { %2832 = vmatpush.bf16.msrb.mxu2 %v7096_v8  ;;  %v8668_v8 = vld [vmem:[%s9640_s12 + $0x494] sm:$0xf0] }
 0x130   : > { %2809 = vmatpush.bf16.msrb.mxu0 %v6592_v25  ;;  %v1423_v7 = vpop.f32.mrf.mxu0 }
 0x131   : > { %2823 = vmatpush.bf16.msrb.mxu1 %v6784_v45  ;;  %v1424_v9 = vadd.f32 %v1423_v7, %v691_v61  ;;  %v1437_v10 = vpop.f32.mrf.mxu1  ;;  %v7021_v45 = vld [vmem:[%s9640_s12 + $0x378] sm:$0xf0]  ;;  %v7163_v7 = vld [vmem:[%s9640_s12 + $0x480] sm:$0xf] }
 0x132   : > { %2791 = vmatpush.bf16.msra.mxu3 %v7260_v17  ;;  %v7024_v0 = vor.u32 %v8629_v44, %v7021_v45  ;;  %v6976_v17 = vor.u32 %v8617_v12, %v6973_v13  ;;  %v6811_v12 = vld [vmem:[%s9640_s12 + $0x1b8] sm:$0xf]  ;;  %v8579_v13 = vld [vmem:[%s9640_s12 + $0x1cc] sm:$0xf0] }
 0x133   : > { %v1438_v19 = vadd.f32 %v1437_v10, %v1424_v9  ;;  %2833 = vmatpush.bf16.msrb.mxu2 %v7072_v20  ;;  %v6956_v9 = vor.u32 %v8615_v1, %v6955_v63  ;;  %v6741_v10 = vld [vmem:[%s9640_s12 + $0x140] sm:$0xf0]  ;;  %v8585_v63 = vld [vmem:[%s9640_s12 + $0x1fc] sm:$0xf0] }
 0x134   : > { %2858 = vmatpush.bf16.msra.mxu0 %v6764_v39  ;;  %v8531_v39 = vld [vmem:[%s9640_s12 + $0x4c] sm:$0xf0]  ;;  %v6744_v20 = vor.u32 %v8558_v4, %v6741_v10  ;;  %v6648_v4 = vor.u32 %v8534_v52, %v6645_v56  ;;  %v8677_v10 = vld [vmem:[%s9640_s12 + $0x4e4] sm:$0xf]  ;;  %v8556_v56 = vld [vmem:[%s9640_s12 + $0x114] sm:$0xf0] }
 0x135   : > { %v6620_v60 = vor.u32 %v8531_v39, %v6619_v38  ;;  %v6883_v38 = vld [vmem:[%s9640_s12 + $0x248] sm:$0xf]  ;;  %v8597_v39 = vld [vmem:[%s9640_s12 + $0x25c] sm:$0xf0] }
 0x136   : > { %2792 = vmatpush.bf16.msra.mxu3 %v7236_v29 }
 0x137   : > { %2834 = vmatpush.bf16.msrb.mxu2 %v7048_v34  ;;  %v6908_v34 = vor.u32 %v8603_v27, %v6907_v26 }
 0x138   : > { %2859 = vmatpush.bf16.msra.mxu0 %v6740_v49  ;;  %v1451_v21 = vpop.f32.mrf.mxu2  ;;  %v1425_v33 = vpop.f32.mrf.mxu0 }
 0x139   : > { %v1465_v25 = vpop.f32.mrf.mxu3  ;;  %v1452_v32 = vadd.f32 %v1451_v21, %v1438_v19  ;;  %v1426_v35 = vadd.f32 %v1425_v33, %v691_v61  ;;  %v1439_v36 = vpop.f32.mrf.mxu1  ;;  %v7333_v19 = vld [vmem:[%s9640_s12 + $0x5e8] sm:$0xf0] }
 0x13a   : > { %2810 = vmatmul.bf16.vlgmr.msrb.gmra.mxu0 %v10045_v59  ;;  %2793 = vmatpush.bf16.msra.mxu3 %v7212_v43  ;;  %v7336_v21 = vor.u32 %v8707_v18, %v7333_v19  ;;  %v8546_v33 = vld [vmem:[%s9640_s12 + $0xcc] sm:$0xf]  ;;  %v8540_v43 = vld [vmem:[%s9640_s12 + $0x9c] sm:$0xf]  ;;  %v6787_v19 = vld [vmem:[%s9640_s12 + $0x188] sm:$0xf] }
 0x13b   : > { %v1440_v42 = vadd.f32 %v1439_v36, %v1426_v35  ;;  %v1466_v46 = vadd.f32 %v1465_v25, %v1452_v32  ;;  %2835 = vmatpush.bf16.msrb.mxu2 %v7024_v0  ;;  %v8701_v25 = vld [vmem:[%s9640_s12 + $0x5a4] sm:$0xf]  ;;  %v6720_v32 = vor.u32 %v8552_v23, %v6717_v24  ;;  %v8695_v36 = vld [vmem:[%s9640_s12 + $0x574] sm:$0xf] }
 0x13c   : > { %2860 = vmatpush.bf16.msra.mxu0 %v6716_v62  ;;  %v7312_v29 = vor.u32 %v8701_v25, %v7309_v28  ;;  %v6693_v35 = vld [vmem:[%s9640_s12 + $0xe0] sm:$0xf0]  ;;  %v6669_v0 = vld [vmem:[%s9640_s12 + $0xb0] sm:$0xf0]  ;;  %v7189_v25 = vld [vmem:[%s9640_s12 + $0x4c8] sm:$0xf0] }
 0x13d   : > { %v1583_v61 = vmax.f32 %v1466_v46, 0.0  ;;  %v6884_v46 = vor.u32 %v8597_v39, %v6883_v38  ;;  %v6672_v51 = vor.u32 %v8540_v43, %v6669_v0  ;;  %v6597_v23 = vld [vmem:[%s9640_s12 + $0x20] sm:$0xf0]  ;;  %v8671_v24 = vld [vmem:[%s9640_s12 + $0x4b4] sm:$0xf] }
 0x13e   : > { %2794 = vmatpush.bf16.msra.mxu3 %v7188_v57  ;;  %v8683_v57 = vld [vmem:[%s9640_s12 + $0x514] sm:$0xf]  ;;  %v8573_v28 = vld [vmem:[%s9640_s12 + $0x19c] sm:$0xf0]  ;;  %v7147_v38 = vld [vmem:[%s9640_s12 + $0x458] sm:$0xf] }
 0x13f   : > { %2836 = vmatpush.bf16.msrb.mxu2 %v7000_v2  ;;  %v7240_v1 = vor.u32 %v8683_v57, %v7237_v58  ;;  %v8663_v39 = vld [vmem:[%s9640_s12 + $0x46c] sm:$0xf0]  ;;  %v7165_v43 = vld [vmem:[%s9640_s12 + $0x498] sm:$0xf0]  ;;  %v8562_v0 = vld [vmem:[%s9640_s12 + $0x144] sm:$0xf0] }
 0x140   : > { %2861 = vmatpush.bf16.msra.mxu0 %v6692_v11  ;;  %v1453_v55 = vpop.f32.mrf.mxu2  ;;  %v7164_v11 = vor.u32 %v8668_v8, %v7163_v7  ;;  %v8600_v58 = vld [vmem:[%s9640_s12 + $0x27c] sm:$0xf] }
 0x141   : > { %v1454_v49 = vadd.f32 %v1453_v55, %v1440_v42  ;;  %v1467_v50 = vpop.f32.mrf.mxu3  ;;  %v6696_v42 = vor.u32 %v8546_v33, %v6693_v35  ;;  %v8689_v55 = vld [vmem:[%s9640_s12 + $0x544] sm:$0xf]  ;;  %v6957_v33 = vld [vmem:[%s9640_s12 + $0x2f0] sm:$0xf0] }
 0x142   : > { %2795 = vmatpush.bf16.msra.mxu3 %v7164_v11  ;;  %v7213_v11 = vld [vmem:[%s9640_s12 + $0x4f8] sm:$0xf0] }
 0x143   : > { %v1468_v62 = vadd.f32 %v1467_v50, %v1454_v49  ;;  %2837 = vmatpush.bf16.msrb.mxu2 %v6976_v17 }
 0x144   : > { %2862 = vmatpush.bf16.msra.mxu0 %v6668_v22  ;;  %v6932_v22 = vor.u32 %v8609_v16, %v6931_v15  ;;  %v7216_v16 = vor.u32 %v8677_v10, %v7213_v11  ;;  %v7075_v10 = vld [vmem:[%s9640_s12 + $0x3c8] sm:$0xf]  ;;  %v8645_v11 = vld [vmem:[%s9640_s12 + $0x3dc] sm:$0xf0] }
 0x145   : > { %v1587_v5 = vmax.f32 %v1468_v62, 0.0  ;;  %v6835_v62 = vld [vmem:[%s9640_s12 + $0x1e8] sm:$0xf] }
 0x146   : > { %2844 = vmatpush.bf16.msrb.mxu3 %v7336_v21  ;;  %v6836_v8 = vor.u32 %v8585_v63, %v6835_v62  ;;  %v7099_v62 = vld [vmem:[%s9640_s12 + $0x3f8] sm:$0xf]  ;;  %v8651_v63 = vld [vmem:[%s9640_s12 + $0x40c] sm:$0xf0] }
 0x147   : > { %v10101_v14 = vpack.c.bf16 %v1587_v5, %v1583_v61  ;;  %v8528_v5 = vld [vmem:[%s9640_s12 + $0x3c] sm:$0xf] }
 0x148   : > { %2863 = vmatpush.bf16.msra.mxu0 %v6644_v37  ;;  %v7285_v37 = vld [vmem:[%s9640_s12 + $0x588] sm:$0xf0] }
 0x149   : > { %2768 = vmatmul.bf16.vlgmr.msra.gmra.mxu1 %v10101_v14  ;;  %v7288_v40 = vor.u32 %v8695_v36, %v7285_v37 }
 0x14a   : > { %2872 = vmatpush.bf16.msra.mxu1 %v6956_v9  ;;  %2845 = vmatpush.bf16.msrb.mxu3 %v7312_v29  ;;  %v6621_v9 = vld [vmem:[%s9640_s12 + $0x50] sm:$0xf0]  ;;  %v6771_v29 = vld [vmem:[%s9640_s12 + $0x160] sm:$0xf] }
 0x14b   : > { %v6624_v18 = vor.u32 %v8528_v5, %v6621_v9  ;;  %v7100_v5 = vor.u32 %v8651_v63, %v7099_v62 }
 0x14c   : > { %2864 = vmatpush.bf16.msra.mxu0 %v6620_v60  ;;  %v7261_v60 = vld [vmem:[%s9640_s12 + $0x558] sm:$0xf0] }
 0x14d   : > { %v7264_v49 = vor.u32 %v8689_v55, %v7261_v60  ;;  %v7148_v55 = vor.u32 %v8663_v39, %v7147_v38  ;;  %v8606_v60 = vld [vmem:[%s9640_s12 + $0x2ac] sm:$0xf] }
 0x14e   : > { %2873 = vmatpush.bf16.msra.mxu1 %v6932_v22  ;;  %2846 = vmatpush.bf16.msrb.mxu3 %v7288_v40  ;;  %v6812_v22 = vor.u32 %v8579_v13, %v6811_v12  ;;  %v6788_v40 = vor.u32 %v8573_v28, %v6787_v19  ;;  %v8588_v19 = vld [vmem:[%s9640_s12 + $0x21c] sm:$0xf] }
 0x150   : > { %2865 = vmatpush.bf16.msra.mxu0 %v6596_v3  ;;  %v1479_v41 = vpop.f32.mrf.mxu0 }
 0x151   : > { %v1480_v44 = vadd.f32 %v1479_v41, %v692_v30  ;;  %v1493_v45 = vpop.f32.mrf.mxu1 }
 0x152   : > { %2874 = vmatpush.bf16.msra.mxu1 %v6908_v34  ;;  %2847 = vmatpush.bf16.msrb.mxu3 %v7264_v49  ;;  %v7192_v34 = vor.u32 %v8671_v24, %v7189_v25  ;;  %v7123_v49 = vld [vmem:[%s9640_s12 + $0x428] sm:$0xf]  ;;  %v6651_v25 = vld [vmem:[%s9640_s12 + $0x70] sm:$0xf] }
 0x153   : > { %2866 = vmatmul.bf16.vlgmr.msra.gmra.mxu0 %v10045_v59  ;;  %v1494_v50 = vadd.f32 %v1493_v45, %v1480_v44 }
 0x154   : > { %2914 = vmatpush.bf16.msrb.mxu0 %v6768_v6 }
 0x156   : > { %2875 = vmatpush.bf16.msra.mxu1 %v6884_v46  ;;  %2848 = vmatpush.bf16.msrb.mxu3 %v7240_v1  ;;  %v6747_v46 = vld [vmem:[%s9640_s12 + $0x130] sm:$0xf] }
 0x157   : > { %v6748_v52 = vor.u32 %v8562_v0, %v6747_v46  ;;  %v7003_v46 = vld [vmem:[%s9640_s12 + $0x338] sm:$0xf]  ;;  %v8627_v0 = vld [vmem:[%s9640_s12 + $0x34c] sm:$0xf0] }
 0x158   : > { %2915 = vmatpush.bf16.msrb.mxu0 %v6744_v20  ;;  %v1507_v53 = vpop.f32.mrf.mxu2  ;;  %v1481_v3 = vpop.f32.mrf.mxu0  ;;  %v8522_v20 = vld [vmem:[%s9640_s12 + $0xc] sm:$0xf] }
 0x159   : > { %v1521_v61 = vpop.f32.mrf.mxu3  ;;  %v1508_v2 = vadd.f32 %v1507_v53, %v1494_v50  ;;  %2824 = vmatmul.bf16.vlgmr.msrb.gmra.mxu1 %v10101_v14  ;;  %v1482_v6 = vadd.f32 %v1481_v3, %v692_v30  ;;  %v1495_v7 = vpop.f32.mrf.mxu1  ;;  %v8568_v30 = vld [vmem:[%s9640_s12 + $0x174] sm:$0xf0]  ;;  %v6600_v37 = vor.u32 %v8522_v20, %v6597_v23  ;;  %v8657_v50 = vld [vmem:[%s9640_s12 + $0x43c] sm:$0xf0]  ;;  %v6936_v53 = vor.u32 %v8606_v60, %v6933_v47  ;;  %v6699_v3 = vld [vmem:[%s9640_s12 + $0xd0] sm:$0xf] }
 0x15a   : > { %2876 = vmatpush.bf16.msra.mxu1 %v6860_v54  ;;  %2849 = vmatpush.bf16.msrb.mxu3 %v7216_v16  ;;  %v6772_v41 = vor.u32 %v8568_v30, %v6771_v29  ;;  %v6723_v54 = vld [vmem:[%s9640_s12 + $0x100] sm:$0xf]  ;;  %v7124_v57 = vor.u32 %v8657_v50, %v7123_v49  ;;  %v8544_v16 = vld [vmem:[%s9640_s12 + $0xb4] sm:$0xf0]  ;;  %v8582_v29 = vld [vmem:[%s9640_s12 + $0x1ec] sm:$0xf] }
 0x15b   : > { %v1496_v15 = vadd.f32 %v1495_v7, %v1482_v6  ;;  %v1522_v17 = vadd.f32 %v1521_v61, %v1508_v2  ;;  %v6909_v61 = vld [vmem:[%s9640_s12 + $0x290] sm:$0xf0]  ;;  %v6724_v1 = vor.u32 %v8556_v56, %v6723_v54  ;;  %v8594_v6 = vld [vmem:[%s9640_s12 + $0x24c] sm:$0xf]  ;;  %v6885_v7 = vld [vmem:[%s9640_s12 + $0x260] sm:$0xf0]  ;;  %v7004_v56 = vor.u32 %v8627_v0, %v7003_v46 }
 0x15c   : > { %2916 = vmatpush.bf16.msrb.mxu0 %v6720_v32  ;;  %v8612_v32 = vld [vmem:[%s9640_s12 + $0x2dc] sm:$0xf]  ;;  %v6912_v2 = vor.u32 %v8600_v58, %v6909_v61  ;;  %v6888_v13 = vor.u32 %v8594_v6, %v6885_v7  ;;  %v6837_v30 = vld [vmem:[%s9640_s12 + $0x200] sm:$0xf0]  ;;  %v6979_v50 = vld [vmem:[%s9640_s12 + $0x308] sm:$0xf] }
 0x15d   : > { %v1584_v35 = vmax.f32 %v1522_v17, 0.0  ;;  %v6960_v45 = vor.u32 %v8612_v32, %v6957_v33  ;;  %v6840_v39 = vor.u32 %v8582_v29, %v6837_v30  ;;  %v8565_v58 = vld [vmem:[%s9640_s12 + $0x164] sm:$0xf]  ;;  %v6773_v61 = vld [vmem:[%s9640_s12 + $0x178] sm:$0xf0] }
 0x15e   : > { %2877 = vmatpush.bf16.msra.mxu1 %v6836_v8  ;;  %2850 = vmatpush.bf16.msrb.mxu3 %v7192_v34  ;;  %v693_v8 = vperm.slane %v10005_v31, 3  ;;  %v6861_v31 = vld [vmem:[%s9640_s12 + $0x230] sm:$0xf0]  ;;  %v8660_v6 = vld [vmem:[%s9640_s12 + $0x45c] sm:$0xf] }
 0x15f   : > { %v6864_v24 = vor.u32 %v8588_v19, %v6861_v31  ;;  %v7149_v7 = vld [vmem:[%s9640_s12 + $0x470] sm:$0xf0]  ;;  %v6915_v30 = vld [vmem:[%s9640_s12 + $0x280] sm:$0xf]  ;;  %v6701_v0 = vld [vmem:[%s9640_s12 + $0xe8] sm:$0xf0] }
 0x160   : > { %2917 = vmatpush.bf16.msrb.mxu0 %v6696_v42  ;;  %v1509_v21 = vpop.f32.mrf.mxu2  ;;  %v8665_v42 = vld [vmem:[%s9640_s12 + $0x484] sm:$0xf]  ;;  %v7152_v31 = vor.u32 %v8660_v6, %v7149_v7  ;;  %v8547_v46 = vld [vmem:[%s9640_s12 + $0xd4] sm:$0xf]  ;;  %v8586_v7 = vld [vmem:[%s9640_s12 + $0x204] sm:$0xf0] }
 0x161   : > { %v1510_v26 = vadd.f32 %v1509_v21, %v1496_v15  ;;  %v1523_v27 = vpop.f32.mrf.mxu3  ;;  %v6675_v15 = vld [vmem:[%s9640_s12 + $0xa0] sm:$0xf]  ;;  %v7051_v21 = vld [vmem:[%s9640_s12 + $0x398] sm:$0xf] }
 0x162   : > { %2878 = vmatpush.bf16.msra.mxu1 %v6812_v22  ;;  %v8639_v22 = vld [vmem:[%s9640_s12 + $0x3ac] sm:$0xf0]  ;;  %v6676_v23 = vor.u32 %v8544_v16, %v6675_v15 }
 0x163   : > { %v1524_v36 = vadd.f32 %v1523_v27, %v1510_v26  ;;  %v8538_v26 = vld [vmem:[%s9640_s12 + $0x84] sm:$0xf0]  ;;  %v7052_v28 = vor.u32 %v8639_v22, %v7051_v21  ;;  %v6939_v16 = vld [vmem:[%s9640_s12 + $0x2b0] sm:$0xf]  ;;  %v6749_v21 = vld [vmem:[%s9640_s12 + $0x148] sm:$0xf0] }
 0x164   : > { %2918 = vmatpush.bf16.msrb.mxu0 %v6672_v51  ;;  %v7168_v51 = vor.u32 %v8665_v42, %v7165_v43  ;;  %v8576_v43 = vld [vmem:[%s9640_s12 + $0x1bc] sm:$0xf] }
 0x165   : > { %v1588_v44 = vmax.f32 %v1524_v36, 0.0  ;;  %v8633_v36 = vld [vmem:[%s9640_s12 + $0x37c] sm:$0xf0] }
 0x166   : > { %2879 = vmatpush.bf16.msra.mxu1 %v6788_v40  ;;  %2851 = vmatpush.bf16.msrb.mxu3 %v7168_v51  ;;  %v6627_v40 = vld [vmem:[%s9640_s12 + $0x40] sm:$0xf]  ;;  %v8570_v51 = vld [vmem:[%s9640_s12 + $0x18c] sm:$0xf] }
 0x167   : > { %v10159_v48 = vpack.c.bf16 %v1588_v44, %v1584_v35  ;;  %v7027_v35 = vld [vmem:[%s9640_s12 + $0x368] sm:$0xf]  ;;  %v6813_v44 = vld [vmem:[%s9640_s12 + $0x1d0] sm:$0xf0] }
 0x168   : > { %2919 = vmatpush.bf16.msrb.mxu0 %v6648_v4  ;;  %v8550_v4 = vld [vmem:[%s9640_s12 + $0xe4] sm:$0xf0]  ;;  %v7028_v42 = vor.u32 %v8633_v36, %v7027_v35  ;;  %v6816_v49 = vor.u32 %v8576_v43, %v6813_v44  ;;  %v6725_v35 = vld [vmem:[%s9640_s12 + $0x118] sm:$0xf0]  ;;  %v6891_v43 = vld [vmem:[%s9640_s12 + $0x250] sm:$0xf] }
 0x169   : > { %2782 = vmatmul.bf16.vlgmr.msra.gmra.mxu2 %v10159_v48  ;;  %2880 = vmatmul.bf16.vlgmr.msra.gmra.mxu1 %v10101_v14  ;;  %v6700_v12 = vor.u32 %v8550_v4, %v6699_v3  ;;  %v8616_v3 = vld [vmem:[%s9640_s12 + $0x2f4] sm:$0xf0] }
 0x16a   : > { %2928 = vmatpush.bf16.msrb.mxu1 %v6960_v45  ;;  %2886 = vmatpush.bf16.msra.mxu2 %v7148_v55 }
 0x16c   : > { %2920 = vmatpush.bf16.msrb.mxu0 %v6624_v18  ;;  %v7076_v18 = vor.u32 %v8645_v11, %v7075_v10  ;;  %v7339_v10 = vld [vmem:[%s9640_s12 + $0x5d8] sm:$0xf]  ;;  %v8711_v11 = vld [vmem:[%s9640_s12 + $0x5ec] sm:$0xf0] }
 0x16d   : > { %v7340_v22 = vor.u32 %v8711_v11, %v7339_v10  ;;  %v8630_v11 = vld [vmem:[%s9640_s12 + $0x36c] sm:$0xf] }
 0x16e   : > { %2929 = vmatpush.bf16.msrb.mxu1 %v6936_v53  ;;  %2887 = vmatpush.bf16.msra.mxu2 %v7124_v57  ;;  %v8526_v53 = vld [vmem:[%s9640_s12 + $0x24] sm:$0xf0]  ;;  %v6789_v57 = vld [vmem:[%s9640_s12 + $0x1a0] sm:$0xf0] }
 0x170   : > { %2921 = vmatpush.bf16.msrb.mxu0 %v6600_v37  ;;  %v1535_v9 = vpop.f32.mrf.mxu0  ;;  %v6652_v37 = vor.u32 %v8538_v26, %v6651_v25  ;;  %v7315_v26 = vld [vmem:[%s9640_s12 + $0x5a8] sm:$0xf] }
 0x171   : > { %v1549_v17 = vpop.f32.mrf.mxu1  ;;  %v1536_v20 = vadd.f32 %v1535_v9, %v693_v8  ;;  %v6792_v9 = vor.u32 %v8570_v51, %v6789_v57  ;;  %v8541_v57 = vld [vmem:[%s9640_s12 + $0xa4] sm:$0xf] }
 0x172   : > { %2930 = vmatpush.bf16.msrb.mxu1 %v6912_v2  ;;  %2888 = vmatpush.bf16.msra.mxu2 %v7100_v5  ;;  %v6963_v2 = vld [vmem:[%s9640_s12 + $0x2e0] sm:$0xf] }
 0x173   : > { %2922 = vmatmul.bf16.vlgmr.msrb.gmra.mxu0 %v10045_v59  ;;  %v1550_v32 = vadd.f32 %v1549_v17, %v1536_v20  ;;  %v6964_v15 = vor.u32 %v8616_v3, %v6963_v2  ;;  %v8610_v17 = vld [vmem:[%s9640_s12 + $0x2c4] sm:$0xf0]  ;;  %v8559_v20 = vld [vmem:[%s9640_s12 + $0x134] sm:$0xf]  ;;  %v8687_v2 = vld [vmem:[%s9640_s12 + $0x52c] sm:$0xf0] }
 0x174   : > { %2970 = vmatpush.bf16.msra.mxu0 %v6772_v41  ;;  %v8532_v41 = vld [vmem:[%s9640_s12 + $0x54] sm:$0xf0]  ;;  %v6752_v29 = vor.u32 %v8559_v20, %v6749_v21  ;;  %v8529_v20 = vld [vmem:[%s9640_s12 + $0x44] sm:$0xf]  ;;  %v6629_v21 = vld [vmem:[%s9640_s12 + $0x58] sm:$0xf0] }
 0x175   : > { %v6628_v60 = vor.u32 %v8532_v41, %v6627_v40  ;;  %v8699_v40 = vld [vmem:[%s9640_s12 + $0x58c] sm:$0xf0] }
 0x176   : > { %2931 = vmatpush.bf16.msrb.mxu1 %v6888_v13  ;;  %2889 = vmatpush.bf16.msra.mxu2 %v7076_v18 }
 0x178   : > { %2971 = vmatpush.bf16.msra.mxu0 %v6748_v52  ;;  %v1563_v27 = vpop.f32.mrf.mxu2  ;;  %v1537_v34 = vpop.f32.mrf.mxu0  ;;  %v6603_v52 = vld [vmem:[%s9640_s12 + $0x10] sm:$0xf] }
 0x179   : > { %v1577_v33 = vpop.f32.mrf.mxu3  ;;  %v1538_v38 = vadd.f32 %v1537_v34, %v693_v8  ;;  %2838 = vmatmul.bf16.vlgmr.msrb.gmra.mxu2 %v10159_v48  ;;  %v1564_v45 = vadd.f32 %v1563_v27, %v1550_v32  ;;  %v1551_v55 = vpop.f32.mrf.mxu1  ;;  %v6604_v5 = vor.u32 %v8526_v53, %v6603_v52  ;;  %v8705_v27 = vld [vmem:[%s9640_s12 + $0x5bc] sm:$0xf0]  ;;  %v8553_v34 = vld [vmem:[%s9640_s12 + $0x104] sm:$0xf]  ;;  %v6704_v52 = vor.u32 %v8547_v46, %v6701_v0  ;;  %v8708_v0 = vld [vmem:[%s9640_s12 + $0x5dc] sm:$0xf] }
 0x17a   : > { %2932 = vmatpush.bf16.msrb.mxu1 %v6864_v24  ;;  %2890 = vmatpush.bf16.msra.mxu2 %v7052_v28  ;;  %v7125_v24 = vld [vmem:[%s9640_s12 + $0x440] sm:$0xf0]  ;;  %v6940_v28 = vor.u32 %v8610_v17, %v6939_v16  ;;  %v7316_v36 = vor.u32 %v8705_v27, %v7315_v26  ;;  %v6867_v53 = vld [vmem:[%s9640_s12 + $0x220] sm:$0xf]  ;;  %v7195_v26 = vld [vmem:[%s9640_s12 + $0x4b8] sm:$0xf] }
 0x17b   : > { %v1552_v47 = vadd.f32 %v1551_v55, %v1538_v38  ;;  %v1578_v62 = vadd.f32 %v1577_v33, %v1564_v45  ;;  %v8604_v33 = vld [vmem:[%s9640_s12 + $0x294] sm:$0xf0]  ;;  %v7101_v38 = vld [vmem:[%s9640_s12 + $0x410] sm:$0xf0]  ;;  %v8598_v45 = vld [vmem:[%s9640_s12 + $0x264] sm:$0xf0] }
 0x17c   : > { %2972 = vmatpush.bf16.msra.mxu0 %v6724_v1  ;;  %v8621_v1 = vld [vmem:[%s9640_s12 + $0x31c] sm:$0xf0]  ;;  %v6916_v41 = vor.u32 %v8604_v33, %v6915_v30  ;;  %v6892_v51 = vor.u32 %v8598_v45, %v6891_v43  ;;  %v8675_v27 = vld [vmem:[%s9640_s12 + $0x4cc] sm:$0xf0]  ;;  %v8618_v30 = vld [vmem:[%s9640_s12 + $0x30c] sm:$0xf] }
 0x17d   : > { %v6980_v13 = vor.u32 %v8621_v1, %v6979_v50  ;;  %v1585_v18 = vmax.f32 %v1578_v62, 0.0  ;;  %v8693_v50 = vld [vmem:[%s9640_s12 + $0x55c] sm:$0xf0]  ;;  %v8636_v62 = vld [vmem:[%s9640_s12 + $0x39c] sm:$0xf] }
 0x17e   : > { %2933 = vmatpush.bf16.msrb.mxu1 %v6840_v39  ;;  %2891 = vmatpush.bf16.msra.mxu2 %v7028_v42  ;;  %v7291_v39 = vld [vmem:[%s9640_s12 + $0x578] sm:$0xf]  ;;  %v6728_v42 = vor.u32 %v8553_v34, %v6725_v35  ;;  %v7171_v34 = vld [vmem:[%s9640_s12 + $0x488] sm:$0xf]  ;;  %v7155_v43 = vld [vmem:[%s9640_s12 + $0x460] sm:$0xf] }
 0x17f   : > { %v7292_v55 = vor.u32 %v8699_v40, %v7291_v39  ;;  %v7243_v1 = vld [vmem:[%s9640_s12 + $0x518] sm:$0xf]  ;;  %v8574_v35 = vld [vmem:[%s9640_s12 + $0x1a4] sm:$0xf0]  ;;  %v6981_v39 = vld [vmem:[%s9640_s12 + $0x320] sm:$0xf0] }
 0x180   : > { %2973 = vmatpush.bf16.msra.mxu0 %v6700_v12  ;;  %v1565_v54 = vpop.f32.mrf.mxu2  ;;  %v6776_v12 = vor.u32 %v8565_v58, %v6773_v61  ;;  %v6677_v58 = vld [vmem:[%s9640_s12 + $0xb8] sm:$0xf0]  ;;  %v7244_v10 = vor.u32 %v8687_v2, %v7243_v1  ;;  %v8613_v40 = vld [vmem:[%s9640_s12 + $0x2e4] sm:$0xf] }
 0x181   : > { %v1566_v63 = vadd.f32 %v1565_v54, %v1552_v47  ;;  %v1579_v4 = vpop.f32.mrf.mxu3  ;;  %v7077_v47 = vld [vmem:[%s9640_s12 + $0x3e0] sm:$0xf0]  ;;  %v6917_v1 = vld [vmem:[%s9640_s12 + $0x298] sm:$0xf0] }
 0x182   : > { %2934 = vmatpush.bf16.msrb.mxu1 %v6816_v49  ;;  %2892 = vmatpush.bf16.msra.mxu2 %v7004_v56  ;;  %v7267_v49 = vld [vmem:[%s9640_s12 + $0x548] sm:$0xf]  ;;  %v8592_v56 = vld [vmem:[%s9640_s12 + $0x234] sm:$0xf0] }
 0x183   : > { %v1580_v8 = vadd.f32 %v1579_v4, %v1566_v63  ;;  %v7268_v61 = vor.u32 %v8693_v50, %v7267_v49  ;;  %v7053_v63 = vld [vmem:[%s9640_s12 + $0x3b0] sm:$0xf0]  ;;  %v6868_v3 = vor.u32 %v8592_v56, %v6867_v53  ;;  %v6680_v4 = vor.u32 %v8541_v57, %v6677_v58  ;;  %v8658_v56 = vld [vmem:[%s9640_s12 + $0x444] sm:$0xf0]  ;;  %v8702_v57 = vld [vmem:[%s9640_s12 + $0x5ac] sm:$0xf] }
 0x184   : > { %2974 = vmatpush.bf16.msra.mxu0 %v6676_v23  ;;  %v8654_v23 = vld [vmem:[%s9640_s12 + $0x42c] sm:$0xf]  ;;  %v7056_v6 = vor.u32 %v8636_v62, %v7053_v63  ;;  %v7317_v58 = vld [vmem:[%s9640_s12 + $0x5c0] sm:$0xf0] }
 0x185   : > { %v1589_v19 = vmax.f32 %v1580_v8, 0.0  ;;  %v7128_v32 = vor.u32 %v8654_v23, %v7125_v24  ;;  %v8535_v8 = vld [vmem:[%s9640_s12 + $0x74] sm:$0xf]  ;;  %v8624_v23 = vld [vmem:[%s9640_s12 + $0x33c] sm:$0xf]  ;;  %v7320_v2 = vor.u32 %v8702_v57, %v7317_v58 }
 0x186   : > { %2935 = vmatpush.bf16.msrb.mxu1 %v6792_v9  ;;  %2893 = vmatpush.bf16.msra.mxu2 %v6980_v13  ;;  %v6653_v9 = vld [vmem:[%s9640_s12 + $0x88] sm:$0xf0]  ;;  %v7219_v13 = vld [vmem:[%s9640_s12 + $0x4e8] sm:$0xf]  ;;  %v7005_v24 = vld [vmem:[%s9640_s12 + $0x350] sm:$0xf0] }
 0x187   : > { %v10218_v25 = vpack.c.bf16 %v1589_v19, %v1585_v18  ;;  %v6656_v17 = vor.u32 %v8535_v8, %v6653_v9  ;;  %v6819_v18 = vld [vmem:[%s9640_s12 + $0x1c0] sm:$0xf]  ;;  %v7008_v33 = vor.u32 %v8624_v23, %v7005_v24  ;;  %v8601_v63 = vld [vmem:[%s9640_s12 + $0x284] sm:$0xf]  ;;  %v8595_v9 = vld [vmem:[%s9640_s12 + $0x254] sm:$0xf] }
 0x188   : > { %2975 = vmatpush.bf16.msra.mxu0 %v6652_v37  ;;  %v8648_v37 = vld [vmem:[%s9640_s12 + $0x3fc] sm:$0xf]  ;;  %v7245_v23 = vld [vmem:[%s9640_s12 + $0x530] sm:$0xf0] }
 0x189   : > { %2796 = vmatmul.bf16.vlgmr.msra.gmra.mxu3 %v10218_v25  ;;  %2936 = vmatmul.bf16.vlgmr.msrb.gmra.mxu1 %v10101_v14  ;;  %v7104_v44 = vor.u32 %v8648_v37, %v7101_v38  ;;  %v6605_v37 = vld [vmem:[%s9640_s12 + $0x28] sm:$0xf0]  ;;  %v7196_v38 = vor.u32 %v8675_v27, %v7195_v26  ;;  %v8583_v27 = vld [vmem:[%s9640_s12 + $0x1f4] sm:$0xf] }
 0x18a   : > { %2984 = vmatpush.bf16.msra.mxu1 %v6964_v15  ;;  %2942 = vmatpush.bf16.msrb.mxu2 %v7152_v31  ;;  %v8681_v15 = vld [vmem:[%s9640_s12 + $0x4fc] sm:$0xf0]  ;;  %v8580_v31 = vld [vmem:[%s9640_s12 + $0x1d4] sm:$0xf0] }
 0x18b   : > { %2900 = vmatpush.bf16.msra.mxu3 %v7340_v22  ;;  %2894 = vmatmul.bf16.vlgmr.msra.gmra.mxu2 %v10159_v48  ;;  %v7220_v22 = vor.u32 %v8681_v15, %v7219_v13  ;;  %v8690_v13 = vld [vmem:[%s9640_s12 + $0x54c] sm:$0xf]  ;;  %v7269_v15 = vld [vmem:[%s9640_s12 + $0x560] sm:$0xf0] }
 0x18c   : > { %2976 = vmatpush.bf16.msra.mxu0 %v6628_v60  ;;  %v8642_v60 = vld [vmem:[%s9640_s12 + $0x3cc] sm:$0xf] }
 0x18d   : > { %v7080_v54 = vor.u32 %v8642_v60, %v7077_v47  ;;  %v6984_v60 = vor.u32 %v8618_v30, %v6981_v39  ;;  %v7035_v30 = vld [vmem:[%s9640_s12 + $0x370] sm:$0xf] }
 0x18e   : > { %2985 = vmatpush.bf16.msra.mxu1 %v6940_v28  ;;  %2943 = vmatpush.bf16.msrb.mxu2 %v7128_v32  ;;  %v6820_v28 = vor.u32 %v8580_v31, %v6819_v18  ;;  %v6795_v32 = vld [vmem:[%s9640_s12 + $0x190] sm:$0xf]  ;;  %v8589_v18 = vld [vmem:[%s9640_s12 + $0x224] sm:$0xf]  ;;  %v7272_v31 = vor.u32 %v8690_v13, %v7269_v15  ;;  %v7085_v13 = vld [vmem:[%s9640_s12 + $0x3e8] sm:$0xf0] }
 0x18f   : > { %2901 = vmatpush.bf16.msra.mxu3 %v7316_v36  ;;  %v8523_v36 = vld [vmem:[%s9640_s12 + $0x14] sm:$0xf]  ;;  %v6796_v45 = vor.u32 %v8574_v35, %v6795_v32  ;;  %v8634_v32 = vld [vmem:[%s9640_s12 + $0x384] sm:$0xf0] }
 0x190   : > { %2977 = vmatpush.bf16.msra.mxu0 %v6604_v5  ;;  %v6843_v5 = vld [vmem:[%s9640_s12 + $0x1f0] sm:$0xf]  ;;  %v6608_v46 = vor.u32 %v8523_v36, %v6605_v37  ;;  %v7036_v36 = vor.u32 %v8634_v32, %v7035_v30  ;;  %v8577_v37 = vld [vmem:[%s9640_s12 + $0x1c4] sm:$0xf]  ;;  %v8694_v15 = vld [vmem:[%s9640_s12 + $0x564] sm:$0xf0] }
 0x191   : > { %v6844_v16 = vor.u32 %v8586_v7, %v6843_v5  ;;  %v8696_v5 = vld [vmem:[%s9640_s12 + $0x57c] sm:$0xf]  ;;  %v6920_v7 = vor.u32 %v8601_v63, %v6917_v1  ;;  %v8655_v63 = vld [vmem:[%s9640_s12 + $0x434] sm:$0xf]  ;;  %v7133_v1 = vld [vmem:[%s9640_s12 + $0x448] sm:$0xf0] }
 0x192   : > { %2986 = vmatpush.bf16.msra.mxu1 %v6916_v41  ;;  %2944 = vmatpush.bf16.msrb.mxu2 %v7104_v44  ;;  %v6965_v41 = vld [vmem:[%s9640_s12 + $0x2f8] sm:$0xf0]  ;;  %v8664_v44 = vld [vmem:[%s9640_s12 + $0x474] sm:$0xf0]  ;;  %v8682_v30 = vld [vmem:[%s9640_s12 + $0x504] sm:$0xf0] }
 0x193   : > { %2978 = vmatmul.bf16.vlgmr.msra.gmra.mxu0 %v10045_v59  ;;  %2902 = vmatpush.bf16.msra.mxu3 %v7292_v55  ;;  %v7341_v55 = vld [vmem:[%s9640_s12 + $0x5f0] sm:$0xf0]  ;;  %v6968_v47 = vor.u32 %v8613_v40, %v6965_v41  ;;  %v7156_v50 = vor.u32 %v8664_v44, %v7155_v43  ;;  %v7011_v40 = vld [vmem:[%s9640_s12 + $0x340] sm:$0xf]  ;;  %v8628_v41 = vld [vmem:[%s9640_s12 + $0x354] sm:$0xf0] }
 0x194   : > { %3026 = vmatpush.bf16.msrb.mxu0 %v6776_v12  ;;  %v7029_v12 = vld [vmem:[%s9640_s12 + $0x380] sm:$0xf0]  ;;  %v7344_v53 = vor.u32 %v8708_v0, %v7341_v55  ;;  %v7197_v43 = vld [vmem:[%s9640_s12 + $0x4d0] sm:$0xf0]  ;;  %v6797_v0 = vld [vmem:[%s9640_s12 + $0x1a8] sm:$0xf0] }
 0x195   : > { %v7032_v19 = vor.u32 %v8630_v11, %v7029_v12  ;;  %v7083_v12 = vld [vmem:[%s9640_s12 + $0x3d0] sm:$0xf] }
 0x196   : > { %2987 = vmatpush.bf16.msra.mxu1 %v6892_v51  ;;  %2945 = vmatpush.bf16.msrb.mxu2 %v7080_v54  ;;  %v8607_v51 = vld [vmem:[%s9640_s12 + $0x2b4] sm:$0xf]  ;;  %v7131_v54 = vld [vmem:[%s9640_s12 + $0x430] sm:$0xf] }
 0x197   : > { %2903 = vmatpush.bf16.msra.mxu3 %v7268_v61  ;;  %v7132_v62 = vor.u32 %v8658_v56, %v7131_v54  ;;  %v7347_v54 = vld [vmem:[%s9640_s12 + $0x5e0] sm:$0xf]  ;;  %v8712_v56 = vld [vmem:[%s9640_s12 + $0x5f4] sm:$0xf0] }
 0x198   : > { %3027 = vmatpush.bf16.msrb.mxu0 %v6752_v29  ;;  %v6632_v29 = vor.u32 %v8529_v20, %v6629_v21  ;;  %v7059_v20 = vld [vmem:[%s9640_s12 + $0x3a0] sm:$0xf]  ;;  %v8640_v21 = vld [vmem:[%s9640_s12 + $0x3b4] sm:$0xf0] }
 0x199   : > { %2852 = vmatmul.bf16.vlgmr.msrb.gmra.mxu3 %v10218_v25  ;;  %v7060_v26 = vor.u32 %v8640_v21, %v7059_v20  ;;  %v7061_v20 = vld [vmem:[%s9640_s12 + $0x3b8] sm:$0xf0]  ;;  %v7251_v21 = vld [vmem:[%s9640_s12 + $0x520] sm:$0xf] }
 0x19a   : > { %2988 = vmatpush.bf16.msra.mxu1 %v6868_v3  ;;  %2946 = vmatpush.bf16.msrb.mxu2 %v7056_v6  ;;  %v7107_v3 = vld [vmem:[%s9640_s12 + $0x400] sm:$0xf]  ;;  %v7293_v6 = vld [vmem:[%s9640_s12 + $0x590] sm:$0xf0] }
 0x19b   : > { %2904 = vmatpush.bf16.msra.mxu3 %v7244_v10  ;;  %v6893_v10 = vld [vmem:[%s9640_s12 + $0x268] sm:$0xf0]  ;;  %v7296_v11 = vor.u32 %v8696_v5, %v7293_v6 }
 0x19c   : > { %3028 = vmatpush.bf16.msrb.mxu0 %v6728_v42  ;;  %v8669_v42 = vld [vmem:[%s9640_s12 + $0x49c] sm:$0xf0] }
 0x19d   : > { %v7172_v49 = vor.u32 %v8669_v42, %v7171_v34  ;;  %v7221_v34 = vld [vmem:[%s9640_s12 + $0x500] sm:$0xf0]  ;;  %v8672_v42 = vld [vmem:[%s9640_s12 + $0x4bc] sm:$0xf] }
 0x19e   : > { %2989 = vmatpush.bf16.msra.mxu1 %v6844_v16  ;;  %2947 = vmatpush.bf16.msrb.mxu2 %v7032_v19  ;;  %v6896_v16 = vor.u32 %v8595_v9, %v6893_v10  ;;  %v6869_v19 = vld [vmem:[%s9640_s12 + $0x238] sm:$0xf0]  ;;  %v7200_v55 = vor.u32 %v8672_v42, %v7197_v43  ;;  %v7299_v9 = vld [vmem:[%s9640_s12 + $0x580] sm:$0xf]  ;;  %v8700_v10 = vld [vmem:[%s9640_s12 + $0x594] sm:$0xf0] }
 0x19f   : > { %2905 = vmatpush.bf16.msra.mxu3 %v7220_v22  ;;  %v8684_v22 = vld [vmem:[%s9640_s12 + $0x51c] sm:$0xf]  ;;  %v6872_v24 = vor.u32 %v8589_v18, %v6869_v19  ;;  %v8619_v43 = vld [vmem:[%s9640_s12 + $0x314] sm:$0xf] }
 0x1a0   : > { %3029 = vmatpush.bf16.msrb.mxu0 %v6704_v52  ;;  %v6941_v52 = vld [vmem:[%s9640_s12 + $0x2c8] sm:$0xf0] }
 0x1a1   : > { %v6944_v61 = vor.u32 %v8607_v51, %v6941_v52  ;;  %v8661_v51 = vld [vmem:[%s9640_s12 + $0x464] sm:$0xf]  ;;  %v7157_v52 = vld [vmem:[%s9640_s12 + $0x478] sm:$0xf0] }
 0x1a2   : > { %2990 = vmatpush.bf16.msra.mxu1 %v6820_v28  ;;  %2948 = vmatpush.bf16.msrb.mxu2 %v7008_v33  ;;  %v6845_v28 = vld [vmem:[%s9640_s12 + $0x208] sm:$0xf0] }
 0x1a3   : > { %2906 = vmatpush.bf16.msra.mxu3 %v7196_v38  ;;  %v8678_v33 = vld [vmem:[%s9640_s12 + $0x4ec] sm:$0xf]  ;;  %v6848_v35 = vor.u32 %v8583_v27, %v6845_v28  ;;  %v6821_v38 = vld [vmem:[%s9640_s12 + $0x1d8] sm:$0xf0]  ;;  %v8631_v27 = vld [vmem:[%s9640_s12 + $0x374] sm:$0xf] }
 0x1a4   : > { %3030 = vmatpush.bf16.msrb.mxu0 %v6680_v4  ;;  %v8652_v4 = vld [vmem:[%s9640_s12 + $0x414] sm:$0xf0]  ;;  %v7224_v39 = vor.u32 %v8678_v33, %v7221_v34  ;;  %v6824_v44 = vor.u32 %v8577_v37, %v6821_v38  ;;  %v7037_v28 = vld [vmem:[%s9640_s12 + $0x388] sm:$0xf0]  ;;  %v7013_v37 = vld [vmem:[%s9640_s12 + $0x358] sm:$0xf0] }
 0x1a5   : > { %v7108_v8 = vor.u32 %v8652_v4, %v7107_v3  ;;  %v8706_v3 = vld [vmem:[%s9640_s12 + $0x5c4] sm:$0xf0]  ;;  %v7136_v4 = vor.u32 %v8655_v63, %v7133_v1  ;;  %v7040_v34 = vor.u32 %v8631_v27, %v7037_v28  ;;  %v7203_v38 = vld [vmem:[%s9640_s12 + $0x4c0] sm:$0xf]  ;;  %v8691_v1 = vld [vmem:[%s9640_s12 + $0x554] sm:$0xf] }
 0x1a6   : > { %2991 = vmatpush.bf16.msra.mxu1 %v6796_v45  ;;  %2949 = vmatpush.bf16.msrb.mxu2 %v6984_v60  ;;  %v7012_v45 = vor.u32 %v8628_v41, %v7011_v40  ;;  %v8666_v60 = vld [vmem:[%s9640_s12 + $0x48c] sm:$0xf] }
 0x1a7   : > { %2907 = vmatpush.bf16.msra.mxu3 %v7172_v49  ;;  %v8622_v49 = vld [vmem:[%s9640_s12 + $0x324] sm:$0xf0]  ;;  %v2755_v5 = vpop.f32.mrf.mxu0 }
 0x1a8   : > { %3031 = vmatpush.bf16.msrb.mxu0 %v6656_v17 }
 0x1a9   : > { %2992 = vmatmul.bf16.vlgmr.msra.gmra.mxu1 %v10101_v14  ;;  %2950 = vmatmul.bf16.vlgmr.msrb.gmra.mxu2 %v10159_v48 }
 0x1aa   : > { %3040 = vmatpush.bf16.msrb.mxu1 %v6968_v47  ;;  %2998 = vmatpush.bf16.msra.mxu2 %v7156_v50  ;;  %v6987_v47 = vld [vmem:[%s9640_s12 + $0x310] sm:$0xf]  ;;  %v7173_v50 = vld [vmem:[%s9640_s12 + $0x4a0] sm:$0xf0] }
 0x1ab   : > { %2956 = vmatpush.bf16.msrb.mxu3 %v7344_v53  ;;  %v6988_v57 = vor.u32 %v8622_v49, %v6987_v47  ;;  %v7176_v58 = vor.u32 %v8666_v60, %v7173_v50  ;;  %v7349_v60 = vld [vmem:[%s9640_s12 + $0x5f8] sm:$0xf0] }
 0x1ac   : > { %3032 = vmatpush.bf16.msrb.mxu0 %v6632_v29  ;;  %2908 = vmatmul.bf16.vlgmr.msra.gmra.mxu3 %v10218_v25  ;;  %v7248_v29 = vor.u32 %v8684_v22, %v7245_v23  ;;  %v8688_v22 = vld [vmem:[%s9640_s12 + $0x534] sm:$0xf0] }
 0x1ae   : > { %3041 = vmatpush.bf16.msrb.mxu1 %v6944_v61  ;;  %2999 = vmatpush.bf16.msra.mxu2 %v7132_v62  ;;  %v7160_v61 = vor.u32 %v8661_v51, %v7157_v52  ;;  %v7348_v62 = vor.u32 %v8712_v56, %v7347_v54  ;;  %v8703_v52 = vld [vmem:[%s9640_s12 + $0x5b4] sm:$0xf] }
 0x1af   : > { %2957 = vmatpush.bf16.msrb.mxu3 %v7320_v2  ;;  %v7323_v2 = vld [vmem:[%s9640_s12 + $0x5b0] sm:$0xf]  ;;  %v2757_v23 = vpop.f32.mrf.mxu0 }
 0x1b0   : > { %3033 = vmatpush.bf16.msrb.mxu0 %v6608_v46  ;;  %v8571_v46 = vld [vmem:[%s9640_s12 + $0x194] sm:$0xf]  ;;  %v7324_v6 = vor.u32 %v8706_v3, %v7323_v2  ;;  %v7277_v2 = vld [vmem:[%s9640_s12 + $0x568] sm:$0xf0] }
 0x1b1   : > { %v6800_v53 = vor.u32 %v8571_v46, %v6797_v0  ;;  %v8670_v46 = vld [vmem:[%s9640_s12 + $0x4a4] sm:$0xf0]  ;;  %v7280_v3 = vor.u32 %v8691_v1, %v7277_v2 }
 0x1b2   : > { %3042 = vmatpush.bf16.msrb.mxu1 %v6920_v7  ;;  %3000 = vmatpush.bf16.msra.mxu2 %v7108_v8  ;;  %v8649_v7 = vld [vmem:[%s9640_s12 + $0x404] sm:$0xf]  ;;  %v7109_v8 = vld [vmem:[%s9640_s12 + $0x418] sm:$0xf0] }
 0x1b3   : > { %3034 = vmatmul.bf16.vlgmr.msrb.gmra.mxu0 %v10045_v59  ;;  %v8646_v59 = vld [vmem:[%s9640_s12 + $0x3e4] sm:$0xf0]  ;;  %2958 = vmatpush.bf16.msrb.mxu3 %v7296_v11  ;;  %v7112_v11 = vor.u32 %v8649_v7, %v7109_v8  ;;  %v8679_v7 = vld [vmem:[%s9640_s12 + $0x4f4] sm:$0xf]  ;;  %v7229_v8 = vld [vmem:[%s9640_s12 + $0x508] sm:$0xf0] }
 0x1b4   : > { %v7084_v17 = vor.u32 %v8646_v59, %v7083_v12  ;;  %v7300_v12 = vor.u32 %v8700_v10, %v7299_v9  ;;  %v8643_v59 = vld [vmem:[%s9640_s12 + $0x3d4] sm:$0xf]  ;;  %v7232_v10 = vor.u32 %v8679_v7, %v7229_v8 }
 0x1b5   : > { %v7088_v18 = vor.u32 %v8643_v59, %v7085_v13 }
 0x1b6   : > { %3043 = vmatpush.bf16.msrb.mxu1 %v6896_v16  ;;  %3001 = vmatpush.bf16.msra.mxu2 %v7084_v17 }
 0x1b7   : > { %2959 = vmatpush.bf16.msrb.mxu3 %v7272_v31  ;;  %v8637_v31 = vld [vmem:[%s9640_s12 + $0x3a4] sm:$0xf]  ;;  %v2811_v41 = vpop.f32.mrf.mxu0 }
 0x1ba   : > { %3044 = vmatpush.bf16.msrb.mxu1 %v6872_v24  ;;  %3002 = vmatpush.bf16.msra.mxu2 %v7060_v26  ;;  %v7064_v24 = vor.u32 %v8637_v31, %v7061_v20  ;;  %v7252_v26 = vor.u32 %v8688_v22, %v7251_v21 }
 0x1bb   : > { %2960 = vmatpush.bf16.msrb.mxu3 %v7248_v29  ;;  %v7227_v29 = vld [vmem:[%s9640_s12 + $0x4f0] sm:$0xf] }
 0x1be   : > { %3045 = vmatpush.bf16.msrb.mxu1 %v6848_v35  ;;  %3003 = vmatpush.bf16.msra.mxu2 %v7036_v36  ;;  %v7228_v35 = vor.u32 %v8682_v30, %v7227_v29  ;;  %v8625_v36 = vld [vmem:[%s9640_s12 + $0x344] sm:$0xf] }
 0x1bf   : > { %2961 = vmatpush.bf16.msrb.mxu3 %v7224_v39  ;;  %v8676_v39 = vld [vmem:[%s9640_s12 + $0x4d4] sm:$0xf0]  ;;  %v7016_v40 = vor.u32 %v8625_v36, %v7013_v37  ;;  %v2813_v56 = vpop.f32.mrf.mxu0 }
 0x1c0   : > { %v7204_v42 = vor.u32 %v8676_v39, %v7203_v38 }
 0x1c2   : > { %3046 = vmatpush.bf16.msrb.mxu1 %v6824_v44  ;;  %3004 = vmatpush.bf16.msra.mxu2 %v7012_v45  ;;  %v6989_v44 = vld [vmem:[%s9640_s12 + $0x328] sm:$0xf0]  ;;  %v7179_v45 = vld [vmem:[%s9640_s12 + $0x490] sm:$0xf] }
 0x1c3   : > { %2962 = vmatpush.bf16.msrb.mxu3 %v7200_v55  ;;  %v8709_v55 = vld [vmem:[%s9640_s12 + $0x5e4] sm:$0xf]  ;;  %v6992_v49 = vor.u32 %v8619_v43, %v6989_v44  ;;  %v7180_v50 = vor.u32 %v8670_v46, %v7179_v45 }
 0x1c4   : > { %v7352_v51 = vor.u32 %v8709_v55, %v7349_v60 }
 0x1c6   : > { %3047 = vmatpush.bf16.msrb.mxu1 %v6800_v53  ;;  %3005 = vmatpush.bf16.msra.mxu2 %v6988_v57  ;;  %v2769_v16 = vpop.f32.mrf.mxu1  ;;  %v7325_v53 = vld [vmem:[%s9640_s12 + $0x5c8] sm:$0xf0] }
 0x1c7   : > { %2963 = vmatpush.bf16.msrb.mxu3 %v7176_v58  ;;  %v10346_v17 = vadd.f32 %v2769_v16, %v2755_v5  ;;  %v7328_v54 = vor.u32 %v8703_v52, %v7325_v53  ;;  %v8697_v58 = vld [vmem:[%s9640_s12 + $0x584] sm:$0xf] }
 0x1c9   : > { %3048 = vmatmul.bf16.vlgmr.msrb.gmra.mxu1 %v10101_v14  ;;  %3006 = vmatmul.bf16.vlgmr.msra.gmra.mxu2 %v10159_v48  ;;  %v7275_v14 = vld [vmem:[%s9640_s12 + $0x550] sm:$0xf] }
 0x1ca   : > { %3054 = vmatpush.bf16.msrb.mxu2 %v7160_v61  ;;  %2964 = vmatmul.bf16.vlgmr.msrb.gmra.mxu3 %v10218_v25  ;;  %v7276_v19 = vor.u32 %v8694_v15, %v7275_v14  ;;  %v7301_v61 = vld [vmem:[%s9640_s12 + $0x598] sm:$0xf0]  ;;  %v8667_v14 = vld [vmem:[%s9640_s12 + $0x494] sm:$0xf]  ;;  %v7181_v15 = vld [vmem:[%s9640_s12 + $0x4a8] sm:$0xf0] }
 0x1cb   : > { %3012 = vmatpush.bf16.msra.mxu3 %v7348_v62  ;;  %v7304_v63 = vor.u32 %v8697_v58, %v7301_v61 }
 0x1ce   : > { %3055 = vmatpush.bf16.msrb.mxu2 %v7136_v4  ;;  %v2771_v32 = vpop.f32.mrf.mxu1  ;;  %v8685_v4 = vld [vmem:[%s9640_s12 + $0x524] sm:$0xf] }
 0x1cf   : > { %3013 = vmatpush.bf16.msra.mxu3 %v7324_v6  ;;  %v2772_v33 = vadd.f32 %v2771_v32, %v2757_v23 }
 0x1d0   : > { %v2867_v32 = vpop.f32.mrf.mxu0 }
 0x1d2   : > { %3056 = vmatpush.bf16.msrb.mxu2 %v7112_v11  ;;  %v8673_v11 = vld [vmem:[%s9640_s12 + $0x4c4] sm:$0xf] }
 0x1d3   : > { %3014 = vmatpush.bf16.msra.mxu3 %v7300_v12  ;;  %v7205_v12 = vld [vmem:[%s9640_s12 + $0x4d8] sm:$0xf0] }
 0x1d4   : > { %v7208_v59 = vor.u32 %v8673_v11, %v7205_v12 }
 0x1d6   : > { %3057 = vmatpush.bf16.msrb.mxu2 %v7088_v18  ;;  %v2825_v0 = vpop.f32.mrf.mxu1  ;;  %v7184_v18 = vor.u32 %v8667_v14, %v7181_v15 }
 0x1d7   : > { %3015 = vmatpush.bf16.msra.mxu3 %v7276_v19  ;;  %v2826_v47 = vadd.f32 %v2825_v0, %v2811_v41 }
 0x1d8   : > { %v2869_v38 = vpop.f32.mrf.mxu0 }
 0x1da   : > { %3058 = vmatpush.bf16.msrb.mxu2 %v7064_v24 }
 0x1db   : > { %3016 = vmatpush.bf16.msra.mxu3 %v7252_v26 }
 0x1de   : > { %3059 = vmatpush.bf16.msrb.mxu2 %v7040_v34  ;;  %v2827_v57 = vpop.f32.mrf.mxu1 }
 0x1df   : > { %3017 = vmatpush.bf16.msra.mxu3 %v7228_v35  ;;  %v2828_v62 = vadd.f32 %v2827_v57, %v2813_v56 }
 0x1e2   : > { %3060 = vmatpush.bf16.msrb.mxu2 %v7016_v40 }
 0x1e3   : > { %3018 = vmatpush.bf16.msra.mxu3 %v7204_v42 }
 0x1e6   : > { %3061 = vmatpush.bf16.msrb.mxu2 %v6992_v49  ;;  %v2881_v28 = vpop.f32.mrf.mxu1 }
 0x1e7   : > { %3019 = vmatpush.bf16.msra.mxu3 %v7180_v50  ;;  %v2882_v34 = vadd.f32 %v2881_v28, %v2867_v32 }
 0x1e9   : > { %3062 = vmatmul.bf16.vlgmr.msrb.gmra.mxu2 %v10159_v48  ;;  %v7253_v48 = vld [vmem:[%s9640_s12 + $0x538] sm:$0xf0] }
 0x1ea   : > { %3020 = vmatmul.bf16.vlgmr.msra.gmra.mxu3 %v10218_v25  ;;  %v7256_v5 = vor.u32 %v8685_v4, %v7253_v48 }
 0x1eb   : > { %3068 = vmatpush.bf16.msrb.mxu3 %v7352_v51 }
 0x1ec   : > { %v2783_v6 = vpop.f32.mrf.mxu2 }
 0x1ed   : > { %v2784_v9 = vadd.f32 %v2783_v6, %v10346_v17 }
 0x1ee   : > { %v2883_v37 = vpop.f32.mrf.mxu1 }
 0x1ef   : > { %3069 = vmatpush.bf16.msrb.mxu3 %v7328_v54  ;;  %v2884_v40 = vadd.f32 %v2883_v37, %v2869_v38 }
 0x1f0   : > { %v2923_v45 = vpop.f32.mrf.mxu0 }
 0x1f3   : > { %3070 = vmatpush.bf16.msrb.mxu3 %v7304_v63 }
 0x1f4   : > { %v2785_v13 = vpop.f32.mrf.mxu2 }
 0x1f5   : > { %v2786_v16 = vadd.f32 %v2785_v13, %v2772_v33 }
 0x1f7   : > { %3071 = vmatpush.bf16.msrb.mxu3 %v7280_v3 }
 0x1f8   : > { %v2925_v50 = vpop.f32.mrf.mxu0 }
 0x1fb   : > { %3072 = vmatpush.bf16.msrb.mxu3 %v7256_v5 }
 0x1fc   : > { %v2839_v19 = vpop.f32.mrf.mxu2 }
 0x1fd   : > { %v2840_v31 = vadd.f32 %v2839_v19, %v2826_v47 }
 0x1ff   : > { %3073 = vmatpush.bf16.msrb.mxu3 %v7232_v10 }
 0x203   : > { %3074 = vmatpush.bf16.msrb.mxu3 %v7208_v59 }
 0x204   : > { %v2841_v20 = vpop.f32.mrf.mxu2 }
 0x205   : > { %v2842_v21 = vadd.f32 %v2841_v20, %v2828_v62 }
 0x206   : > { %v2937_v44 = vpop.f32.mrf.mxu1 }
 0x207   : > { %3075 = vmatpush.bf16.msrb.mxu3 %v7184_v18  ;;  %v2938_v0 = vadd.f32 %v2937_v44, %v2923_v45 }
 0x20a   : > { %3076 = vmatmul.bf16.vlgmr.msrb.gmra.mxu3 %v10218_v25 }
 0x20c   : > { %v2797_v17 = vpop.f32.mrf.mxu3 }
 0x20d   : > { %v10384_v22 = vadd.f32 %v2797_v17, %v2784_v9 }
 0x20e   : > { %v2895_v33 = vpop.f32.mrf.mxu2  ;;  %v2939_v49 = vpop.f32.mrf.mxu1 }
 0x20f   : > { %v2896_v35 = vadd.f32 %v2895_v33, %v2882_v34  ;;  %v2940_v52 = vadd.f32 %v2939_v49, %v2925_v50 }
 0x210   : > { %v2979_v58 = vpop.f32.mrf.mxu0 }
 0x214   : > { %v2799_v23 = vpop.f32.mrf.mxu3 }
 0x215   : > { %v10386_v24 = vadd.f32 %v2799_v23, %v2786_v16 }
 0x216   : > { %v2897_v39 = vpop.f32.mrf.mxu2 }
 0x217   : > { %v2898_v41 = vadd.f32 %v2897_v39, %v2884_v40 }
 0x218   : > { %v2981_v4 = vpop.f32.mrf.mxu0 }
 0x21c   : > { %v2853_v26 = vpop.f32.mrf.mxu3 }
 0x21d   : > { %v10388_v27 = vadd.f32 %v2853_v26, %v2840_v31 }
 0x224   : > { %v2855_v29 = vpop.f32.mrf.mxu3 }
 0x225   : > { %v10390_v30 = vadd.f32 %v2855_v29, %v2842_v21 }
 0x226   : > { %v2993_v57 = vpop.f32.mrf.mxu1 }
 0x227   : > { %v2994_v62 = vadd.f32 %v2993_v57, %v2979_v58 }
 0x22c   : > { %v2951_v46 = vpop.f32.mrf.mxu2 }
 0x22d   : > { %v2952_v55 = vadd.f32 %v2951_v46, %v2938_v0 }
 0x22e   : > { %v2995_v3 = vpop.f32.mrf.mxu1 }
 0x22f   : > { %v2909_v25 = vpop.f32.mrf.mxu3  ;;  %v2996_v5 = vadd.f32 %v2995_v3, %v2981_v4 }
 0x230   : > { %v10392_v36 = vadd.f32 %v2909_v25, %v2896_v35  ;;  %v3035_v10 = vpop.f32.mrf.mxu0 }
 0x234   : > { %v2953_v51 = vpop.f32.mrf.mxu2 }
 0x235   : > { %v2954_v53 = vadd.f32 %v2953_v51, %v2940_v52 }
 0x237   : > { %v2911_v42 = vpop.f32.mrf.mxu3 }
 0x238   : > { %v10394_v43 = vadd.f32 %v2911_v42, %v2898_v41  ;;  %v3037_v16 = vpop.f32.mrf.mxu0 }
 0x246   : > { %v3049_v9 = vpop.f32.mrf.mxu1 }
 0x247   : > { %v3050_v12 = vadd.f32 %v3049_v9, %v3035_v10 }
 0x24c   : > { %v3007_v61 = vpop.f32.mrf.mxu2 }
 0x24d   : > { %v2965_v60 = vpop.f32.mrf.mxu3  ;;  %v3008_v63 = vadd.f32 %v3007_v61, %v2994_v62 }
 0x24e   : > { %v2966_v47 = vadd.f32 %v2965_v60, %v2952_v55  ;;  %v3051_v15 = vpop.f32.mrf.mxu1 }
 0x24f   : > { %v3052_v19 = vadd.f32 %v3051_v15, %v3037_v16 }
 0x254   : > { %v3009_v48 = vpop.f32.mrf.mxu2 }
 0x255   : > { %v2967_v54 = vpop.f32.mrf.mxu3  ;;  %v3010_v6 = vadd.f32 %v3009_v48, %v2996_v5 }
 0x256   : > { %v10396_v56 = vadd.f32 %v2967_v54, %v2954_v53 }
 0x26c   : > { %v3063_v11 = vpop.f32.mrf.mxu2 }
 0x26d   : > { %v3021_v1 = vpop.f32.mrf.mxu3  ;;  %v3064_v59 = vadd.f32 %v3063_v11, %v3050_v12 }
 0x26e   : > { %v3022_v2 = vadd.f32 %v3021_v1, %v3008_v63 }
 0x274   : > { %v3065_v18 = vpop.f32.mrf.mxu2 }
 0x275   : > { %v3023_v7 = vpop.f32.mrf.mxu3  ;;  %v3066_v31 = vadd.f32 %v3065_v18, %v3052_v19 }
 0x276   : > { %v3024_v8 = vadd.f32 %v3023_v7, %v3010_v6 }
 0x28d   : > { %v3077_v13 = vpop.f32.mrf.mxu3 }
 0x28e   : > { %v3078_v14 = vadd.f32 %v3077_v13, %v3064_v59 }
 0x292   : > { %3085 = sbr.rel (%p6035_p3) target bundleno = 675 (0x2a3), region = 100 }
 0x295   : > { %v3079_v20 = vpop.f32.mrf.mxu3 }
 0x296   : > { %v3080_v21 = vadd.f32 %v3079_v20, %v3066_v31 }
 0x297   : > { %3086 = vst [vmem:[#allocation2 + $0x30] sm:$0xff] %v10384_v22 }
 0x298   : > { %3087 = vst [vmem:[#allocation2] sm:$0xff] %v10388_v27 }
 0x299   : > { %3088 = vst [vmem:[#allocation2 + $0x58] sm:$0xff] %v10392_v36 }
 0x29a   : > { %3089 = vst [vmem:[#allocation2 + $0x18] sm:$0xff] %v2966_v47 }
 0x29b   : > { %3090 = vst [vmem:[#allocation2 + $0x50] sm:$0xff] %v3022_v2 }
 0x29c   : > { %3091 = vst [vmem:[#allocation2 + $0x20] sm:$0xff] %v3078_v14 }
 0x29d   : > { %3092 = vst [vmem:[#allocation2 + $0x8] sm:$0xff] %v10386_v24 }
 0x29e   : > { %3093 = vst [vmem:[#allocation2 + $0x38] sm:$0xff] %v10390_v30 }
 0x29f   : > { %3094 = vst [vmem:[#allocation2 + $0x28] sm:$0xff] %v10394_v43 }
 0x2a0   : > { %3095 = vst [vmem:[#allocation2 + $0x48] sm:$0xff] %v10396_v56 }
 0x2a1   : > { %3096 = vst [vmem:[#allocation2 + $0x10] sm:$0xff] %v3024_v8 }
 0x2a2   : > { %3097 = vst [vmem:[#allocation2 + $0x40] sm:$0xff] %v3080_v21 }
 0x2a3 PF: > { %p7354_p1 = scmp.le.s32.totalorder %s9491_s24, 0 }
 0x2a5   : > { %3101 = sbr.rel (%p7354_p1) target bundleno = 697 (0x2b9), region = 104 }
 0x2aa   : > { %v3102_v17 = vld [vmem:[#allocation2 + $0x30] sm:$0xff]  ;;  %v3103_v23 = vld [vmem:[#allocation2] sm:$0xff]  ;;  %v3104_v26 = vld [vmem:[#allocation2 + $0x58] sm:$0xff] }
 0x2ab   : > { %v3114_v28 = vadd.f32 %v3102_v17, %v10384_v22  ;;  %v3115_v29 = vadd.f32 %v3103_v23, %v10388_v27  ;;  %v3116_v32 = vadd.f32 %v3104_v26, %v10392_v36  ;;  %v3105_v33 = vld [vmem:[#allocation2 + $0x18] sm:$0xff]  ;;  %v3106_v34 = vld [vmem:[#allocation2 + $0x50] sm:$0xff]  ;;  %v3107_v35 = vld [vmem:[#allocation2 + $0x20] sm:$0xff] }
 0x2ac   : > { %v3117_v25 = vadd.f32 %v3105_v33, %v2966_v47  ;;  %v3108_v37 = vld [vmem:[#allocation2 + $0x8] sm:$0xff]  ;;  %v3118_v38 = vadd.f32 %v3106_v34, %v3022_v2  ;;  %v3109_v39 = vld [vmem:[#allocation2 + $0x38] sm:$0xff]  ;;  %v3119_v40 = vadd.f32 %v3107_v35, %v3078_v14  ;;  %v3112_v27 = vld [vmem:[#allocation2 + $0x10] sm:$0xff] }
 0x2ad   : > { %3126 = vst [vmem:[#allocation2 + $0x30] sm:$0xff] %v3114_v28  ;;  %v3110_v41 = vld [vmem:[#allocation2 + $0x28] sm:$0xff]  ;;  %v3120_v42 = vadd.f32 %v3108_v37, %v10386_v24  ;;  %v3121_v22 = vadd.f32 %v3109_v39, %v10390_v30  ;;  %v3113_v45 = vld [vmem:[#allocation2 + $0x40] sm:$0xff]  ;;  %v3124_v0 = vadd.f32 %v3112_v27, %v3024_v8 }
 0x2ae   : > { %3127 = vst [vmem:[#allocation2] sm:$0xff] %v3115_v29  ;;  %v3111_v44 = vld [vmem:[#allocation2 + $0x48] sm:$0xff]  ;;  %v3122_v36 = vadd.f32 %v3110_v41, %v10394_v43  ;;  %v3125_v55 = vadd.f32 %v3113_v45, %v3080_v21 }
 0x2af   : > { %3128 = vst [vmem:[#allocation2 + $0x58] sm:$0xff] %v3116_v32  ;;  %v3123_v46 = vadd.f32 %v3111_v44, %v10396_v56 }
 0x2b0   : > { %3129 = vst [vmem:[#allocation2 + $0x18] sm:$0xff] %v3117_v25 }
 0x2b1   : > { %3130 = vst [vmem:[#allocation2 + $0x50] sm:$0xff] %v3118_v38 }
 0x2b2   : > { %3131 = vst [vmem:[#allocation2 + $0x20] sm:$0xff] %v3119_v40 }
 0x2b3   : > { %3132 = vst [vmem:[#allocation2 + $0x8] sm:$0xff] %v3120_v42 }
 0x2b4   : > { %3133 = vst [vmem:[#allocation2 + $0x38] sm:$0xff] %v3121_v22 }
 0x2b5   : > { %3134 = vst [vmem:[#allocation2 + $0x28] sm:$0xff] %v3122_v36 }
 0x2b6   : > { %3135 = vst [vmem:[#allocation2 + $0x48] sm:$0xff] %v3123_v46 }
 0x2b7   : > { %3136 = vst [vmem:[#allocation2 + $0x10] sm:$0xff] %v3124_v0 }
 0x2b8   : > { %3137 = vst [vmem:[#allocation2 + $0x40] sm:$0xff] %v3125_v55 }
 0x2b9 PF: > { %p7355_p3 = scmp.ne.s32.totalorder %s9491_s24, 1 }
 0x2ba   : > { %s10747_s1 = sld [smem:[#allocation24_spill]] (!%p7355_p3)  ;;  %s9405_s5 = smov (!%p7355_p3), 96  }
 0x2bb   : > { %3141 = sbr.rel (%p7355_p3) target bundleno = 3427 (0xd63), region = 108  ;;  %s9406_s25 = smov (!%p7355_p3), 64  }
 0x2bc   : > { %s10748_s30 = sld [smem:[#allocation28_spill]] (!%p7355_p3) }
 0x2bd   : > { %s10749_s9 = sld [smem:[#allocation29_spill]] (!%p7355_p3) }
 0x2c0   : > { %v7470_v24 = vld [vmem:[#allocation8 + $0xe0] sm:$0xf]  ;;  %v8743_v30 = vld [vmem:[#allocation8 + $0xec] sm:$0xf0]  ;;  %vm4799_vm0 = vcmask 1041408   ;;  %vm4795_vm1 = vcmask 31744  }
 0x2c1   : > { %v7598_v60 = vld [vmem:[#allocation8 + $0x1e0] sm:$0xf]  ;;  %v7471_v43 = vor.u32 %v8743_v30, %v7470_v24  ;;  %v8775_v47 = vld [vmem:[#allocation8 + $0x1ec] sm:$0xf0]  ;;  %vm5091_vm3 = vcmask 1040384   ;;  %vm5150_vm7 = vcmask 261120  }
 0x2c2   : > { %v7726_v49 = vld [vmem:[#allocation8 + $0x2e0] sm:$0xf]  ;;  %v8807_v50 = vld [vmem:[#allocation8 + $0x2ec] sm:$0xf0]  ;;  %v7599_v51 = vor.u32 %v8775_v47, %v7598_v60  ;;  %vm5280_vm8 = vcmask 1043456   ;;  %vm5818_vm11 = vcmask 523264  }
 0x2c3   : > { %v7727_v52 = vor.u32 %v8807_v50, %v7726_v49  ;;  %v7854_v53 = vld [vmem:[#allocation8 + $0x3e0] sm:$0xf]  ;;  %v8839_v54 = vld [vmem:[#allocation8 + $0x3ec] sm:$0xf0]  ;;  %4360 = vmatpush.bf16.msra.mxu0 %v7471_v43  ;;  %vm5901_vm12 = vcmask 123904  }
 0x2c4   : > { %v7454_v56 = vld [vmem:[#allocation8 + $0xc0] sm:$0xf]  ;;  %v7855_v57 = vor.u32 %v8839_v54, %v7854_v53  ;;  %v8739_v58 = vld [vmem:[#allocation8 + $0xcc] sm:$0xf0]  ;;  %4374 = vmatpush.bf16.msra.mxu1 %v7599_v51 }
 0x2c5   : > { %v7582_v61 = vld [vmem:[#allocation8 + $0x1c0] sm:$0xf]  ;;  %v8771_v62 = vld [vmem:[#allocation8 + $0x1cc] sm:$0xf0]  ;;  %4388 = vmatpush.bf16.msra.mxu2 %v7727_v52  ;;  %v7455_v63 = vor.u32 %v8739_v58, %v7454_v56 }
 0x2c6   : > { %v7583_v1 = vor.u32 %v8771_v62, %v7582_v61  ;;  %v7710_v2 = vld [vmem:[#allocation8 + $0x2c0] sm:$0xf]  ;;  %v8803_v3 = vld [vmem:[#allocation8 + $0x2cc] sm:$0xf0]  ;;  %4402 = vmatpush.bf16.msra.mxu3 %v7855_v57 }
 0x2c7   : > { %v7838_v4 = vld [vmem:[#allocation8 + $0x3c0] sm:$0xf]  ;;  %v7711_v48 = vor.u32 %v8803_v3, %v7710_v2  ;;  %v8835_v5 = vld [vmem:[#allocation8 + $0x3cc] sm:$0xf0]  ;;  %4361 = vmatpush.bf16.msra.mxu0 %v7455_v63 }
 0x2c8   : > { %v7438_v6 = vld [vmem:[#allocation8 + $0xa0] sm:$0xf]  ;;  %v8735_v7 = vld [vmem:[#allocation8 + $0xac] sm:$0xf0]  ;;  %v7839_v8 = vor.u32 %v8835_v5, %v7838_v4  ;;  %4375 = vmatpush.bf16.msra.mxu1 %v7583_v1 }
 0x2c9   : > { %v7566_v9 = vld [vmem:[#allocation8 + $0x1a0] sm:$0xf]  ;;  %v8767_v10 = vld [vmem:[#allocation8 + $0x1ac] sm:$0xf0]  ;;  %v7439_v12 = vor.u32 %v8735_v7, %v7438_v6  ;;  %4389 = vmatpush.bf16.msra.mxu2 %v7711_v48 }
 0x2ca   : > { %v7694_v11 = vld [vmem:[#allocation8 + $0x2a0] sm:$0xf]  ;;  %v8799_v59 = vld [vmem:[#allocation8 + $0x2ac] sm:$0xf0]  ;;  %v7567_v15 = vor.u32 %v8767_v10, %v7566_v9  ;;  %4403 = vmatpush.bf16.msra.mxu3 %v7839_v8 }
 0x2cb   : > { %v7822_v13 = vld [vmem:[#allocation8 + $0x3a0] sm:$0xf]  ;;  %v8831_v14 = vld [vmem:[#allocation8 + $0x3ac] sm:$0xf0]  ;;  %v7695_v16 = vor.u32 %v8799_v59, %v7694_v11  ;;  %4362 = vmatpush.bf16.msra.mxu0 %v7439_v12 }
 0x2cc   : > { %v7422_v18 = vld [vmem:[#allocation8 + $0x80] sm:$0xf]  ;;  %v8731_v19 = vld [vmem:[#allocation8 + $0x8c] sm:$0xf0]  ;;  %v7823_v20 = vor.u32 %v8831_v14, %v7822_v13  ;;  %4376 = vmatpush.bf16.msra.mxu1 %v7567_v15  ;;  %v8741_v15 = vld [vmem:[#allocation8 + $0xe4] sm:$0xf] }
 0x2cd   : > { %v7550_v31 = vld [vmem:[#allocation8 + $0x180] sm:$0xf]  ;;  %v8763_v21 = vld [vmem:[#allocation8 + $0x18c] sm:$0xf0]  ;;  %v7423_v29 = vor.u32 %v8731_v19, %v7422_v18  ;;  %4390 = vmatpush.bf16.msra.mxu2 %v7695_v16  ;;  %v7472_v16 = vld [vmem:[#allocation8 + $0xf0] sm:$0xf0] }
 0x2ce   : > { %v7678_v17 = vld [vmem:[#allocation8 + $0x280] sm:$0xf]  ;;  %v8795_v23 = vld [vmem:[#allocation8 + $0x28c] sm:$0xf0]  ;;  %v7551_v32 = vor.u32 %v8763_v21, %v7550_v31  ;;  %4404 = vmatpush.bf16.msra.mxu3 %v7823_v20  ;;  %v8773_v31 = vld [vmem:[#allocation8 + $0x1e4] sm:$0xf] }
 0x2cf   : > { %v7806_v26 = vld [vmem:[#allocation8 + $0x380] sm:$0xf]  ;;  %v8827_v28 = vld [vmem:[#allocation8 + $0x38c] sm:$0xf0]  ;;  %v7679_v33 = vor.u32 %v8795_v23, %v7678_v17  ;;  %4363 = vmatpush.bf16.msra.mxu0 %v7423_v29  ;;  %v7600_v20 = vld [vmem:[#allocation8 + $0x1f0] sm:$0xf0]  ;;  %v7475_v29 = vor.u32 %v8741_v15, %v7472_v16 }
 0x2d0   : > { %v7406_v34 = vld [vmem:[#allocation8 + $0x60] sm:$0xf]  ;;  %v8727_v35 = vld [vmem:[#allocation8 + $0x6c] sm:$0xf0]  ;;  %v7807_v37 = vor.u32 %v8827_v28, %v7806_v26  ;;  %4377 = vmatpush.bf16.msra.mxu1 %v7551_v32 }
 0x2d1   : > { %v7534_v25 = vld [vmem:[#allocation8 + $0x160] sm:$0xf]  ;;  %v8759_v38 = vld [vmem:[#allocation8 + $0x16c] sm:$0xf0]  ;;  %v7407_v44 = vor.u32 %v8727_v35, %v7406_v34  ;;  %4391 = vmatpush.bf16.msra.mxu2 %v7679_v33  ;;  %v8737_v34 = vld [vmem:[#allocation8 + $0xc4] sm:$0xf]  ;;  %v7603_v35 = vor.u32 %v8773_v31, %v7600_v20 }
 0x2d2   : > { %v7662_v39 = vld [vmem:[#allocation8 + $0x260] sm:$0xf]  ;;  %v8791_v40 = vld [vmem:[#allocation8 + $0x26c] sm:$0xf0]  ;;  %v7535_v22 = vor.u32 %v8759_v38, %v7534_v25  ;;  %4405 = vmatpush.bf16.msra.mxu3 %v7807_v37  ;;  %v7456_v25 = vld [vmem:[#allocation8 + $0xd0] sm:$0xf0] }
 0x2d3   : > { %v7790_v41 = vld [vmem:[#allocation8 + $0x360] sm:$0xf]  ;;  %v8823_v42 = vld [vmem:[#allocation8 + $0x36c] sm:$0xf0]  ;;  %v7663_v27 = vor.u32 %v8791_v40, %v7662_v39  ;;  %4364 = vmatpush.bf16.msra.mxu0 %v7407_v44  ;;  %v8769_v37 = vld [vmem:[#allocation8 + $0x1c4] sm:$0xf] }
 0x2d4   : > { %v7390_v36 = vld [vmem:[#allocation8 + $0x40] sm:$0xf]  ;;  %v8723_v45 = vld [vmem:[#allocation8 + $0x4c] sm:$0xf0]  ;;  %v7791_v0 = vor.u32 %v8823_v42, %v7790_v41  ;;  %4378 = vmatpush.bf16.msra.mxu1 %v7535_v22  ;;  %v7584_v38 = vld [vmem:[#allocation8 + $0x1d0] sm:$0xf0] }
 0x2d5   : > { %v7518_v46 = vld [vmem:[#allocation8 + $0x140] sm:$0xf]  ;;  %v8755_v55 = vld [vmem:[#allocation8 + $0x14c] sm:$0xf0]  ;;  %v7391_v47 = vor.u32 %v8723_v45, %v7390_v36  ;;  %4392 = vmatpush.bf16.msra.mxu2 %v7663_v27  ;;  %v3142_v40 = vld [vmem:[#allocation2 + $0x30] sm:$0xff] }
 0x2d6   : > { %v7646_v24 = vld [vmem:[#allocation8 + $0x240] sm:$0xf]  ;;  %v8787_v30 = vld [vmem:[#allocation8 + $0x24c] sm:$0xf0]  ;;  %v7519_v49 = vor.u32 %v8755_v55, %v7518_v46  ;;  %4406 = vmatpush.bf16.msra.mxu3 %v7791_v0  ;;  %v7459_v46 = vor.u32 %v8737_v34, %v7456_v25  ;;  %v8733_v55 = vld [vmem:[#allocation8 + $0xa4] sm:$0xf] }
 0x2d7   : > { %v7774_v60 = vld [vmem:[#allocation8 + $0x340] sm:$0xf]  ;;  %v8819_v43 = vld [vmem:[#allocation8 + $0x34c] sm:$0xf0]  ;;  %v7647_v50 = vor.u32 %v8787_v30, %v7646_v24  ;;  %4365 = vmatpush.bf16.msra.mxu0 %v7391_v47  ;;  %v7440_v24 = vld [vmem:[#allocation8 + $0xb0] sm:$0xf0]  ;;  %v7587_v30 = vor.u32 %v8769_v37, %v7584_v38 }
 0x2d8   : > { %v7374_v51 = vld [vmem:[#allocation8 + $0x20] sm:$0xf]  ;;  %v8719_v52 = vld [vmem:[#allocation8 + $0x2c] sm:$0xf0]  ;;  %v7775_v54 = vor.u32 %v8819_v43, %v7774_v60  ;;  %4379 = vmatpush.bf16.msra.mxu1 %v7519_v49  ;;  %v8765_v60 = vld [vmem:[#allocation8 + $0x1a4] sm:$0xf] }
 0x2d9   : > { %v7502_v53 = vld [vmem:[#allocation8 + $0x120] sm:$0xf]  ;;  %v8751_v56 = vld [vmem:[#allocation8 + $0x12c] sm:$0xf0]  ;;  %v7375_v63 = vor.u32 %v8719_v52, %v7374_v51  ;;  %4393 = vmatpush.bf16.msra.mxu2 %v7647_v50  ;;  %v7568_v43 = vld [vmem:[#allocation8 + $0x1b0] sm:$0xf0] }
 0x2da   : > { %v7630_v57 = vld [vmem:[#allocation8 + $0x220] sm:$0xf]  ;;  %v8783_v58 = vld [vmem:[#allocation8 + $0x22c] sm:$0xf0]  ;;  %v7503_v3 = vor.u32 %v8751_v56, %v7502_v53  ;;  %4407 = vmatpush.bf16.msra.mxu3 %v7775_v54  ;;  %v3143_v50 = vld [vmem:[#allocation2] sm:$0xff] }
 0x2db   : > { %v7758_v61 = vld [vmem:[#allocation8 + $0x320] sm:$0xf]  ;;  %v8815_v62 = vld [vmem:[#allocation8 + $0x32c] sm:$0xf0]  ;;  %v7631_v4 = vor.u32 %v8783_v58, %v7630_v57  ;;  %4366 = vmatpush.bf16.msra.mxu0 %v7375_v63 }
 0x2dc   : > { %v7358_v1 = vld [vmem:[#allocation8] sm:$0xf]  ;;  %v8715_v2 = vld [vmem:[#allocation8 + $0xc] sm:$0xf0]  ;;  %v7759_v7 = vor.u32 %v8815_v62, %v7758_v61  ;;  %4380 = vmatpush.bf16.msra.mxu1 %v7503_v3  ;;  %v7424_v3 = vld [vmem:[#allocation8 + $0x90] sm:$0xf0] }
 0x2dd   : > { %v7486_v48 = vld [vmem:[#allocation8 + $0x100] sm:$0xf]  ;;  %v8747_v5 = vld [vmem:[#allocation8 + $0x10c] sm:$0xf0]  ;;  %v7359_v13 = vor.u32 %v8715_v2, %v7358_v1  ;;  %4394 = vmatpush.bf16.msra.mxu2 %v7631_v4  ;;  %v7443_v1 = vor.u32 %v8733_v55, %v7440_v24  ;;  %v8729_v2 = vld [vmem:[#allocation8 + $0x84] sm:$0xf] }
 0x2de   : > { %v7614_v6 = vld [vmem:[#allocation8 + $0x200] sm:$0xf]  ;;  %v8779_v8 = vld [vmem:[#allocation8 + $0x20c] sm:$0xf0]  ;;  %v7487_v18 = vor.u32 %v8747_v5, %v7486_v48  ;;  %4408 = vmatpush.bf16.msra.mxu3 %v7759_v7  ;;  %v8761_v4 = vld [vmem:[#allocation8 + $0x184] sm:$0xf] }
 0x2df   : > { %v7742_v9 = vld [vmem:[#allocation8 + $0x300] sm:$0xf]  ;;  %v8811_v10 = vld [vmem:[#allocation8 + $0x30c] sm:$0xf0]  ;;  %v7615_v19 = vor.u32 %v8779_v8, %v7614_v6  ;;  %4367 = vmatpush.bf16.msra.mxu0 %v7359_v13  ;;  %v7571_v6 = vor.u32 %v8765_v60, %v7568_v43  ;;  %v7552_v7 = vld [vmem:[#allocation8 + $0x190] sm:$0xf0] }
 0x2e0   : > { %v7982_v11 = vld [vmem:[#allocation8 + $0x4e0] sm:$0xf]  ;;  %v8871_v12 = vld [vmem:[#allocation8 + $0x4ec] sm:$0xf0]  ;;  %v7743_v21 = vor.u32 %v8811_v10, %v7742_v9  ;;  %4381 = vmatpush.bf16.msra.mxu1 %v7487_v18  ;;  %v8721_v60 = vld [vmem:[#allocation8 + $0x44] sm:$0xf] }
 0x2e1   : > { %v8110_v59 = vld [vmem:[#allocation8 + $0x5e0] sm:$0xf]  ;;  %v8903_v14 = vld [vmem:[#allocation8 + $0x5ec] sm:$0xf0]  ;;  %v7983_v17 = vor.u32 %v8871_v12, %v7982_v11  ;;  %4395 = vmatpush.bf16.msra.mxu2 %v7615_v19  ;;  %v7392_v43 = vld [vmem:[#allocation8 + $0x50] sm:$0xf0] }
 0x2e2   : > { %v7966_v23 = vld [vmem:[#allocation8 + $0x4c0] sm:$0xf]  ;;  %v8867_v26 = vld [vmem:[#allocation8 + $0x4cc] sm:$0xf0]  ;;  %v8111_v28 = vor.u32 %v8903_v14, %v8110_v59  ;;  %4409 = vmatpush.bf16.msra.mxu3 %v7743_v21 }
 0x2e3   : > { %v8094_v32 = vld [vmem:[#allocation8 + $0x5c0] sm:$0xf]  ;;  %v8899_v33 = vld [vmem:[#allocation8 + $0x5cc] sm:$0xf0]  ;;  %4416 = vmatpush.bf16.msrb.mxu0 %v7983_v17  ;;  %v7967_v44 = vor.u32 %v8867_v26, %v7966_v23  ;;  %v7427_v26 = vor.u32 %v8729_v2, %v7424_v3  ;;  %v7376_v3 = vld [vmem:[#allocation8 + $0x30] sm:$0xf0] }
 0x2e4   : > { %v7950_v39 = vld [vmem:[#allocation8 + $0x4a0] sm:$0xf]  ;;  %v10416_v42 = vld [vmem:[#allocation14] sm:$0x3f]  ;;  %4430 = vmatpush.bf16.msrb.mxu1 %v8111_v28  ;;  %v8095_v45 = vor.u32 %v8899_v33, %v8094_v32  ;;  %v7555_v28 = vor.u32 %v8761_v4, %v7552_v7  ;;  %v8725_v33 = vld [vmem:[#allocation8 + $0x64] sm:$0xf] }
 0x2e5   : > { %v3148_v41 = vld [vmem:[#allocation2 + $0x8] sm:$0xff]  ;;  %v8863_v22 = vld [vmem:[#allocation8 + $0x4ac] sm:$0xf0]  ;;  %v3156_v36 = vperm.slane %v10416_v42, 0  ;;  %4444 = vmatpush.bf16.msrb.mxu2 %v7475_v29  ;;  %v3157_v54 = vperm.slane %v10416_v42, 1  ;;  %v3158_v11 = vperm.slane %v10416_v42, 2 }
 0x2e6   : > { %v8078_v27 = vld [vmem:[#allocation8 + $0x5a0] sm:$0xf]  ;;  %v8895_v0 = vld [vmem:[#allocation8 + $0x5ac] sm:$0xf0]  ;;  %4458 = vmatpush.bf16.msrb.mxu3 %v7603_v35  ;;  %v7951_v56 = vor.u32 %v8863_v22, %v7950_v39  ;;  %v3159_v12 = vperm.slane %v10416_v42, 3  ;;  %v3147_v4 = vld [vmem:[#allocation2 + $0x20] sm:$0xff] }
 0x2e7   : > { %v3168_v47 = vadd.f32 %v3156_v36, %v3142_v40  ;;  %v3174_v49 = vadd.f32 %v3156_v36, %v3148_v41  ;;  %v7934_v51 = vld [vmem:[#allocation8 + $0x480] sm:$0xf]  ;;  %v8859_v52 = vld [vmem:[#allocation8 + $0x48c] sm:$0xf0]  ;;  %4417 = vmatpush.bf16.msrb.mxu0 %v7967_v44  ;;  %v8079_v57 = vor.u32 %v8895_v0, %v8078_v27  ;;  %v3169_v48 = vadd.f32 %v3157_v54, %v3143_v50  ;;  %v7408_v35 = vld [vmem:[#allocation8 + $0x70] sm:$0xf0] }
 0x2e8   : > { %v3149_v53 = vld [vmem:[#allocation2 + $0x38] sm:$0xff]  ;;  %v8062_v58 = vld [vmem:[#allocation8 + $0x580] sm:$0xf]  ;;  %4431 = vmatpush.bf16.msrb.mxu1 %v8095_v45  ;;  %v7935_v59 = vor.u32 %v8859_v52, %v7934_v51  ;;  %v8757_v40 = vld [vmem:[#allocation8 + $0x164] sm:$0xf] }
 0x2e9   : > { %v8891_v61 = vld [vmem:[#allocation8 + $0x58c] sm:$0xf0]  ;;  %v3180_v62 = vmax.f32 %v3168_v47, 0.0  ;;  %v3186_v63 = vmax.f32 %v3174_v49, 0.0  ;;  %4445 = vmatpush.bf16.msrb.mxu2 %v7459_v46  ;;  %v3175_v5 = vadd.f32 %v3157_v54, %v3149_v53  ;;  %v3150_v10 = vld [vmem:[#allocation2 + $0x28] sm:$0xff]  ;;  %v3181_v14 = vmax.f32 %v3169_v48, 0.0 }
 0x2ea   : > { %4459 = vmatpush.bf16.msrb.mxu3 %v7587_v30  ;;  %v3144_v9 = vld [vmem:[#allocation2 + $0x58] sm:$0xff]  ;;  %v8063_v13 = vor.u32 %v8891_v61, %v8062_v58  ;;  %v3151_v18 = vld [vmem:[#allocation2 + $0x48] sm:$0xff]  ;;  %v3176_v21 = vadd.f32 %v3158_v11, %v3150_v10  ;;  %v7411_v46 = vor.u32 %v8725_v33, %v7408_v35  ;;  %v7395_v58 = vor.u32 %v8721_v60, %v7392_v43  ;;  %v3153_v48 = vld [vmem:[#allocation2 + $0x40] sm:$0xff] }
 0x2eb   : > { %v10420_v8 = vpack.c.bf16 %v3186_v63, %v3180_v62  ;;  %v3187_v15 = vmax.f32 %v3175_v5, 0.0  ;;  %v3145_v16 = vld [vmem:[#allocation2 + $0x18] sm:$0xff]  ;;  %4418 = vmatpush.bf16.msrb.mxu0 %v7951_v56  ;;  %v7918_v19 = vld [vmem:[#allocation8 + $0x460] sm:$0xf]  ;;  %v3170_v20 = vadd.f32 %v3158_v11, %v3144_v9  ;;  %v3177_v23 = vadd.f32 %v3159_v12, %v3151_v18  ;;  %v8753_v47 = vld [vmem:[#allocation8 + $0x144] sm:$0xf] }
 0x2ec   : > { %v8855_v31 = vld [vmem:[#allocation8 + $0x46c] sm:$0xf0]  ;;  %v3171_v17 = vadd.f32 %v3159_v12, %v3145_v16  ;;  %4432 = vmatpush.bf16.msrb.mxu1 %v8079_v57  ;;  %v8046_v29 = vld [vmem:[#allocation8 + $0x560] sm:$0xf]  ;;  %v3188_v37 = vmax.f32 %v3176_v21, 0.0  ;;  %v3160_v56 = vperm.slane %v10416_v42, 4 }
 0x2ed   : > { %4446 = vmatpush.bf16.msrb.mxu2 %v7443_v1  ;;  %v8887_v32 = vld [vmem:[#allocation8 + $0x56c] sm:$0xf0]  ;;  %v10424_v34 = vpack.c.bf16 %v3187_v15, %v3181_v14  ;;  %4368 = vmatmul.bf16.vlgmr.msra.gmra.mxu0 %v10420_v8  ;;  %v3182_v25 = vmax.f32 %v3170_v20, 0.0  ;;  %v3189_v39 = vmax.f32 %v3177_v23, 0.0  ;;  %v7536_v41 = vld [vmem:[#allocation8 + $0x170] sm:$0xf0]  ;;  %v7919_v44 = vor.u32 %v8855_v31, %v7918_v19 }
 0x2ee   : > { %4460 = vmatpush.bf16.msrb.mxu3 %v7571_v6  ;;  %v3183_v38 = vmax.f32 %v3171_v17, 0.0  ;;  %v7902_v22 = vld [vmem:[#allocation8 + $0x440] sm:$0xf]  ;;  %v8047_v45 = vor.u32 %v8887_v32, %v8046_v29  ;;  %v8851_v0 = vld [vmem:[#allocation8 + $0x44c] sm:$0xf0]  ;;  %v7539_v30 = vor.u32 %v8757_v40, %v7536_v41  ;;  %v3146_v62 = vld [vmem:[#allocation2 + $0x50] sm:$0xff] }
 0x2ef   : > { %4382 = vmatmul.bf16.vlgmr.msra.gmra.mxu1 %v10424_v34  ;;  %4419 = vmatpush.bf16.msrb.mxu0 %v7935_v59  ;;  %v10428_v27 = vpack.c.bf16 %v3188_v37, %v3182_v25  ;;  %v8030_v55 = vld [vmem:[#allocation8 + $0x540] sm:$0xf]  ;;  %v8883_v24 = vld [vmem:[#allocation8 + $0x54c] sm:$0xf0]  ;;  %v7520_v49 = vld [vmem:[#allocation8 + $0x150] sm:$0xf0]  ;;  %v7903_v52 = vor.u32 %v8851_v0, %v7902_v22  ;;  %v3172_v59 = vadd.f32 %v3160_v56, %v3146_v62 }
 0x2f0   : > { %v10430_v36 = vpack.c.bf16 %v3189_v39, %v3183_v38  ;;  %4433 = vmatpush.bf16.msrb.mxu1 %v8063_v13  ;;  %v7886_v50 = vld [vmem:[#allocation8 + $0x420] sm:$0xf]  ;;  %v8847_v51 = vld [vmem:[#allocation8 + $0x42c] sm:$0xf0]  ;;  %v8031_v57 = vor.u32 %v8883_v24, %v8030_v55  ;;  %v8717_v61 = vld [vmem:[#allocation8 + $0x24] sm:$0xf]  ;;  %v7523_v2 = vor.u32 %v8753_v47, %v7520_v49 }
 0x2f1   : > { %4447 = vmatpush.bf16.msrb.mxu2 %v7427_v26  ;;  %v8014_v53 = vld [vmem:[#allocation8 + $0x520] sm:$0xf]  ;;  %v8879_v54 = vld [vmem:[#allocation8 + $0x52c] sm:$0xf0]  ;;  %v3152_v63 = vld [vmem:[#allocation2 + $0x10] sm:$0xff]  ;;  %v3161_v1 = vperm.slane %v10416_v42, 5  ;;  %v7887_v7 = vor.u32 %v8847_v51, %v7886_v50  ;;  %v7379_v14 = vor.u32 %v8717_v61, %v7376_v3 }
 0x2f2   : > { %4461 = vmatpush.bf16.msrb.mxu3 %v7555_v28  ;;  %4396 = vmatmul.bf16.vlgmr.msra.gmra.mxu2 %v10428_v27  ;;  %v8749_v5 = vld [vmem:[#allocation8 + $0x124] sm:$0xf]  ;;  %v7504_v6 = vld [vmem:[#allocation8 + $0x130] sm:$0xf0]  ;;  %v8015_v9 = vor.u32 %v8879_v54, %v8014_v53  ;;  %v7870_v10 = vld [vmem:[#allocation8 + $0x400] sm:$0xf]  ;;  %v3178_v13 = vadd.f32 %v3160_v56, %v3152_v63 }
 0x2f3   : > { %4410 = vmatmul.bf16.vlgmr.msra.gmra.mxu3 %v10430_v36  ;;  %4420 = vmatpush.bf16.msrb.mxu0 %v7919_v44  ;;  %v8843_v11 = vld [vmem:[#allocation8 + $0x40c] sm:$0xf0]  ;;  %v7998_v12 = vld [vmem:[#allocation8 + $0x500] sm:$0xf]  ;;  %v8713_v42 = vld [vmem:[#allocation8 + $0x4] sm:$0xf]  ;;  %v3173_v18 = vadd.f32 %v3161_v1, %v3147_v4  ;;  %v3179_v19 = vadd.f32 %v3161_v1, %v3153_v48  ;;  %v7507_v31 = vor.u32 %v8749_v5, %v7504_v6 }
 0x2f4   : > { %4434 = vmatpush.bf16.msrb.mxu1 %v8047_v45  ;;  %v8875_v15 = vld [vmem:[#allocation8 + $0x50c] sm:$0xf0]  ;;  %v7360_v16 = vld [vmem:[#allocation8 + $0x10] sm:$0xf0]  ;;  %v8745_v20 = vld [vmem:[#allocation8 + $0x104] sm:$0xf]  ;;  %v7871_v29 = vor.u32 %v8843_v11, %v7870_v10 }
 0x2f5   : > { %4448 = vmatpush.bf16.msrb.mxu2 %v7411_v46  ;;  %v7488_v21 = vld [vmem:[#allocation8 + $0x110] sm:$0xf0]  ;;  %v8805_v17 = vld [vmem:[#allocation8 + $0x2e4] sm:$0xf]  ;;  %v3184_v35 = vmax.f32 %v3172_v59, 0.0  ;;  %v3190_v25 = vmax.f32 %v3178_v13, 0.0  ;;  %v7999_v37 = vor.u32 %v8875_v15, %v7998_v12  ;;  %v7363_v38 = vor.u32 %v8713_v42, %v7360_v16 }
 0x2f6   : > { %4462 = vmatpush.bf16.msrb.mxu3 %v7539_v30  ;;  %v7728_v23 = vld [vmem:[#allocation8 + $0x2f0] sm:$0xf0]  ;;  %v8837_v26 = vld [vmem:[#allocation8 + $0x3e4] sm:$0xf]  ;;  %v3185_v41 = vmax.f32 %v3173_v18, 0.0  ;;  %v3191_v44 = vmax.f32 %v3179_v19, 0.0  ;;  %v7491_v22 = vor.u32 %v8745_v20, %v7488_v21 }
 0x2f7   : > { %4421 = vmatpush.bf16.msrb.mxu0 %v7903_v52  ;;  %v7856_v28 = vld [vmem:[#allocation8 + $0x3f0] sm:$0xf0]  ;;  %v8869_v32 = vld [vmem:[#allocation8 + $0x4e4] sm:$0xf]  ;;  %v7731_v45 = vor.u32 %v8805_v17, %v7728_v23  ;;  %v10436_v43 = vpack.c.bf16 %v3190_v25, %v3184_v35 }
 0x2f8   : > { %4435 = vmatpush.bf16.msrb.mxu1 %v8031_v57  ;;  %v7984_v33 = vld [vmem:[#allocation8 + $0x4f0] sm:$0xf0]  ;;  %v8901_v39 = vld [vmem:[#allocation8 + $0x5e4] sm:$0xf]  ;;  %v7859_v46 = vor.u32 %v8837_v26, %v7856_v28  ;;  %v10438_v51 = vpack.c.bf16 %v3191_v44, %v3185_v41 }
 0x2f9   : > { %4449 = vmatpush.bf16.msrb.mxu2 %v7395_v58  ;;  %v8112_v40 = vld [vmem:[#allocation8 + $0x5f0] sm:$0xf0]  ;;  %v7987_v0 = vor.u32 %v8869_v32, %v7984_v33  ;;  %v8801_v55 = vld [vmem:[#allocation8 + $0x2c4] sm:$0xf] }
 0x2fa   : > { %4463 = vmatpush.bf16.msrb.mxu3 %v7523_v2  ;;  %v7712_v24 = vld [vmem:[#allocation8 + $0x2d0] sm:$0xf0]  ;;  %v8833_v30 = vld [vmem:[#allocation8 + $0x3c4] sm:$0xf]  ;;  %v8115_v60 = vor.u32 %v8901_v39, %v8112_v40 }
 0x2fb   : > { %4422 = vmatpush.bf16.msrb.mxu0 %v7887_v7  ;;  %v7840_v47 = vld [vmem:[#allocation8 + $0x3d0] sm:$0xf0]  ;;  %v8865_v49 = vld [vmem:[#allocation8 + $0x4c4] sm:$0xf]  ;;  %v7715_v54 = vor.u32 %v8801_v55, %v7712_v24 }
 0x2fc   : > { %4436 = vmatpush.bf16.msrb.mxu1 %v8015_v9  ;;  %v7968_v50 = vld [vmem:[#allocation8 + $0x4d0] sm:$0xf0]  ;;  %v8897_v52 = vld [vmem:[#allocation8 + $0x5c4] sm:$0xf]  ;;  %v7843_v56 = vor.u32 %v8833_v30, %v7840_v47 }
 0x2fd   : > { %4450 = vmatpush.bf16.msrb.mxu2 %v7379_v14  ;;  %v8096_v53 = vld [vmem:[#allocation8 + $0x5d0] sm:$0xf0]  ;;  %v7971_v57 = vor.u32 %v8865_v49, %v7968_v50  ;;  %v8797_v58 = vld [vmem:[#allocation8 + $0x2a4] sm:$0xf] }
 0x2fe   : > { %4464 = vmatpush.bf16.msrb.mxu3 %v7507_v31  ;;  %v7696_v61 = vld [vmem:[#allocation8 + $0x2b0] sm:$0xf0]  ;;  %v8829_v62 = vld [vmem:[#allocation8 + $0x3a4] sm:$0xf]  ;;  %v8099_v63 = vor.u32 %v8897_v52, %v8096_v53 }
 0x2ff   : > { %4423 = vmatpush.bf16.msrb.mxu0 %v7871_v29  ;;  %v7824_v1 = vld [vmem:[#allocation8 + $0x3b0] sm:$0xf0]  ;;  %v8861_v2 = vld [vmem:[#allocation8 + $0x4a4] sm:$0xf]  ;;  %v7699_v5 = vor.u32 %v8797_v58, %v7696_v61 }
 0x300   : > { %4437 = vmatpush.bf16.msrb.mxu1 %v7999_v37  ;;  %v7952_v3 = vld [vmem:[#allocation8 + $0x4b0] sm:$0xf0]  ;;  %v8893_v4 = vld [vmem:[#allocation8 + $0x5a4] sm:$0xf]  ;;  %v7827_v6 = vor.u32 %v8829_v62, %v7824_v1 }
 0x301   : > { %4451 = vmatpush.bf16.msrb.mxu2 %v7363_v38  ;;  %v8080_v48 = vld [vmem:[#allocation8 + $0x5b0] sm:$0xf0]  ;;  %v7955_v7 = vor.u32 %v8861_v2, %v7952_v3  ;;  %v8793_v9 = vld [vmem:[#allocation8 + $0x284] sm:$0xf] }
 0x302   : > { %4465 = vmatpush.bf16.msrb.mxu3 %v7491_v22  ;;  %4424 = vmatmul.bf16.vlgmr.msrb.gmra.mxu0 %v10436_v43  ;;  %v7680_v10 = vld [vmem:[#allocation8 + $0x290] sm:$0xf0]  ;;  %v8825_v11 = vld [vmem:[#allocation8 + $0x384] sm:$0xf]  ;;  %v8083_v12 = vor.u32 %v8893_v4, %v8080_v48 }
 0x303   : > { %4472 = vmatpush.bf16.msra.mxu0 %v7731_v45  ;;  %4438 = vmatmul.bf16.vlgmr.msrb.gmra.mxu1 %v10438_v51  ;;  %v7808_v59 = vld [vmem:[#allocation8 + $0x390] sm:$0xf0]  ;;  %v8857_v13 = vld [vmem:[#allocation8 + $0x484] sm:$0xf]  ;;  %v7683_v16 = vor.u32 %v8793_v9, %v7680_v10  ;;  %v8744_v9 = vld [vmem:[#allocation8 + $0xf4] sm:$0xf0] }
 0x304   : > { %4486 = vmatpush.bf16.msra.mxu1 %v7859_v46  ;;  %4452 = vmatmul.bf16.vlgmr.msrb.gmra.mxu2 %v10420_v8  ;;  %v7936_v14 = vld [vmem:[#allocation8 + $0x490] sm:$0xf0]  ;;  %v8889_v15 = vld [vmem:[#allocation8 + $0x584] sm:$0xf]  ;;  %v7811_v18 = vor.u32 %v8825_v11, %v7808_v59  ;;  %v7606_v10 = vld [vmem:[#allocation8 + $0x1e8] sm:$0xf] }
 0x305   : > { %4500 = vmatpush.bf16.msra.mxu2 %v7987_v0  ;;  %4466 = vmatmul.bf16.vlgmr.msrb.gmra.mxu3 %v10424_v34  ;;  %v8064_v42 = vld [vmem:[#allocation8 + $0x590] sm:$0xf0]  ;;  %v7939_v19 = vor.u32 %v8857_v13, %v7936_v14  ;;  %v8789_v31 = vld [vmem:[#allocation8 + $0x264] sm:$0xf]  ;;  %v7734_v59 = vld [vmem:[#allocation8 + $0x2e8] sm:$0xf] }
 0x306   : > { %4514 = vmatpush.bf16.msra.mxu3 %v8115_v60  ;;  %v7664_v20 = vld [vmem:[#allocation8 + $0x270] sm:$0xf0]  ;;  %v8821_v21 = vld [vmem:[#allocation8 + $0x364] sm:$0xf]  ;;  %v8067_v17 = vor.u32 %v8889_v15, %v8064_v42  ;;  %v8808_v13 = vld [vmem:[#allocation8 + $0x2f4] sm:$0xf0] }
 0x307   : > { %4473 = vmatpush.bf16.msra.mxu0 %v7715_v54  ;;  %v7792_v23 = vld [vmem:[#allocation8 + $0x370] sm:$0xf0]  ;;  %v8853_v26 = vld [vmem:[#allocation8 + $0x464] sm:$0xf]  ;;  %v7667_v33 = vor.u32 %v8789_v31, %v7664_v20  ;;  %v7862_v42 = vld [vmem:[#allocation8 + $0x3e8] sm:$0xf]  ;;  %v7735_v20 = vor.u32 %v8808_v13, %v7734_v59 }
 0x308   : > { %4487 = vmatpush.bf16.msra.mxu1 %v7843_v56  ;;  %v7920_v28 = vld [vmem:[#allocation8 + $0x470] sm:$0xf0]  ;;  %v8885_v29 = vld [vmem:[#allocation8 + $0x564] sm:$0xf]  ;;  %v7795_v35 = vor.u32 %v8821_v21, %v7792_v23  ;;  %v7462_v21 = vld [vmem:[#allocation8 + $0xc8] sm:$0xf] }
 0x309   : > { %4501 = vmatpush.bf16.msra.mxu2 %v7971_v57  ;;  %v8048_v32 = vld [vmem:[#allocation8 + $0x570] sm:$0xf0]  ;;  %v7923_v25 = vor.u32 %v8853_v26, %v7920_v28  ;;  %v8785_v37 = vld [vmem:[#allocation8 + $0x244] sm:$0xf]  ;;  %v7590_v23 = vld [vmem:[#allocation8 + $0x1c8] sm:$0xf] }
 0x30a   : > { %4515 = vmatpush.bf16.msra.mxu3 %v8099_v63  ;;  %v7648_v38 = vld [vmem:[#allocation8 + $0x250] sm:$0xf0]  ;;  %v8817_v39 = vld [vmem:[#allocation8 + $0x344] sm:$0xf]  ;;  %v8051_v40 = vor.u32 %v8885_v29, %v8048_v32  ;;  %v8772_v28 = vld [vmem:[#allocation8 + $0x1d4] sm:$0xf0] }
 0x30b   : > { %4474 = vmatpush.bf16.msra.mxu0 %v7699_v5  ;;  %v7776_v41 = vld [vmem:[#allocation8 + $0x350] sm:$0xf0]  ;;  %v8849_v44 = vld [vmem:[#allocation8 + $0x444] sm:$0xf]  ;;  %v7651_v0 = vor.u32 %v8785_v37, %v7648_v38  ;;  %v7718_v29 = vld [vmem:[#allocation8 + $0x2c8] sm:$0xf]  ;;  %v7591_v37 = vor.u32 %v8772_v28, %v7590_v23 }
 0x30c   : > { %4488 = vmatpush.bf16.msra.mxu1 %v7827_v6  ;;  %v7904_v22 = vld [vmem:[#allocation8 + $0x450] sm:$0xf0]  ;;  %v8881_v45 = vld [vmem:[#allocation8 + $0x544] sm:$0xf]  ;;  %v7779_v55 = vor.u32 %v8817_v39, %v7776_v41  ;;  %v8804_v32 = vld [vmem:[#allocation8 + $0x2d4] sm:$0xf0] }
 0x30d   : > { %4502 = vmatpush.bf16.msra.mxu2 %v7955_v7  ;;  %v8032_v46 = vld [vmem:[#allocation8 + $0x550] sm:$0xf0]  ;;  %v7907_v24 = vor.u32 %v8849_v44, %v7904_v22  ;;  %v8781_v30 = vld [vmem:[#allocation8 + $0x224] sm:$0xf]  ;;  %v7478_v7 = vld [vmem:[#allocation8 + $0xe8] sm:$0xf]  ;;  %v7719_v38 = vor.u32 %v8804_v32, %v7718_v29 }
 0x30e   : > { %4516 = vmatpush.bf16.msra.mxu3 %v8083_v12  ;;  %v7632_v60 = vld [vmem:[#allocation8 + $0x230] sm:$0xf0]  ;;  %v8813_v47 = vld [vmem:[#allocation8 + $0x324] sm:$0xf]  ;;  %v8035_v49 = vor.u32 %v8881_v45, %v8032_v46  ;;  %v8776_v12 = vld [vmem:[#allocation8 + $0x1f4] sm:$0xf0] }
 0x30f   : > { %4475 = vmatpush.bf16.msra.mxu0 %v7683_v16  ;;  %v7760_v50 = vld [vmem:[#allocation8 + $0x330] sm:$0xf0]  ;;  %v8845_v52 = vld [vmem:[#allocation8 + $0x424] sm:$0xf]  ;;  %v7635_v57 = vor.u32 %v8781_v30, %v7632_v60  ;;  %v8840_v16 = vld [vmem:[#allocation8 + $0x3f4] sm:$0xf0]  ;;  %v7607_v31 = vor.u32 %v8776_v12, %v7606_v10 }
 0x310   : > { %4489 = vmatpush.bf16.msra.mxu1 %v7811_v18  ;;  %v7888_v53 = vld [vmem:[#allocation8 + $0x430] sm:$0xf0]  ;;  %v8877_v54 = vld [vmem:[#allocation8 + $0x524] sm:$0xf]  ;;  %v7763_v62 = vor.u32 %v8813_v47, %v7760_v50  ;;  %v7863_v26 = vor.u32 %v8840_v16, %v7862_v42  ;;  %v7446_v39 = vld [vmem:[#allocation8 + $0xa8] sm:$0xf] }
 0x311   : > { %4503 = vmatpush.bf16.msra.mxu2 %v7939_v19  ;;  %v8016_v56 = vld [vmem:[#allocation8 + $0x530] sm:$0xf0]  ;;  %v8777_v58 = vld [vmem:[#allocation8 + $0x204] sm:$0xf]  ;;  %v7891_v63 = vor.u32 %v8845_v52, %v7888_v53  ;;  %v7479_v19 = vor.u32 %v8744_v9, %v7478_v7  ;;  %v7574_v41 = vld [vmem:[#allocation8 + $0x1a8] sm:$0xf] }
 0x312   : > { %4517 = vmatpush.bf16.msra.mxu3 %v8067_v17  ;;  %v7616_v61 = vld [vmem:[#allocation8 + $0x210] sm:$0xf0]  ;;  %v8809_v1 = vld [vmem:[#allocation8 + $0x304] sm:$0xf]  ;;  %v8019_v4 = vor.u32 %v8877_v54, %v8016_v56  ;;  %v8740_v17 = vld [vmem:[#allocation8 + $0xd4] sm:$0xf0] }
 0x313   : > { %4476 = vmatpush.bf16.msra.mxu0 %v7667_v33  ;;  %v7744_v2 = vld [vmem:[#allocation8 + $0x310] sm:$0xf0]  ;;  %v8841_v3 = vld [vmem:[#allocation8 + $0x404] sm:$0xf]  ;;  %v7619_v11 = vor.u32 %v8777_v58, %v7616_v61  ;;  %v7846_v33 = vld [vmem:[#allocation8 + $0x3c8] sm:$0xf] }
 0x314   : > { %4490 = vmatpush.bf16.msra.mxu1 %v7795_v35  ;;  %v7872_v48 = vld [vmem:[#allocation8 + $0x410] sm:$0xf0]  ;;  %v8873_v5 = vld [vmem:[#allocation8 + $0x504] sm:$0xf]  ;;  %v7747_v14 = vor.u32 %v8809_v1, %v7744_v2  ;;  %v8836_v35 = vld [vmem:[#allocation8 + $0x3d4] sm:$0xf0] }
 0x315   : > { %4504 = vmatpush.bf16.msra.mxu2 %v7923_v25  ;;  %v8000_v6 = vld [vmem:[#allocation8 + $0x510] sm:$0xf0]  ;;  %v7875_v15 = vor.u32 %v8841_v3, %v7872_v48  ;;  %v7463_v25 = vor.u32 %v8740_v17, %v7462_v21  ;;  %v7847_v44 = vor.u32 %v8836_v35, %v7846_v33  ;;  %v8768_v22 = vld [vmem:[#allocation8 + $0x1b4] sm:$0xf0]  ;;  %v7702_v45 = vld [vmem:[#allocation8 + $0x2a8] sm:$0xf] }
 0x316   : > { %4518 = vmatpush.bf16.msra.mxu3 %v8051_v40  ;;  %v8003_v18 = vor.u32 %v8873_v5, %v8000_v6  ;;  %v8736_v40 = vld [vmem:[#allocation8 + $0xb4] sm:$0xf0]  ;;  %v7430_v30 = vld [vmem:[#allocation8 + $0x88] sm:$0xf]  ;;  %v7575_v47 = vor.u32 %v8768_v22, %v7574_v41 }
 0x317   : > { %4477 = vmatpush.bf16.msra.mxu0 %v7651_v0  ;;  %v8800_v46 = vld [vmem:[#allocation8 + $0x2b4] sm:$0xf0]  ;;  %v7830_v0 = vld [vmem:[#allocation8 + $0x3a8] sm:$0xf] }
 0x318   : > { %4491 = vmatpush.bf16.msra.mxu1 %v7779_v55  ;;  %v8832_v55 = vld [vmem:[#allocation8 + $0x3b4] sm:$0xf0]  ;;  %v7558_v50 = vld [vmem:[#allocation8 + $0x188] sm:$0xf] }
 0x319   : > { %4505 = vmatpush.bf16.msra.mxu2 %v7907_v24  ;;  %v7447_v24 = vor.u32 %v8736_v40, %v7446_v39  ;;  %v8732_v60 = vld [vmem:[#allocation8 + $0x94] sm:$0xf0]  ;;  %v7686_v53 = vld [vmem:[#allocation8 + $0x288] sm:$0xf]  ;;  %v7831_v54 = vor.u32 %v8832_v55, %v7830_v0 }
 0x31a   : > { %4519 = vmatpush.bf16.msra.mxu3 %v8035_v49  ;;  %v7703_v49 = vor.u32 %v8800_v46, %v7702_v45  ;;  %v8764_v52 = vld [vmem:[#allocation8 + $0x194] sm:$0xf0]  ;;  %v7431_v61 = vor.u32 %v8732_v60, %v7430_v30  ;;  %v7542_v3 = vld [vmem:[#allocation8 + $0x168] sm:$0xf] }
 0x31b   : > { %4478 = vmatpush.bf16.msra.mxu0 %v7635_v57  ;;  %v8796_v56 = vld [vmem:[#allocation8 + $0x294] sm:$0xf0]  ;;  %v7814_v57 = vld [vmem:[#allocation8 + $0x388] sm:$0xf] }
 0x31c   : > { %4492 = vmatpush.bf16.msra.mxu1 %v7763_v62  ;;  %v8828_v58 = vld [vmem:[#allocation8 + $0x394] sm:$0xf0]  ;;  %v7414_v62 = vld [vmem:[#allocation8 + $0x68] sm:$0xf]  ;;  %v7687_v1 = vor.u32 %v8796_v56, %v7686_v53  ;;  %v8742_v53 = vld [vmem:[#allocation8 + $0xec] sm:$0xf] }
 0x31d   : > { %4506 = vmatpush.bf16.msra.mxu2 %v7891_v63  ;;  %v7559_v63 = vor.u32 %v8764_v52, %v7558_v50  ;;  %v8728_v2 = vld [vmem:[#allocation8 + $0x74] sm:$0xf0]  ;;  %v7815_v48 = vor.u32 %v8828_v58, %v7814_v57  ;;  %v7670_v5 = vld [vmem:[#allocation8 + $0x268] sm:$0xf]  ;;  %v8774_v58 = vld [vmem:[#allocation8 + $0x1ec] sm:$0xf] }
 0x31e   : > { %4520 = vmatpush.bf16.msra.mxu3 %v8019_v4  ;;  %v8760_v4 = vld [vmem:[#allocation8 + $0x174] sm:$0xf0]  ;;  %v7798_v7 = vld [vmem:[#allocation8 + $0x368] sm:$0xf]  ;;  %v7415_v10 = vor.u32 %v8728_v2, %v7414_v62 }
 0x31f   : > { %4479 = vmatpush.bf16.msra.mxu0 %v7619_v11  ;;  %v8792_v6 = vld [vmem:[#allocation8 + $0x274] sm:$0xf0]  ;;  %v7543_v11 = vor.u32 %v8760_v4, %v7542_v3  ;;  %v7398_v59 = vld [vmem:[#allocation8 + $0x48] sm:$0xf] }
 0x320   : > { %4493 = vmatpush.bf16.msra.mxu1 %v7747_v14  ;;  %v8824_v9 = vld [vmem:[#allocation8 + $0x374] sm:$0xf0]  ;;  %v7671_v12 = vor.u32 %v8792_v6, %v7670_v5  ;;  %v7526_v14 = vld [vmem:[#allocation8 + $0x148] sm:$0xf] }
 0x321   : > { %4507 = vmatpush.bf16.msra.mxu2 %v7875_v15  ;;  %v8724_v13 = vld [vmem:[#allocation8 + $0x54] sm:$0xf0]  ;;  %v7799_v15 = vor.u32 %v8824_v9, %v7798_v7  ;;  %v7654_v16 = vld [vmem:[#allocation8 + $0x248] sm:$0xf]  ;;  %v8738_v7 = vld [vmem:[#allocation8 + $0xcc] sm:$0xf] }
 0x322   : > { %4521 = vmatpush.bf16.msra.mxu3 %v8003_v18  ;;  %4480 = vmatmul.bf16.vlgmr.msra.gmra.mxu0 %v10428_v27  ;;  %v8756_v42 = vld [vmem:[#allocation8 + $0x154] sm:$0xf0]  ;;  %v7382_v23 = vld [vmem:[#allocation8 + $0x28] sm:$0xf]  ;;  %v7464_v9 = vld [vmem:[#allocation8 + $0xd8] sm:$0xf0] }
 0x323   : > { %4528 = vmatpush.bf16.msrb.mxu0 %v7479_v19  ;;  %4494 = vmatmul.bf16.vlgmr.msra.gmra.mxu1 %v10430_v36  ;;  %v8788_v18 = vld [vmem:[#allocation8 + $0x254] sm:$0xf0]  ;;  %v7782_v19 = vld [vmem:[#allocation8 + $0x348] sm:$0xf]  ;;  %v7527_v21 = vor.u32 %v8756_v42, %v7526_v14 }
 0x324   : > { %4542 = vmatpush.bf16.msrb.mxu1 %v7607_v31  ;;  %4508 = vmatmul.bf16.vlgmr.msra.gmra.mxu2 %v10436_v43  ;;  %v8820_v31 = vld [vmem:[#allocation8 + $0x354] sm:$0xf0]  ;;  %v7655_v17 = vor.u32 %v8788_v18, %v7654_v16  ;;  %v7510_v28 = vld [vmem:[#allocation8 + $0x128] sm:$0xf] }
 0x325   : > { %4556 = vmatpush.bf16.msrb.mxu2 %v7735_v20  ;;  %4522 = vmatmul.bf16.vlgmr.msra.gmra.mxu3 %v10438_v51  ;;  %v7399_v20 = vor.u32 %v8724_v13, %v7398_v59  ;;  %v7783_v29 = vor.u32 %v8820_v31, %v7782_v19  ;;  %v8752_v32 = vld [vmem:[#allocation8 + $0x134] sm:$0xf0]  ;;  %v7638_v33 = vld [vmem:[#allocation8 + $0x228] sm:$0xf]  ;;  %v7467_v13 = vor.u32 %v8738_v7, %v7464_v9  ;;  %v8734_v19 = vld [vmem:[#allocation8 + $0xac] sm:$0xf] }
 0x326   : > { %4570 = vmatpush.bf16.msrb.mxu3 %v7863_v26  ;;  %v8720_v26 = vld [vmem:[#allocation8 + $0x34] sm:$0xf0]  ;;  %v7366_v39 = vld [vmem:[#allocation8 + $0x8] sm:$0xf]  ;;  %v7511_v41 = vor.u32 %v8752_v32, %v7510_v28  ;;  %v7448_v31 = vld [vmem:[#allocation8 + $0xb8] sm:$0xf0] }
 0x327   : > { %4529 = vmatpush.bf16.msrb.mxu0 %v7463_v25  ;;  %v8784_v35 = vld [vmem:[#allocation8 + $0x234] sm:$0xf0]  ;;  %v7766_v25 = vld [vmem:[#allocation8 + $0x328] sm:$0xf] }
 0x328   : > { %4543 = vmatpush.bf16.msrb.mxu1 %v7591_v37  ;;  %v8816_v37 = vld [vmem:[#allocation8 + $0x334] sm:$0xf0]  ;;  %v7494_v22 = vld [vmem:[#allocation8 + $0x108] sm:$0xf] }
 0x329   : > { %4557 = vmatpush.bf16.msrb.mxu2 %v7719_v38  ;;  %v7383_v38 = vor.u32 %v8720_v26, %v7382_v23  ;;  %v8716_v40 = vld [vmem:[#allocation8 + $0x14] sm:$0xf0]  ;;  %v7622_v46 = vld [vmem:[#allocation8 + $0x208] sm:$0xf]  ;;  %v7767_v0 = vor.u32 %v8816_v37, %v7766_v25  ;;  %v7451_v26 = vor.u32 %v8734_v19, %v7448_v31  ;;  %v8730_v25 = vld [vmem:[#allocation8 + $0x8c] sm:$0xf] }
 0x32a   : > { %4571 = vmatpush.bf16.msrb.mxu3 %v7847_v44  ;;  %v7639_v44 = vor.u32 %v8784_v35, %v7638_v33  ;;  %v8748_v45 = vld [vmem:[#allocation8 + $0x114] sm:$0xf0]  ;;  %v7990_v60 = vld [vmem:[#allocation8 + $0x4e8] sm:$0xf]  ;;  %v7367_v50 = vor.u32 %v8716_v40, %v7366_v39  ;;  %v7432_v37 = vld [vmem:[#allocation8 + $0x98] sm:$0xf0] }
 0x32b   : > { %4530 = vmatpush.bf16.msrb.mxu0 %v7447_v24  ;;  %v8780_v55 = vld [vmem:[#allocation8 + $0x214] sm:$0xf0]  ;;  %v7750_v24 = vld [vmem:[#allocation8 + $0x308] sm:$0xf]  ;;  %v7495_v56 = vor.u32 %v8748_v45, %v7494_v22  ;;  %v7560_v39 = vld [vmem:[#allocation8 + $0x198] sm:$0xf0] }
 0x32c   : > { %4544 = vmatpush.bf16.msrb.mxu1 %v7575_v47  ;;  %v8812_v30 = vld [vmem:[#allocation8 + $0x314] sm:$0xf0]  ;;  %v7623_v57 = vor.u32 %v8780_v55, %v7622_v46  ;;  %v7974_v3 = vld [vmem:[#allocation8 + $0x4c8] sm:$0xf]  ;;  %v8714_v31 = vld [vmem:[#allocation8 + $0xc] sm:$0xf] }
 0x32d   : > { %4558 = vmatpush.bf16.msrb.mxu2 %v7703_v49  ;;  %v8872_v47 = vld [vmem:[#allocation8 + $0x4f4] sm:$0xf0]  ;;  %v8118_v49 = vld [vmem:[#allocation8 + $0x5e8] sm:$0xf]  ;;  %v7751_v62 = vor.u32 %v8812_v30, %v7750_v24  ;;  %v8726_v24 = vld [vmem:[#allocation8 + $0x6c] sm:$0xf] }
 0x32e   : > { %4572 = vmatpush.bf16.msrb.mxu3 %v7831_v54  ;;  %v8904_v52 = vld [vmem:[#allocation8 + $0x5f4] sm:$0xf0]  ;;  %v7480_v54 = vld [vmem:[#allocation8 + $0xf8] sm:$0xf0]  ;;  %v7958_v14 = vld [vmem:[#allocation8 + $0x4a8] sm:$0xf] }
 0x32f   : > { %4531 = vmatpush.bf16.msrb.mxu0 %v7431_v61  ;;  %v7608_v61 = vld [vmem:[#allocation8 + $0x1f8] sm:$0xf0]  ;;  %v7483_v2 = vor.u32 %v8742_v53, %v7480_v54  ;;  %v8868_v4 = vld [vmem:[#allocation8 + $0x4d4] sm:$0xf0]  ;;  %v8086_v42 = vld [vmem:[#allocation8 + $0x5a8] sm:$0xf] }
 0x330   : > { %4545 = vmatpush.bf16.msrb.mxu1 %v7559_v63  ;;  %v7991_v63 = vor.u32 %v8872_v47, %v7990_v60  ;;  %v7611_v5 = vor.u32 %v8774_v58, %v7608_v61  ;;  %v8900_v6 = vld [vmem:[#allocation8 + $0x5d4] sm:$0xf0]  ;;  %v7942_v28 = vld [vmem:[#allocation8 + $0x488] sm:$0xf]  ;;  %v7416_v30 = vld [vmem:[#allocation8 + $0x78] sm:$0xf0] }
 0x331   : > { %4559 = vmatpush.bf16.msrb.mxu2 %v7687_v1  ;;  %v8119_v1 = vor.u32 %v8904_v52, %v8118_v49  ;;  %v8896_v18 = vld [vmem:[#allocation8 + $0x5b4] sm:$0xf0]  ;;  %v8070_v32 = vld [vmem:[#allocation8 + $0x588] sm:$0xf]  ;;  %v8758_v60 = vld [vmem:[#allocation8 + $0x16c] sm:$0xf]  ;;  %v7419_v52 = vor.u32 %v8726_v24, %v7416_v30 }
 0x332   : > { %4573 = vmatpush.bf16.msrb.mxu3 %v7815_v48  ;;  %v8102_v48 = vld [vmem:[#allocation8 + $0x5c8] sm:$0xf]  ;;  %v8087_v23 = vor.u32 %v8896_v18, %v8086_v42  ;;  %v8892_v35 = vld [vmem:[#allocation8 + $0x594] sm:$0xf0]  ;;  %v7544_v47 = vld [vmem:[#allocation8 + $0x178] sm:$0xf0] }
 0x333   : > { %4532 = vmatpush.bf16.msrb.mxu0 %v7415_v10  ;;  %v8770_v10 = vld [vmem:[#allocation8 + $0x1cc] sm:$0xf]  ;;  %v8103_v59 = vor.u32 %v8900_v6, %v8102_v48  ;;  %v7926_v22 = vld [vmem:[#allocation8 + $0x468] sm:$0xf]  ;;  %v8856_v45 = vld [vmem:[#allocation8 + $0x474] sm:$0xf0] }
 0x334   : > { %4546 = vmatpush.bf16.msrb.mxu1 %v7543_v11  ;;  %v7592_v11 = vld [vmem:[#allocation8 + $0x1d8] sm:$0xf0]  ;;  %v8054_v46 = vld [vmem:[#allocation8 + $0x568] sm:$0xf]  ;;  %v8888_v55 = vld [vmem:[#allocation8 + $0x574] sm:$0xf0]  ;;  %v7927_v49 = vor.u32 %v8856_v45, %v7926_v22 }
 0x335   : > { %4560 = vmatpush.bf16.msrb.mxu2 %v7671_v12  ;;  %v7975_v12 = vor.u32 %v8868_v4, %v7974_v3  ;;  %v7595_v16 = vor.u32 %v8770_v10, %v7592_v11  ;;  %v7910_v53 = vld [vmem:[#allocation8 + $0x448] sm:$0xf]  ;;  %v8852_v54 = vld [vmem:[#allocation8 + $0x454] sm:$0xf0]  ;;  %v8722_v61 = vld [vmem:[#allocation8 + $0x4c] sm:$0xf] }
 0x336   : > { %4574 = vmatpush.bf16.msrb.mxu3 %v7799_v15  ;;  %v8864_v15 = vld [vmem:[#allocation8 + $0x4b4] sm:$0xf0]  ;;  %v7894_v48 = vld [vmem:[#allocation8 + $0x428] sm:$0xf]  ;;  %v8718_v10 = vld [vmem:[#allocation8 + $0x2c] sm:$0xf] }
 0x337   : > { %4533 = vmatpush.bf16.msrb.mxu0 %v7399_v20  ;;  %v8766_v20 = vld [vmem:[#allocation8 + $0x1ac] sm:$0xf]  ;;  %v8884_v58 = vld [vmem:[#allocation8 + $0x554] sm:$0xf0]  ;;  %v8022_v6 = vld [vmem:[#allocation8 + $0x528] sm:$0xf] }
 0x338   : > { %4547 = vmatpush.bf16.msrb.mxu1 %v7527_v21  ;;  %v7576_v21 = vld [vmem:[#allocation8 + $0x1b8] sm:$0xf0]  ;;  %v8880_v9 = vld [vmem:[#allocation8 + $0x534] sm:$0xf0]  ;;  %v8006_v18 = vld [vmem:[#allocation8 + $0x508] sm:$0xf] }
 0x339   : > { %4561 = vmatpush.bf16.msrb.mxu2 %v7655_v17  ;;  %v7959_v17 = vor.u32 %v8864_v15, %v7958_v14  ;;  %v7579_v33 = vor.u32 %v8766_v20, %v7576_v21  ;;  %v7384_v11 = vld [vmem:[#allocation8 + $0x38] sm:$0xf0]  ;;  %v7878_v14 = vld [vmem:[#allocation8 + $0x408] sm:$0xf]  ;;  %v8844_v15 = vld [vmem:[#allocation8 + $0x414] sm:$0xf0]  ;;  %v8023_v42 = vor.u32 %v8880_v9, %v8022_v6 }
 0x33a   : > { %4575 = vmatpush.bf16.msrb.mxu3 %v7783_v29  ;;  %v8860_v29 = vld [vmem:[#allocation8 + $0x494] sm:$0xf0]  ;;  %v7368_v21 = vld [vmem:[#allocation8 + $0x18] sm:$0xf0]  ;;  %v8794_v6 = vld [vmem:[#allocation8 + $0x28c] sm:$0xf] }
 0x33b   : > { %4534 = vmatpush.bf16.msrb.mxu0 %v7383_v38  ;;  %v8762_v38 = vld [vmem:[#allocation8 + $0x18c] sm:$0xf]  ;;  %v7943_v40 = vor.u32 %v8860_v29, %v7942_v28  ;;  %v8876_v19 = vld [vmem:[#allocation8 + $0x514] sm:$0xf0]  ;;  %v7736_v28 = vld [vmem:[#allocation8 + $0x2f8] sm:$0xf0] }
 0x33c   : > { %4548 = vmatpush.bf16.msrb.mxu1 %v7511_v41  ;;  %v8071_v41 = vor.u32 %v8892_v35, %v8070_v32  ;;  %v8838_v29 = vld [vmem:[#allocation8 + $0x3ec] sm:$0xf]  ;;  %v7879_v32 = vor.u32 %v8844_v15, %v7878_v14  ;;  %v7848_v30 = vld [vmem:[#allocation8 + $0x3d8] sm:$0xf0] }
 0x33d   : > { %4562 = vmatpush.bf16.msrb.mxu2 %v7639_v44  ;;  %v7435_v44 = vor.u32 %v8730_v25, %v7432_v37  ;;  %v8870_v35 = vld [vmem:[#allocation8 + $0x4ec] sm:$0xf]  ;;  %v7992_v25 = vld [vmem:[#allocation8 + $0x4f8] sm:$0xf0]  ;;  %v8007_v37 = vor.u32 %v8876_v19, %v8006_v18 }
 0x33e   : > { %4576 = vmatpush.bf16.msrb.mxu3 %v7767_v0  ;;  %v7563_v0 = vor.u32 %v8762_v38, %v7560_v39  ;;  %v7371_v38 = vor.u32 %v8714_v31, %v7368_v21  ;;  %v8902_v39 = vld [vmem:[#allocation8 + $0x5ec] sm:$0xf]  ;;  %v7995_v45 = vor.u32 %v8870_v35, %v7992_v25  ;;  %v7800_v31 = vld [vmem:[#allocation8 + $0x378] sm:$0xf0] }
 0x33f   : > { %4535 = vmatpush.bf16.msrb.mxu0 %v7367_v50  ;;  %v8055_v50 = vor.u32 %v8888_v55, %v8054_v46  ;;  %v8802_v46 = vld [vmem:[#allocation8 + $0x2cc] sm:$0xf]  ;;  %v7928_v21 = vld [vmem:[#allocation8 + $0x478] sm:$0xf0] }
 0x340   : > { %4549 = vmatpush.bf16.msrb.mxu1 %v7495_v56  ;;  %v8038_v56 = vld [vmem:[#allocation8 + $0x548] sm:$0xf]  ;;  %v8834_v55 = vld [vmem:[#allocation8 + $0x3cc] sm:$0xf] }
 0x341   : > { %4563 = vmatpush.bf16.msrb.mxu2 %v7623_v57  ;;  %v7547_v57 = vor.u32 %v8758_v60, %v7544_v47  ;;  %v8039_v3 = vor.u32 %v8884_v58, %v8038_v56  ;;  %v8866_v60 = vld [vmem:[#allocation8 + $0x4cc] sm:$0xf]  ;;  %v7976_v47 = vld [vmem:[#allocation8 + $0x4d8] sm:$0xf0] }
 0x342   : > { %4577 = vmatpush.bf16.msrb.mxu3 %v7751_v62  ;;  %4536 = vmatmul.bf16.vlgmr.msrb.gmra.mxu0 %v10420_v8  ;;  %v7400_v62 = vld [vmem:[#allocation8 + $0x58] sm:$0xf0]  ;;  %v8798_v56 = vld [vmem:[#allocation8 + $0x2ac] sm:$0xf] }
 0x343   : > { %4584 = vmatpush.bf16.msra.mxu0 %v7991_v63  ;;  %4550 = vmatmul.bf16.vlgmr.msrb.gmra.mxu1 %v10424_v34  ;;  %v8754_v63 = vld [vmem:[#allocation8 + $0x14c] sm:$0xf]  ;;  %v7403_v4 = vor.u32 %v8722_v61, %v7400_v62  ;;  %v7832_v62 = vld [vmem:[#allocation8 + $0x3b8] sm:$0xf0] }
 0x344   : > { %4598 = vmatpush.bf16.msra.mxu1 %v8119_v1  ;;  %4564 = vmatmul.bf16.vlgmr.msrb.gmra.mxu2 %v10428_v27  ;;  %v7528_v1 = vld [vmem:[#allocation8 + $0x158] sm:$0xf0]  ;;  %v8830_v58 = vld [vmem:[#allocation8 + $0x3ac] sm:$0xf] }
 0x345   : > { %4612 = vmatpush.bf16.msra.mxu2 %v7483_v2  ;;  %4578 = vmatmul.bf16.vlgmr.msrb.gmra.mxu3 %v10430_v36  ;;  %v7911_v2 = vor.u32 %v8852_v54, %v7910_v53  ;;  %v7531_v7 = vor.u32 %v8754_v63, %v7528_v1  ;;  %v7851_v53 = vor.u32 %v8834_v55, %v7848_v30  ;;  %v8862_v63 = vld [vmem:[#allocation8 + $0x4ac] sm:$0xf]  ;;  %v7960_v1 = vld [vmem:[#allocation8 + $0x4b8] sm:$0xf0] }
 0x346   : > { %4626 = vmatpush.bf16.msra.mxu3 %v7611_v5  ;;  %v8848_v5 = vld [vmem:[#allocation8 + $0x434] sm:$0xf0]  ;;  %v7979_v54 = vor.u32 %v8866_v60, %v7976_v47  ;;  %v8826_v9 = vld [vmem:[#allocation8 + $0x38c] sm:$0xf]  ;;  %v7768_v60 = vld [vmem:[#allocation8 + $0x338] sm:$0xf0] }
 0x347   : > { %4585 = vmatpush.bf16.msra.mxu0 %v7975_v12  ;;  %v8750_v12 = vld [vmem:[#allocation8 + $0x12c] sm:$0xf] }
 0x348   : > { %4599 = vmatpush.bf16.msra.mxu1 %v8103_v59  ;;  %v7512_v59 = vld [vmem:[#allocation8 + $0x138] sm:$0xf0]  ;;  %v8822_v18 = vld [vmem:[#allocation8 + $0x36c] sm:$0xf] }
 0x349   : > { %4613 = vmatpush.bf16.msra.mxu2 %v7467_v13  ;;  %v7895_v13 = vor.u32 %v8848_v5, %v7894_v48  ;;  %v7515_v20 = vor.u32 %v8750_v12, %v7512_v59  ;;  %v7835_v48 = vor.u32 %v8830_v58, %v7832_v62  ;;  %v7963_v5 = vor.u32 %v8862_v63, %v7960_v1  ;;  %v8858_v12 = vld [vmem:[#allocation8 + $0x48c] sm:$0xf]  ;;  %v7944_v59 = vld [vmem:[#allocation8 + $0x498] sm:$0xf0] }
 0x34a   : > { %4627 = vmatpush.bf16.msra.mxu3 %v7595_v16  ;;  %v7387_v16 = vor.u32 %v8718_v10, %v7384_v11  ;;  %v7816_v11 = vld [vmem:[#allocation8 + $0x398] sm:$0xf0]  ;;  %v8818_v35 = vld [vmem:[#allocation8 + $0x34c] sm:$0xf] }
 0x34b   : > { %4586 = vmatpush.bf16.msra.mxu0 %v7959_v17  ;;  %v8746_v17 = vld [vmem:[#allocation8 + $0x10c] sm:$0xf]  ;;  %v7819_v15 = vor.u32 %v8826_v9, %v7816_v11  ;;  %v7624_v58 = vld [vmem:[#allocation8 + $0x218] sm:$0xf0]  ;;  %v4793_v11 = vld [vmem:[#allocation11] sm:$0x3] }
 0x34c   : > { %4600 = vmatpush.bf16.msra.mxu1 %v8087_v23  ;;  %v7496_v23 = vld [vmem:[#allocation8 + $0x118] sm:$0xf0]  ;;  %v8814_v55 = vld [vmem:[#allocation8 + $0x32c] sm:$0xf] }
 0x34d   : > { %4614 = vmatpush.bf16.msra.mxu2 %v7451_v26  ;;  %v8806_v26 = vld [vmem:[#allocation8 + $0x2ec] sm:$0xf]  ;;  %v7752_v1 = vld [vmem:[#allocation8 + $0x318] sm:$0xf0] }
 0x34e   : > { %4628 = vmatpush.bf16.msra.mxu3 %v7579_v33  ;;  %v7864_v33 = vld [vmem:[#allocation8 + $0x3f8] sm:$0xf0]  ;;  %v8846_v47 = vld [vmem:[#allocation8 + $0x42c] sm:$0xf] }
 0x34f   : > { %4587 = vmatpush.bf16.msra.mxu0 %v7943_v40  ;;  %v8120_v40 = vld [vmem:[#allocation8 + $0x5f8] sm:$0xf0]  ;;  %v7867_v22 = vor.u32 %v8838_v29, %v7864_v33 }
 0x350   : > { %4601 = vmatpush.bf16.msra.mxu1 %v8071_v41  ;;  %v7499_v41 = vor.u32 %v8746_v17, %v7496_v23  ;;  %v8123_v24 = vor.u32 %v8902_v39, %v8120_v40  ;;  %v8886_v17 = vld [vmem:[#allocation8 + $0x56c] sm:$0xf]  ;;  %v8056_v23 = vld [vmem:[#allocation8 + $0x578] sm:$0xf0] }
 0x351   : > { %4615 = vmatpush.bf16.msra.mxu2 %v7435_v44  ;;  %v7739_v44 = vor.u32 %v8806_v26, %v7736_v28  ;;  %v7803_v28 = vor.u32 %v8822_v18, %v7800_v31  ;;  %v7656_v33 = vld [vmem:[#allocation8 + $0x258] sm:$0xf0]  ;;  %v8059_v25 = vor.u32 %v8886_v17, %v8056_v23  ;;  %v8882_v40 = vld [vmem:[#allocation8 + $0x54c] sm:$0xf] }
 0x352   : > { %4629 = vmatpush.bf16.msra.mxu3 %v7563_v0  ;;  %v7720_v0 = vld [vmem:[#allocation8 + $0x2d8] sm:$0xf0]  ;;  %v8910_v18 = vld [vmem:[#allocation10 + $0x28] sm:$0xff] }
 0x353   : > { %4588 = vmatpush.bf16.msra.mxu0 %v7927_v49  ;;  %v8898_v49 = vld [vmem:[#allocation8 + $0x5cc] sm:$0xf]  ;;  %v7912_v39 = vld [vmem:[#allocation8 + $0x458] sm:$0xf0] }
 0x354   : > { %4602 = vmatpush.bf16.msra.mxu1 %v8055_v50  ;;  %v8104_v50 = vld [vmem:[#allocation8 + $0x5d8] sm:$0xf0] }
 0x355   : > { %4616 = vmatpush.bf16.msra.mxu2 %v7419_v52  ;;  %v7723_v52 = vor.u32 %v8802_v46, %v7720_v0  ;;  %v8107_v61 = vor.u32 %v8898_v49, %v8104_v50  ;;  %v8782_v46 = vld [vmem:[#allocation8 + $0x22c] sm:$0xf]  ;;  %v7640_v0 = vld [vmem:[#allocation8 + $0x238] sm:$0xf0] }
 0x356   : > { %4630 = vmatpush.bf16.msra.mxu3 %v7547_v57  ;;  %v7704_v57 = vld [vmem:[#allocation8 + $0x2b8] sm:$0xf0]  ;;  %v8878_v50 = vld [vmem:[#allocation8 + $0x52c] sm:$0xf] }
 0x357   : > { %4589 = vmatpush.bf16.msra.mxu0 %v7911_v2  ;;  %v8894_v2 = vld [vmem:[#allocation8 + $0x5ac] sm:$0xf]  ;;  %v7896_v49 = vld [vmem:[#allocation8 + $0x438] sm:$0xf0] }
 0x358   : > { %4603 = vmatpush.bf16.msra.mxu1 %v8039_v3  ;;  %v8088_v3 = vld [vmem:[#allocation8 + $0x5b8] sm:$0xf0] }
 0x359   : > { %4617 = vmatpush.bf16.msra.mxu2 %v7403_v4  ;;  %v7707_v4 = vor.u32 %v8798_v56, %v7704_v57  ;;  %v8091_v10 = vor.u32 %v8894_v2, %v8088_v3  ;;  %v7899_v56 = vor.u32 %v8846_v47, %v7896_v49  ;;  %v8778_v57 = vld [vmem:[#allocation8 + $0x20c] sm:$0xf]  ;;  %v7880_v3 = vld [vmem:[#allocation8 + $0x418] sm:$0xf0] }
 0x35a   : > { %4631 = vmatpush.bf16.msra.mxu3 %v7531_v7  ;;  %v7688_v7 = vld [vmem:[#allocation8 + $0x298] sm:$0xf0]  ;;  %v8842_v2 = vld [vmem:[#allocation8 + $0x40c] sm:$0xf] }
 0x35b   : > { %4590 = vmatpush.bf16.msra.mxu0 %v7895_v13  ;;  %v8890_v13 = vld [vmem:[#allocation8 + $0x58c] sm:$0xf]  ;;  %v7691_v14 = vor.u32 %v8794_v6, %v7688_v7  ;;  %v7883_v7 = vor.u32 %v8842_v2, %v7880_v3 }
 0x35c   : > { %4604 = vmatpush.bf16.msra.mxu1 %v8023_v42  ;;  %v8790_v42 = vld [vmem:[#allocation8 + $0x26c] sm:$0xf] }
 0x35d   : > { %4618 = vmatpush.bf16.msra.mxu2 %v7387_v16  ;;  %v7672_v16 = vld [vmem:[#allocation8 + $0x278] sm:$0xf0] }
 0x35e   : > { %4632 = vmatpush.bf16.msra.mxu3 %v7515_v20  ;;  %v8854_v20 = vld [vmem:[#allocation8 + $0x46c] sm:$0xf]  ;;  %v7675_v26 = vor.u32 %v8790_v42, %v7672_v16  ;;  %v8919_v42 = vld [vmem:[#allocation10 + $0x70] sm:$0xff] }
 0x35f   : > { %4591 = vmatpush.bf16.msra.mxu0 %v7879_v32  ;;  %v7931_v29 = vor.u32 %v8854_v20, %v7928_v21  ;;  %v8786_v32 = vld [vmem:[#allocation8 + $0x24c] sm:$0xf] }
 0x360   : > { %4605 = vmatpush.bf16.msra.mxu1 %v8007_v37  ;;  %v7784_v37 = vld [vmem:[#allocation8 + $0x358] sm:$0xf0]  ;;  %v8918_v21 = vld [vmem:[#allocation10 + $0x68] sm:$0xff] }
 0x361   : > { %4619 = vmatpush.bf16.msra.mxu2 %v7371_v38  ;;  %v8850_v38 = vld [vmem:[#allocation8 + $0x44c] sm:$0xf] }
 0x362   : > { %4633 = vmatpush.bf16.msra.mxu3 %v7499_v41  ;;  %4592 = vmatmul.bf16.vlgmr.msra.gmra.mxu0 %v10436_v43  ;;  %v8040_v41 = vld [vmem:[#allocation8 + $0x558] sm:$0xf0] }
 0x363   : > { %4640 = vmatpush.bf16.msrb.mxu0 %v7739_v44  ;;  %4606 = vmatmul.bf16.vlgmr.msra.gmra.mxu1 %v10438_v51  ;;  %v7659_v44 = vor.u32 %v8786_v32, %v7656_v33  ;;  %v8908_v32 = vld [vmem:[#allocation10 + $0x18] sm:$0xff] }
 0x364   : > { %4654 = vmatpush.bf16.msrb.mxu1 %v7867_v22  ;;  %4620 = vmatmul.bf16.vlgmr.msra.gmra.mxu2 %v10420_v8  ;;  %v8072_v8 = vld [vmem:[#allocation8 + $0x598] sm:$0xf0]  ;;  %v7787_v22 = vor.u32 %v8818_v35, %v7784_v37 }
 0x365   : > { %4668 = vmatpush.bf16.msrb.mxu2 %v7995_v45  ;;  %4634 = vmatmul.bf16.vlgmr.msra.gmra.mxu3 %v10424_v34  ;;  %v7947_v34 = vor.u32 %v8858_v12, %v7944_v59  ;;  %v8075_v19 = vor.u32 %v8890_v13, %v8072_v8  ;;  %v7915_v45 = vor.u32 %v8850_v38, %v7912_v39  ;;  %v8920_v12 = vld [vmem:[#allocation10 + $0x78] sm:$0xff]  ;;  %v8911_v8 = vld [vmem:[#allocation10 + $0x30] sm:$0xff] }
 0x366   : > { %4682 = vmatpush.bf16.msrb.mxu3 %v8123_v24  ;;  %v8043_v24 = vor.u32 %v8882_v40, %v8040_v41  ;;  %v10456_v59 = vld [vmem:[#allocation14 + $0x6] sm:$0xf]  ;;  %v8907_v39 = vld [vmem:[#allocation10 + $0x10] sm:$0xff] }
 0x367   : > { %4641 = vmatpush.bf16.msrb.mxu0 %v7723_v52  ;;  %v8024_v52 = vld [vmem:[#allocation8 + $0x538] sm:$0xf0] }
 0x368   : > { %4655 = vmatpush.bf16.msrb.mxu1 %v7851_v53  ;;  %v7643_v53 = vor.u32 %v8782_v46, %v7640_v0  ;;  %v8027_v62 = vor.u32 %v8878_v50, %v8024_v52  ;;  %v8916_v37 = vld [vmem:[#allocation10 + $0x58] sm:$0xff]  ;;  %v8913_v52 = vld [vmem:[#allocation10 + $0x40] sm:$0xff] }
 0x369   : > { %4669 = vmatpush.bf16.msrb.mxu2 %v7979_v54  ;;  %v7771_v54 = vor.u32 %v8814_v55, %v7768_v60  ;;  %v8914_v55 = vld [vmem:[#allocation10 + $0x48] sm:$0xff] }
 0x36a   : > { %4683 = vmatpush.bf16.msrb.mxu3 %v8107_v61  ;;  %v4369_v30 = vpop.f32.mrf.mxu0  ;;  %v8810_v61 = vld [vmem:[#allocation8 + $0x30c] sm:$0xf] }
 0x36b   : > { %4642 = vmatpush.bf16.msrb.mxu0 %v7707_v4  ;;  %v8874_v4 = vld [vmem:[#allocation8 + $0x50c] sm:$0xf]  ;;  %v7755_v6 = vor.u32 %v8810_v61, %v7752_v1  ;;  %v8928_v61 = vld [vmem:[#allocation10 + $0xb8] sm:$0xff]  ;;  %v8927_v1 = vld [vmem:[#allocation10 + $0xb0] sm:$0xff] }
 0x36c   : > { %4656 = vmatpush.bf16.msrb.mxu1 %v7835_v48  ;;  %v4383_v63 = vpop.f32.mrf.mxu1  ;;  %v8008_v48 = vld [vmem:[#allocation8 + $0x518] sm:$0xf0] }
 0x36d   : > { %4670 = vmatpush.bf16.msrb.mxu2 %v7963_v5  ;;  %v7627_v5 = vor.u32 %v8778_v57, %v7624_v58  ;;  %v8011_v9 = vor.u32 %v8874_v4, %v8008_v48 }
 0x36e   : > { %4684 = vmatpush.bf16.msrb.mxu3 %v8091_v10  ;;  %v8912_v10 = vld [vmem:[#allocation10 + $0x38] sm:$0xff] }
 0x36f   : > { %4643 = vmatpush.bf16.msrb.mxu0 %v7691_v14 }
 0x370   : > { %4657 = vmatpush.bf16.msrb.mxu1 %v7819_v15  ;;  %v4801_v15 = vsel %vm4799_vm0, %v4793_v11, 0 }
 0x371   : > { %4671 = vmatpush.bf16.msrb.mxu2 %v7947_v34  ;;  %v3392_v34 = vperm.slane %v10456_v59, 0 }
 0x372   : > { %4685 = vmatpush.bf16.msrb.mxu3 %v8075_v19  ;;  %v4371_v13 = vpop.f32.mrf.mxu0 }
 0x373   : > { %4644 = vmatpush.bf16.msrb.mxu0 %v7675_v26  ;;  %v4370_v31 = vadd.f32 %v4369_v30, %v3392_v34  ;;  %v4372_v20 = vadd.f32 %v4371_v13, %v3392_v34  ;;  %v8905_v30 = vld [vmem:[#allocation10] sm:$0xff] }
 0x374   : > { %4658 = vmatpush.bf16.msrb.mxu1 %v7803_v28  ;;  %v4385_v16 = vpop.f32.mrf.mxu1 }
 0x375   : > { %4672 = vmatpush.bf16.msrb.mxu2 %v7931_v29  ;;  %v4397_v14 = vpop.f32.mrf.mxu2  ;;  %v4384_v23 = vadd.f32 %v4383_v63, %v4370_v31  ;;  %v4386_v26 = vadd.f32 %v4385_v16, %v4372_v20  ;;  %v8924_v31 = vld [vmem:[#allocation10 + $0x98] sm:$0xff]  ;;  %v8923_v20 = vld [vmem:[#allocation10 + $0x90] sm:$0xff] }
 0x376   : > { %4686 = vmatpush.bf16.msrb.mxu3 %v8059_v25  ;;  %v4411_v19 = vpop.f32.mrf.mxu3 }
 0x377   : > { %4645 = vmatpush.bf16.msrb.mxu0 %v7659_v44  ;;  %v4398_v33 = vadd.f32 %v4397_v14, %v4384_v23  ;;  %v8915_v44 = vld [vmem:[#allocation10 + $0x50] sm:$0xff] }
 0x378   : > { %4659 = vmatpush.bf16.msrb.mxu1 %v7787_v22 }
 0x379   : > { %4673 = vmatpush.bf16.msrb.mxu2 %v7915_v45  ;;  %v4412_v40 = vadd.f32 %v4411_v19, %v4398_v33  ;;  %v8906_v45 = vld [vmem:[#allocation10 + $0x8] sm:$0xff] }
 0x37a   : > { %4687 = vmatpush.bf16.msrb.mxu3 %v8043_v24 }
 0x37b   : > { %4646 = vmatpush.bf16.msrb.mxu0 %v7643_v53 }
 0x37c   : > { %4660 = vmatpush.bf16.msrb.mxu1 %v7771_v54  ;;  %v3393_v54 = vperm.slane %v10456_v59, 1 }
 0x37d   : > { %4674 = vmatpush.bf16.msrb.mxu2 %v7899_v56  ;;  %v4399_v28 = vpop.f32.mrf.mxu2 }
 0x37e   : > { %4688 = vmatpush.bf16.msrb.mxu3 %v8027_v62  ;;  %v4400_v35 = vadd.f32 %v4399_v28, %v4386_v26  ;;  %v4413_v38 = vpop.f32.mrf.mxu3  ;;  %v8936_v26 = vld [vmem:[#allocation10 + $0xf8] sm:$0xff]  ;;  %v8935_v28 = vld [vmem:[#allocation10 + $0xf0] sm:$0xff] }
 0x37f   : > { %4647 = vmatpush.bf16.msrb.mxu0 %v7627_v5  ;;  %v4425_v17 = vpop.f32.mrf.mxu0 }
 0x380   : > { %4661 = vmatpush.bf16.msrb.mxu1 %v7755_v6  ;;  %v4439_v29 = vpop.f32.mrf.mxu1  ;;  %v4414_v41 = vadd.f32 %v4413_v38, %v4400_v35  ;;  %v4426_v46 = vadd.f32 %v4425_v17, %v4412_v40  ;;  %v8926_v6 = vld [vmem:[#allocation10 + $0xa8] sm:$0xff] }
 0x381   : > { %4675 = vmatpush.bf16.msrb.mxu2 %v7883_v7 }
 0x382   : > { %4689 = vmatpush.bf16.msrb.mxu3 %v8011_v9  ;;  %4648 = vmatmul.bf16.vlgmr.msrb.gmra.mxu0 %v10428_v27  ;;  %v8909_v27 = vld [vmem:[#allocation10 + $0x20] sm:$0xff]  ;;  %v4440_v47 = vadd.f32 %v4439_v29, %v4426_v46 }
 0x383   : > { %4662 = vmatmul.bf16.vlgmr.msrb.gmra.mxu1 %v10430_v36  ;;  %4810 = vmatpush.bf16.msra.mxu0 %v4801_v15  ;;  %v8917_v36 = vld [vmem:[#allocation10 + $0x60] sm:$0xff] }
 0x384   : > { %5009 = vmatpush.bf16.msra.mxu1 %v8912_v10  ;;  %4676 = vmatmul.bf16.vlgmr.msrb.gmra.mxu2 %v10436_v43  ;;  %v4696_v43 = vld [vmem:[%s10747_s1] sm:$0xff]  ;;  %v8925_v10 = vld [vmem:[#allocation10 + $0xa0] sm:$0xff] }
 0x385   : > { %5023 = vmatpush.bf16.msra.mxu2 %v8920_v12  ;;  %4690 = vmatmul.bf16.vlgmr.msrb.gmra.mxu3 %v10438_v51  ;;  %v4697_v51 = vld [vmem:[%s10747_s1 + $0x8] sm:$0xff] }
 0x386   : > { %v4794_v25 = vpack.c.bf16 %v4697_v51, %v4696_v43  ;;  %5037 = vmatpush.bf16.msra.mxu3 %v8928_v61 }
 0x387   : > { %v4427_v22 = vpop.f32.mrf.mxu0  ;;  %v4453_v60 = vpop.f32.mrf.mxu2  ;;  %5051 = vmatpush.bf16.msrb.mxu0 %v8936_v26 }
 0x388   : > { %5010 = vmatpush.bf16.msra.mxu1 %v8911_v8  ;;  %v4428_v0 = vadd.f32 %v4427_v22, %v4414_v41  ;;  %v4441_v24 = vpop.f32.mrf.mxu1  ;;  %v4467_v50 = vpop.f32.mrf.mxu3  ;;  %v4454_v57 = vadd.f32 %v4453_v60, %v3393_v54  ;;  %v8933_v41 = vld [vmem:[#allocation10 + $0xe0] sm:$0xff]  ;;  %v8931_v60 = vld [vmem:[#allocation10 + $0xd0] sm:$0xff] }
 0x389   : > { %5024 = vmatpush.bf16.msra.mxu2 %v8919_v42 }
 0x38a   : > { %v4442_v49 = vadd.f32 %v4441_v24, %v4428_v0  ;;  %v4468_v2 = vadd.f32 %v4467_v50, %v4454_v57  ;;  %5038 = vmatpush.bf16.msra.mxu3 %v8927_v1  ;;  %v8929_v57 = vld [vmem:[#allocation10 + $0xc0] sm:$0xff] }
 0x38b   : > { %5052 = vmatpush.bf16.msrb.mxu0 %v8935_v28 }
 0x38c   : > { %5011 = vmatpush.bf16.msra.mxu1 %v8910_v18  ;;  %v4789_v53 = vpack.c.bf16 %v4442_v49, %v4440_v47 }
 0x38d   : > { %5025 = vmatpush.bf16.msra.mxu2 %v8918_v21  ;;  %v8922_v21 = vld [vmem:[#allocation10 + $0x88] sm:$0xff] }
 0x38e   : > { %5039 = vmatpush.bf16.msra.mxu3 %v8926_v6 }
 0x38f   : > { %v4455_v56 = vpop.f32.mrf.mxu2 }
 0x390   : > { %5012 = vmatpush.bf16.msra.mxu1 %v8909_v27  ;;  %v4469_v58 = vpop.f32.mrf.mxu3  ;;  %v4456_v3 = vadd.f32 %v4455_v56, %v3393_v54  ;;  %v8921_v27 = vld [vmem:[#allocation10 + $0x80] sm:$0xff]  ;;  %v8930_v54 = vld [vmem:[#allocation10 + $0xc8] sm:$0xff] }
 0x391   : > { %5026 = vmatpush.bf16.msra.mxu2 %v8917_v36  ;;  %v3394_v36 = vperm.slane %v10456_v59, 2 }
 0x392   : > { %8124 = vmatmul.msk.bf16.vlgmr.msra.gmra.mxu0 %vm4795_vm1, %v4794_v25  ;;  %v4470_v4 = vadd.f32 %v4469_v58, %v4456_v3  ;;  %5040 = vmatpush.bf16.msra.mxu3 %v8925_v10 }
 0x394   : > { %5013 = vmatpush.bf16.msra.mxu1 %v8908_v32  ;;  %v8934_v32 = vld [vmem:[#allocation10 + $0xe8] sm:$0xff] }
 0x395   : > { %5027 = vmatpush.bf16.msra.mxu2 %v8916_v37  ;;  %5053 = vmatpush.bf16.msrb.mxu0 %v8934_v32 }
 0x396   : > { %5041 = vmatpush.bf16.msra.mxu3 %v8924_v31 }
 0x398   : > { %5014 = vmatpush.bf16.msra.mxu1 %v8907_v39 }
 0x399   : > { %5028 = vmatpush.bf16.msra.mxu2 %v8915_v44  ;;  %5054 = vmatpush.bf16.msrb.mxu0 %v8933_v41 }
 0x39a   : > { %5042 = vmatpush.bf16.msra.mxu3 %v8923_v20 }
 0x39c   : > { %5015 = vmatpush.bf16.msra.mxu1 %v8906_v45 }
 0x39d   : > { %5029 = vmatpush.bf16.msra.mxu2 %v8914_v55  ;;  %v8932_v55 = vld [vmem:[#allocation10 + $0xd8] sm:$0xff] }
 0x39e   : > { %5043 = vmatpush.bf16.msra.mxu3 %v8922_v21  ;;  %5055 = vmatpush.bf16.msrb.mxu0 %v8932_v55  ;;  %v4698_v21 = vlaneseq }
 0x39f   : > { %v4481_v62 = vpop.f32.mrf.mxu0 }
 0x3a0   : > { %5016 = vmatpush.bf16.msra.mxu1 %v8905_v30  ;;  %v4495_v63 = vpop.f32.mrf.mxu1  ;;  %v4482_v48 = vadd.f32 %v4481_v62, %v4468_v2  ;;  %v3395_v62 = vperm.slane %v10456_v59, 3 }
 0x3a1   : > { %5030 = vmatpush.bf16.msra.mxu2 %v8913_v52 }
 0x3a2   : > { %v4496_v11 = vadd.f32 %v4495_v63, %v4482_v48  ;;  %5044 = vmatpush.bf16.msra.mxu3 %v8921_v27  ;;  %5056 = vmatpush.bf16.msrb.mxu0 %v8931_v60 }
 0x3a3   : > { %5017 = vmatmul.bf16.vlgmr.msra.gmra.mxu1 %v4789_v53 }
 0x3a6   : > { %5057 = vmatpush.bf16.msrb.mxu0 %v8930_v54 }
 0x3a7   : > { %v4509_v5 = vpop.f32.mrf.mxu2  ;;  %v4483_v7 = vpop.f32.mrf.mxu0 }
 0x3a8   : > { %v4523_v9 = vpop.f32.mrf.mxu3  ;;  %v4484_v12 = vadd.f32 %v4483_v7, %v4470_v4  ;;  %v4497_v13 = vpop.f32.mrf.mxu1  ;;  %v4510_v8 = vadd.f32 %v4509_v5, %v4496_v11 }
 0x3aa   : > { %v4498_v14 = vadd.f32 %v4497_v13, %v4484_v12  ;;  %v4524_v16 = vadd.f32 %v4523_v9, %v4510_v8  ;;  %5058 = vmatpush.bf16.msrb.mxu0 %v8929_v57 }
 0x3af   : > { %v4511_v15 = vpop.f32.mrf.mxu2 }
 0x3b0   : > { %v4512_v34 = vadd.f32 %v4511_v15, %v4498_v14  ;;  %v4525_v42 = vpop.f32.mrf.mxu3 }
 0x3b2   : > { %v4526_v18 = vadd.f32 %v4525_v42, %v4512_v34 }
 0x3b4   : > { %v4790_v19 = vpack.c.bf16 %v4526_v18, %v4524_v16 }
 0x3b6   : > { %5031 = vmatmul.bf16.vlgmr.msra.gmra.mxu2 %v4790_v19 }
 0x3bf   : > { %v4537_v17 = vpop.f32.mrf.mxu0 }
 0x3c0   : > { %v4551_v23 = vpop.f32.mrf.mxu1  ;;  %v4538_v51 = vadd.f32 %v4537_v17, %v3394_v36 }
 0x3c2   : > { %v4552_v25 = vadd.f32 %v4551_v23, %v4538_v51 }
 0x3c7   : > { %v4565_v43 = vpop.f32.mrf.mxu2  ;;  %v4539_v29 = vpop.f32.mrf.mxu0 }
 0x3c8   : > { %v4553_v33 = vpop.f32.mrf.mxu1  ;;  %v4579_v35 = vpop.f32.mrf.mxu3  ;;  %v4540_v37 = vadd.f32 %v4539_v29, %v3394_v36  ;;  %v4566_v39 = vadd.f32 %v4565_v43, %v4552_v25  ;;  %v4699_v36 = vshrl.u32 %v4698_v21, 7 }
 0x3ca   : > { %v4554_v38 = vadd.f32 %v4553_v33, %v4540_v37  ;;  %v4580_v22 = vadd.f32 %v4579_v35, %v4566_v39  ;;  %v10473_v29 = vand.u32 7, %v4699_v36  ;;  %v4700_v39 = vadd.s32 8, %v4699_v36 }
 0x3cc   : > { %vm5073_vm2 = vcmp.ge.s32.totalorder %v10473_v29, 2  ;;  %vm5102_vm5 = vcmp.ge.s32.totalorder %v10473_v29, 1  ;;  %vm5287_vm9 = vcmp.ge.s32.totalorder %v10473_v29, 4  ;;  %v8944_v29 = vld [vmem:[%s10748_s30 + $0x8] sm:$0xff] }
 0x3cd   : > { %5469 = vmatpush.bf16.msra.mxu0 %v8944_v29 }
 0x3cf   : > { %v4567_v40 = vpop.f32.mrf.mxu2 }
 0x3d0   : > { %v4568_v46 = vadd.f32 %v4567_v40, %v4554_v38  ;;  %v4581_v0 = vpop.f32.mrf.mxu3 }
 0x3d2   : > { %v4582_v30 = vadd.f32 %v4581_v0, %v4568_v46  ;;  %v10485_v46 = vand.u32 7, %v4700_v39 }
 0x3d4   : > { %vm5074_vm4 = vcmp.ge.s32.totalorder %v10485_v46, 2  ;;  %vm5103_vm6 = vcmp.ge.s32.totalorder %v10485_v46, 1  ;;  %vm5288_vm10 = vcmp.ge.s32.totalorder %v10485_v46, 4 }
 0x3df   : > { %v4593_v44 = vpop.f32.mrf.mxu0 }
 0x3e0   : > { %v4607_v45 = vpop.f32.mrf.mxu1  ;;  %v4594_v24 = vadd.f32 %v4593_v44, %v4580_v22 }
 0x3e2   : > { %v4608_v49 = vadd.f32 %v4607_v45, %v4594_v24 }
 0x3e7   : > { %v4595_v47 = vpop.f32.mrf.mxu0  ;;  %v4621_v58 = vpop.f32.mrf.mxu2 }
 0x3e8   : > { %v4596_v50 = vadd.f32 %v4595_v47, %v4582_v30  ;;  %v4609_v52 = vpop.f32.mrf.mxu1  ;;  %v4635_v61 = vpop.f32.mrf.mxu3  ;;  %v4622_v3 = vadd.f32 %v4621_v58, %v3395_v62  ;;  %v8938_v58 = vld [vmem:[#allocation13 + $0x8] sm:$0xff] }
 0x3e9   : > { %5160 = vmatpush.bf16.msrb.mxu1 %v8938_v58 }
 0x3ea   : > { %v4610_v53 = vadd.f32 %v4609_v52, %v4596_v50  ;;  %v4636_v5 = vadd.f32 %v4635_v61, %v4622_v3  ;;  %v9079_v50 = vld [vmem:[#allocation14 + $0xa] ss:$0 sm:$0xff] }
 0x3ec   : > { %v4791_v56 = vpack.c.bf16 %v4610_v53, %v4608_v49 }
 0x3ee   : > { %5045 = vmatmul.bf16.vlgmr.msra.gmra.mxu3 %v4791_v56 }
 0x3ef   : > { %v4623_v63 = vpop.f32.mrf.mxu2 }
 0x3f0   : > { %v4637_v1 = vpop.f32.mrf.mxu3  ;;  %v4624_v48 = vadd.f32 %v4623_v63, %v3395_v62  ;;  %v8937_v62 = vld [vmem:[#allocation13] sm:$0xff] }
 0x3f1   : > { %5161 = vmatpush.bf16.msrb.mxu1 %v8937_v62 }
 0x3f2   : > { %v4638_v7 = vadd.f32 %v4637_v1, %v4624_v48 }
 0x3ff   : > { %v4649_v2 = vpop.f32.mrf.mxu0 }
 0x400   : > { %v4663_v4 = vpop.f32.mrf.mxu1  ;;  %v4650_v9 = vadd.f32 %v4649_v2, %v4636_v5 }
 0x402   : > { %v4664_v13 = vadd.f32 %v4663_v4, %v4650_v9 }
 0x407   : > { %v4677_v6 = vpop.f32.mrf.mxu2  ;;  %v4651_v11 = vpop.f32.mrf.mxu0 }
 0x408   : > { %v4691_v10 = vpop.f32.mrf.mxu3  ;;  %v4652_v12 = vadd.f32 %v4651_v11, %v4638_v7  ;;  %v4665_v8 = vpop.f32.mrf.mxu1  ;;  %v4678_v14 = vadd.f32 %v4677_v6, %v4664_v13  ;;  %v9080_v13 = vld [vmem:[#allocation14 + $0xc] ss:$0 sm:$0xff] }
 0x40a   : > { %v4666_v15 = vadd.f32 %v4665_v8, %v4652_v12  ;;  %v4692_v16 = vadd.f32 %v4691_v10, %v4678_v14 }
 0x40f   : > { %v4679_v34 = vpop.f32.mrf.mxu2  ;;  %v4812_v31 = vpop.f32.mrf.mxu0 }
 0x410   : > { %v4680_v42 = vadd.f32 %v4679_v34, %v4666_v15  ;;  %v4693_v59 = vpop.f32.mrf.mxu3 }
 0x412   : > { %v4694_v18 = vadd.f32 %v4693_v59, %v4680_v42 }
 0x414   : > { %v4792_v19 = vpack.c.bf16 %v4694_v18, %v4692_v16 }
 0x416   : > { %5059 = vmatmul.bf16.vlgmr.msrb.gmra.mxu0 %v4792_v19 }
 0x417   : > { %v4814_v17 = vpop.f32.mrf.mxu0 }
 0x420   : > { %v5018_v20 = vpop.f32.mrf.mxu1 }
 0x421   : > { %v5019_v26 = vadd.f32 %v5018_v20, %v4812_v31 }
 0x428   : > { %v5020_v43 = vpop.f32.mrf.mxu1 }
 0x429   : > { %v5021_v35 = vadd.f32 %v5020_v43, %v4814_v17  ;;  %v9081_v17 = vld [vmem:[#allocation14 + $0xb] ss:$0 sm:$0xff] }
 0x439   : > { %v5032_v27 = vpop.f32.mrf.mxu2 }
 0x43a   : > { %v5033_v28 = vadd.f32 %v5032_v27, %v5019_v26 }
 0x441   : > { %v5034_v25 = vpop.f32.mrf.mxu2 }
 0x442   : > { %v5035_v41 = vadd.f32 %v5034_v25, %v5021_v35  ;;  %v8940_v35 = vld [vmem:[#allocation13 + $0x18] sm:$0xff]  ;;  %v8939_v25 = vld [vmem:[#allocation13 + $0x10] sm:$0xff] }
 0x443   : > { %5270 = vmatpush.bf16.msrb.mxu2 %v8940_v35 }
 0x447   : > { %5271 = vmatpush.bf16.msrb.mxu2 %v8939_v25 }
 0x471   : > { %v5046_v23 = vpop.f32.mrf.mxu3 }
 0x472   : > { %v5047_v51 = vadd.f32 %v5046_v23, %v5033_v28 }
 0x479   : > { %v5048_v40 = vpop.f32.mrf.mxu3 }
 0x47a   : > { %v5049_v45 = vadd.f32 %v5048_v40, %v5035_v41 }
 0x493   : > { %v5060_v32 = vpop.f32.mrf.mxu0 }
 0x494   : > { %v10475_v33 = vadd.f32 %v5060_v32, %v5047_v51 }
 0x496   : > { %v5092_v37 = vrot.slane %v10475_v33, 7  ;;  %v5067_v38 = vrot.slane %v10475_v33, 6 }
 0x498   : > { %5095 = vrot.lane.b32.xlu0 %v5092_v37, %s9405_s5  ;;  %v5072_v44 = vsel %vm4799_vm0, 0.0, %v5067_v38 }
 0x499   : > { %v5079_v22 = vsel %vm5073_vm2, %v5072_v44, 0.0 }
 0x49a   : > { %5083 = vrot.lane.b32.xlu1 %v5079_v22, %s9406_s25 }
 0x49b   : > { %v5062_v0 = vpop.f32.mrf.mxu0 }
 0x49c   : > { %v10487_v55 = vadd.f32 %v5062_v0, %v5049_v45 }
 0x49e   : > { %v5093_v24 = vrot.slane %v10487_v55, 7  ;;  %v5068_v30 = vrot.slane %v10487_v55, 6 }
 0x4a0   : > { %v5094_v60 = vsel %vm5091_vm3, %v5092_v37, %v5093_v24  ;;  %v5069_v47 = vsel %vm4799_vm0, %v5067_v38, %v5068_v30 }
 0x4a1   : > { %5097 = vrot.lane.b32.xlu0 %v5094_v60, %s9405_s5  ;;  %v5080_v49 = vsel %vm5074_vm4, %v5069_v47, 0.0 }
 0x4a2   : > { %5085 = vrot.lane.b32.xlu1 %v5080_v49, %s9406_s25 }
 0x4a9   : > { %5123 = vrot.lane.b32.xlu0 %v9079_v50, %s9406_s25 }
 0x50a   : > { %v5096_v52 = vpop.permute.xlu0 %5095 }
 0x50b   : > { %v5101_v53 = vsel %vm5091_vm3, 0.0, %v5096_v52 }
 0x50c   : > { %v5108_v54 = vsel %vm5102_vm5, %v5101_v53, 0.0  ;;  %v5084_v61 = vpop.permute.xlu1 %5083 }
 0x50d   : > { %5112 = vrot.lane.b32.xlu2 %v5108_v54, %s9406_s25  ;;  %v5089_v1 = vadd.f32 %v5084_v61, %v10475_v33 }
 0x513   : > { %v5098_v56 = vpop.permute.xlu0 %5097 }
 0x514   : > { %v5109_v57 = vsel %vm5103_vm6, %v5098_v56, 0.0  ;;  %v5086_v2 = vpop.permute.xlu1 %5085 }
 0x515   : > { %5114 = vrot.lane.b32.xlu2 %v5109_v57, %s9406_s25  ;;  %v5090_v48 = vadd.f32 %v5086_v2, %v10487_v55 }
 0x51b   : > { %v5124_v4 = vpop.permute.xlu0 %5123 }
 0x567   : > { %v5113_v63 = vpop.permute.xlu2 %5112 }
 0x568   : > { %v5118_v3 = vadd.f32 %v5113_v63, %v5089_v1 }
 0x56a   : > { %v5126_v6 = vadd.f32 %v5124_v4, %v5118_v3 }
 0x56c   : > { %v5128_v10 = vmax.f32 %v5126_v6, 0.0  ;;  %v9082_v6 = vld [vmem:[#allocation14 + $0xd] ss:$0 sm:$0xff] }
 0x56f   : > { %v5115_v5 = vpop.permute.xlu2 %5114 }
 0x570   : > { %v5119_v7 = vadd.f32 %v5115_v5, %v5090_v48 }
 0x572   : > { %v5127_v9 = vadd.f32 %v5124_v4, %v5119_v7 }
 0x574   : > { %v5129_v11 = vmax.f32 %v5127_v9, 0.0 }
 0x576   : > { %v5134_v12 = vpack.c.bf16 %v5129_v11, %v5128_v10 }
 0x578   : > { %5136 = vrot.lane.b32.xlu1 %v5134_v12, %s9406_s25 }
 0x580   : > { %5223 = vrot.lane.b32.xlu1 %v9080_v13, %s9405_s5  ;;  %v8942_v13 = vld [vmem:[#allocation13 + $0x28] sm:$0xff] }
 0x581   : > { %5367 = vmatpush.bf16.msrb.mxu3 %v8942_v13 }
 0x5ea   : > { %v5137_v8 = vpop.permute.xlu1 %5136 }
 0x5eb   : > { %8261 = vmatmul.msk.bf16.vlgmr.msrb.gmra.mxu1 %vm5150_vm7, %v5137_v8  ;;  %v8941_v8 = vld [vmem:[#allocation13 + $0x20] sm:$0xff] }
 0x5ec   : > { %5368 = vmatpush.bf16.msrb.mxu3 %v8941_v8 }
 0x5f2   : > { %v5224_v36 = vpop.permute.xlu1 %5223 }
 0x5f3   : > { %v5226_v28 = vadd.f32 %v5224_v36, %v10475_v33  ;;  %v5227_v32 = vadd.f32 %v5224_v36, %v10487_v55 }
 0x668   : > { %v5163_v14 = vpop.f32.mrf.mxu1 }
 0x669   : > { %v5188_v15 = vrot.slane %v5163_v14, 7  ;;  %v5170_v34 = vrot.slane %v5163_v14, 6 }
 0x66b   : > { %5191 = vrot.lane.b32.xlu2 %v5188_v15, %s9405_s5  ;;  %v5175_v42 = vsel %vm4799_vm0, 0.0, %v5170_v34 }
 0x66c   : > { %v5176_v18 = vsel %vm5073_vm2, %v5175_v42, 0.0 }
 0x670   : > { %v5165_v59 = vpop.f32.mrf.mxu1 }
 0x671   : > { %v5189_v16 = vrot.slane %v5165_v59, 7  ;;  %v5171_v31 = vrot.slane %v5165_v59, 6 }
 0x673   : > { %5180 = vrot.lane.b32.xlu2 %v5176_v18, %s9406_s25  ;;  %v5190_v19 = vsel %vm5091_vm3, %v5188_v15, %v5189_v16  ;;  %v5172_v20 = vsel %vm4799_vm0, %v5170_v34, %v5171_v31 }
 0x674   : > { %5193 = vrot.lane.b32.xlu0 %v5190_v19, %s9405_s5  ;;  %v5177_v21 = vsel %vm5074_vm4, %v5172_v20, 0.0 }
 0x67c   : > { %5182 = vrot.lane.b32.xlu0 %v5177_v21, %s9406_s25 }
 0x684   : > { %5213 = vrot.lane.b32.xlu0 %v9081_v17, %s9406_s25 }
 0x6c5   : > { %v5192_v27 = vpop.permute.xlu2 %5191 }
 0x6c6   : > { %v5197_v23 = vsel %vm5091_vm3, 0.0, %v5192_v27 }
 0x6c7   : > { %v5198_v26 = vsel %vm5102_vm5, %v5197_v23, 0.0 }
 0x6c8   : > { %5202 = vrot.lane.b32.xlu1 %v5198_v26, %s9406_s25 }
 0x6cd   : > { %v5181_v38 = vpop.permute.xlu2 %5180 }
 0x6ce   : > { %v5186_v33 = vadd.f32 %v5181_v38, %v5163_v14 }
 0x6d0   : > { %5230 = vrot.lane.b32.xlu1 %v5226_v28, %s9405_s5 }
 0x6e6   : > { %v5194_v43 = vpop.permute.xlu0 %5193 }
 0x6e7   : > { %v5199_v51 = vsel %vm5103_vm6, %v5194_v43, 0.0 }
 0x6e8   : > { %5204 = vrot.lane.b32.xlu2 %v5199_v51, %s9406_s25 }
 0x6ee   : > { %v5183_v37 = vpop.permute.xlu0 %5182 }
 0x6ef   : > { %v5187_v44 = vadd.f32 %v5183_v37, %v5165_v59 }
 0x6f0   : > { %5232 = vrot.lane.b32.xlu2 %v5227_v32, %s9405_s5 }
 0x6f6   : > { %v5214_v41 = vpop.permute.xlu0 %5213 }
 0x73a   : > { %v5203_v39 = vpop.permute.xlu1 %5202 }
 0x73b   : > { %v5208_v40 = vadd.f32 %v5203_v39, %v5186_v33 }
 0x73d   : > { %v5216_v45 = vadd.f32 %v5214_v41, %v5208_v40  ;;  %v9083_v40 = vld [vmem:[#allocation14 + $0xe] ss:$0 sm:$0xff] }
 0x73f   : > { %v5218_v60 = vmax.f32 %v5216_v45, 0.0 }
 0x742   : > { %v5205_v22 = vpop.permute.xlu2 %5204  ;;  %v5231_v30 = vpop.permute.xlu1 %5230 }
 0x743   : > { %v5209_v0 = vadd.f32 %v5205_v22, %v5187_v44  ;;  %v10536_v55 = vadd.f32 %v5231_v30, %v5218_v60 }
 0x745   : > { %v5217_v24 = vadd.f32 %v5214_v41, %v5209_v0  ;;  %v5238_v52 = vmax.f32 %v10536_v55, 0.0 }
 0x747   : > { %v5219_v47 = vmax.f32 %v5217_v24, 0.0 }
 0x74a   : > { %v5233_v49 = vpop.permute.xlu2 %5232 }
 0x74b   : > { %v10538_v50 = vadd.f32 %v5233_v49, %v5219_v47 }
 0x74d   : > { %v5239_v53 = vmax.f32 %v10538_v50, 0.0 }
 0x74f   : > { %v5245_v54 = vpack.c.bf16 %v5239_v53, %v5238_v52 }
 0x751   : > { %5247 = vrot.lane.b32.xlu0 %v5245_v54, %s9406_s25 }
 0x7c3   : > { %v5248_v56 = vpop.permute.xlu0 %5247 }
 0x7c4   : > { %8270 = vmatmul.msk.bf16.vlgmr.msrb.gmra.mxu2 %vm5150_vm7, %v5248_v56 }
 0x847   : > { %v5273_v57 = vpop.f32.mrf.mxu2 }
 0x848   : > { %v5281_v58 = vrot.slane %v5273_v57, 4  ;;  %v5305_v61 = vrot.slane %v5273_v57, 6 }
 0x84a   : > { %5308 = vrot.lane.b32.xlu1 %v5305_v61, %s9405_s5  ;;  %v5286_v62 = vsel %vm5280_vm8, 0.0, %v5281_v58 }
 0x84b   : > { %v5293_v63 = vsel %vm5287_vm9, %v5286_v62, 0.0 }
 0x84c   : > { %5297 = vrot.lane.b32.xlu0 %v5293_v63, %s9406_s25  ;;  %v8943_v63 = vld [vmem:[%s10748_s30] sm:$0xff] }
 0x84d   : > { %5470 = vmatpush.bf16.msra.mxu0 %v8943_v63 }
 0x84f   : > { %v5275_v1 = vpop.f32.mrf.mxu2 }
 0x850   : > { %v5282_v2 = vrot.slane %v5275_v1, 4  ;;  %v5306_v3 = vrot.slane %v5275_v1, 6 }
 0x852   : > { %v5307_v4 = vsel %vm4799_vm0, %v5305_v61, %v5306_v3  ;;  %v5283_v48 = vsel %vm5280_vm8, %v5281_v58, %v5282_v2 }
 0x853   : > { %5310 = vrot.lane.b32.xlu2 %v5307_v4, %s9405_s5  ;;  %v5294_v5 = vsel %vm5288_vm10, %v5283_v48, 0.0 }
 0x854   : > { %5299 = vrot.lane.b32.xlu1 %v5294_v5, %s9406_s25 }
 0x85c   : > { %5330 = vrot.lane.b32.xlu1 %v9082_v6, %s9406_s25 }
 0x8ad   : > { %v5311_v7 = vpop.permute.xlu2 %5310 }
 0x8ae   : > { %v5316_v9 = vsel %vm5074_vm4, %v5311_v7, 0.0 }
 0x8af   : > { %5321 = vrot.lane.b32.xlu0 %v5316_v9, %s9406_s25 }
 0x8bc   : > { %v5309_v10 = vpop.permute.xlu1 %5308 }
 0x8bd   : > { %v5314_v11 = vsel %vm4799_vm0, 0.0, %v5309_v10 }
 0x8be   : > { %v5315_v12 = vsel %vm5073_vm2, %v5314_v11, 0.0  ;;  %v5298_v15 = vpop.permute.xlu0 %5297 }
 0x8bf   : > { %5319 = vrot.lane.b32.xlu2 %v5315_v12, %s9406_s25  ;;  %v5303_v42 = vadd.f32 %v5298_v15, %v5273_v57 }
 0x8c6   : > { %v5300_v14 = vpop.permute.xlu1 %5299 }
 0x8c7   : > { %v5304_v18 = vadd.f32 %v5300_v14, %v5275_v1 }
 0x8ce   : > { %v5331_v16 = vpop.permute.xlu1 %5330 }
 0x919   : > { %v5320_v34 = vpop.permute.xlu2 %5319 }
 0x91a   : > { %v5325_v59 = vadd.f32 %v5320_v34, %v5303_v42 }
 0x91c   : > { %v5333_v31 = vadd.f32 %v5331_v16, %v5325_v59 }
 0x91e   : > { %v5335_v17 = vmax.f32 %v5333_v31, 0.0 }
 0x921   : > { %v5322_v19 = vpop.permute.xlu0 %5321 }
 0x922   : > { %v5326_v20 = vadd.f32 %v5322_v19, %v5304_v18 }
 0x924   : > { %v5334_v21 = vadd.f32 %v5331_v16, %v5326_v20 }
 0x926   : > { %v5336_v27 = vmax.f32 %v5334_v21, 0.0 }
 0x928   : > { %v5342_v23 = vpack.c.bf16 %v5336_v27, %v5335_v17 }
 0x92a   : > { %5344 = vrot.lane.b32.xlu2 %v5342_v23, %s9406_s25 }
 0x984   : > { %v5345_v26 = vpop.permute.xlu2 %5344 }
 0x985   : > { %8279 = vmatmul.msk.bf16.vlgmr.msrb.gmra.mxu3 %vm5150_vm7, %v5345_v26 }
 0xa08   : > { %v5370_v36 = vpop.f32.mrf.mxu3 }
 0xa09   : > { %v5377_v28 = vrot.slane %v5370_v36, 4  ;;  %v5395_v43 = vrot.slane %v5370_v36, 6 }
 0xa0b   : > { %5398 = vrot.lane.b32.xlu0 %v5395_v43, %s9405_s5  ;;  %v5382_v51 = vsel %vm5280_vm8, 0.0, %v5377_v28 }
 0xa0c   : > { %v5383_v32 = vsel %vm5287_vm9, %v5382_v51, 0.0  ;;  %v8950_v51 = vld [vmem:[%s10748_s30 + $0x38] sm:$0xff] }
 0xa0d   : > { %5387 = vrot.lane.b32.xlu2 %v5383_v32, %s9406_s25  ;;  %v8946_v32 = vld [vmem:[%s10748_s30 + $0x18] sm:$0xff]  ;;  %5594 = vmatpush.bf16.msra.mxu3 %v8950_v51  ;;  %v8965_v51 = vld [vmem:[%s10748_s30 + $0xb0] sm:$0xff] }
 0xa0e   : > { %5510 = vmatpush.bf16.msra.mxu1 %v8946_v32 }
 0xa10   : > { %v5372_v35 = vpop.f32.mrf.mxu3 }
 0xa11   : > { %v5378_v25 = vrot.slane %v5372_v35, 4  ;;  %v5396_v37 = vrot.slane %v5372_v35, 6 }
 0xa13   : > { %v5397_v38 = vsel %vm4799_vm0, %v5395_v43, %v5396_v37  ;;  %v5379_v39 = vsel %vm5280_vm8, %v5377_v28, %v5378_v25  ;;  %v8948_v43 = vld [vmem:[%s10748_s30 + $0x28] sm:$0xff]  ;;  %v8949_v25 = vld [vmem:[%s10748_s30 + $0x30] sm:$0xff] }
 0xa14   : > { %5400 = vrot.lane.b32.xlu1 %v5397_v38, %s9405_s5  ;;  %v5384_v33 = vsel %vm5288_vm10, %v5379_v39, 0.0  ;;  %5552 = vmatpush.bf16.msra.mxu2 %v8948_v43  ;;  %v8945_v37 = vld [vmem:[%s10748_s30 + $0x10] sm:$0xff]  ;;  %v8952_v38 = vld [vmem:[%s10748_s30 + $0x48] sm:$0xff] }
 0xa15   : > { %5389 = vrot.lane.b32.xlu0 %v5384_v33, %s9406_s25  ;;  %5595 = vmatpush.bf16.msra.mxu3 %v8949_v25  ;;  %v8956_v39 = vld [vmem:[%s10748_s30 + $0x68] sm:$0xff]  ;;  %v8958_v33 = vld [vmem:[%s10748_s30 + $0x78] sm:$0xff] }
 0xa16   : > { %5511 = vmatpush.bf16.msra.mxu1 %v8945_v37  ;;  %5636 = vmatpush.bf16.msrb.mxu0 %v8952_v38  ;;  %v9085_v43 = vld [vmem:[#allocation14 + $0x10] ss:$0 sm:$0xff] }
 0xa17   : > { %v8964_v25 = vld [vmem:[%s10748_s30 + $0xa8] sm:$0xff] }
 0xa19   : > { %5762 = vmatpush.bf16.msrb.mxu3 %v8958_v33 }
 0xa1d   : > { %5420 = vrot.lane.b32.xlu0 %v9083_v40, %s9406_s25  ;;  %v8951_v40 = vld [vmem:[%s10748_s30 + $0x40] sm:$0xff] }
 0xa1e   : > { %5637 = vmatpush.bf16.msrb.mxu0 %v8951_v40 }
 0xa67   : > { %v5388_v24 = vpop.permute.xlu2 %5387 }
 0xa68   : > { %v5393_v58 = vadd.f32 %v5388_v24, %v5370_v36 }
 0xa7d   : > { %v5399_v41 = vpop.permute.xlu0 %5398 }
 0xa7e   : > { %v5404_v44 = vsel %vm4799_vm0, 0.0, %v5399_v41 }
 0xa7f   : > { %v5405_v22 = vsel %vm5073_vm2, %v5404_v44, 0.0  ;;  %v8954_v44 = vld [vmem:[%s10748_s30 + $0x58] sm:$0xff] }
 0xa80   : > { %5409 = vrot.lane.b32.xlu1 %v5405_v22, %s9406_s25  ;;  %v8955_v22 = vld [vmem:[%s10748_s30 + $0x60] sm:$0xff]  ;;  %5678 = vmatpush.bf16.msrb.mxu1 %v8954_v44 }
 0xa86   : > { %v5401_v45 = vpop.permute.xlu1 %5400 }
 0xa87   : > { %v5406_v0 = vsel %vm5074_vm4, %v5401_v45, 0.0  ;;  %v5390_v30 = vpop.permute.xlu0 %5389  ;;  %v8957_v45 = vld [vmem:[%s10748_s30 + $0x70] sm:$0xff] }
 0xa88   : > { %5411 = vrot.lane.b32.xlu2 %v5406_v0, %s9406_s25  ;;  %v5394_v47 = vadd.f32 %v5390_v30, %v5372_v35  ;;  %v8947_v35 = vld [vmem:[%s10748_s30 + $0x20] sm:$0xff]  ;;  %5763 = vmatpush.bf16.msrb.mxu3 %v8957_v45  ;;  %v8953_v0 = vld [vmem:[%s10748_s30 + $0x50] sm:$0xff] }
 0xa89   : > { %5553 = vmatpush.bf16.msra.mxu2 %v8947_v35  ;;  %5679 = vmatpush.bf16.msrb.mxu1 %v8953_v0 }
 0xa8d   : > { %5720 = vmatpush.bf16.msrb.mxu2 %v8956_v39  ;;  %v8963_v39 = vld [vmem:[%s10748_s30 + $0xa0] sm:$0xff] }
 0xa8f   : > { %v5421_v54 = vpop.permute.xlu0 %5420 }
 0xa91   : > { %5721 = vmatpush.bf16.msrb.mxu2 %v8955_v22 }
 0xae2   : > { %v5412_v60 = vpop.permute.xlu2 %5411 }
 0xae3   : > { %v5416_v49 = vadd.f32 %v5412_v60, %v5394_v47 }
 0xae5   : > { %v5424_v56 = vadd.f32 %v5421_v54, %v5416_v49 }
 0xae7   : > { %v5426_v57 = vmax.f32 %v5424_v56, 0.0 }
 0xae9   : > { %v5428_v46 = vadd.f32 %v5426_v57, %v5239_v53 }
 0xaeb   : > { %v5430_v2 = vmax.f32 %v5428_v46, 0.0 }
 0xaed   : > { %v5437_v5 = vrot.slane %v5430_v2, 7  ;;  %v5562_v6 = vrot.slane %v5430_v2, 2  ;;  %v5520_v9 = vrot.slane %v5430_v2, 1  ;;  %v5688_v55 = vrot.slane %v5430_v2, 5 }
 0xaee   : > { %v5604_v42 = vrot.slane %v5430_v2, 3  ;;  %v5646_v21 = vrot.slane %v5430_v2, 4  ;;  %v5730_v23 = vrot.slane %v5430_v2, 6 }
 0xaf2   : > { %v5410_v61 = vpop.permute.xlu1 %5409 }
 0xaf3   : > { %v5415_v62 = vadd.f32 %v5410_v61, %v5393_v58  ;;  %v9084_v61 = vld [vmem:[#allocation14 + $0xf] ss:$0 sm:$0xff] }
 0xaf5   : > { %v5423_v1 = vadd.f32 %v5421_v54, %v5415_v62 }
 0xaf7   : > { %v5425_v3 = vmax.f32 %v5423_v1, 0.0 }
 0xaf9   : > { %v5427_v4 = vadd.f32 %v5425_v3, %v5238_v52 }
 0xafb   : > { %v5429_v48 = vmax.f32 %v5427_v4, 0.0 }
 0xafd   : > { %v5439_v7 = vsel %vm5091_vm3, %v5429_v48, %v5437_v5  ;;  %v5560_v50 = vrot.slane %v5429_v48, 3  ;;  %v5518_v53 = vrot.slane %v5429_v48, 2  ;;  %v5686_v13 = vrot.slane %v5429_v48, 6 }
 0xafe   : > { %v5444_v10 = vpack.c.bf16 %v5439_v7, %v5439_v7  ;;  %v5602_v52 = vrot.slane %v5429_v48, 4  ;;  %v5478_v15 = vrot.slane %v5429_v48, 1  ;;  %v5644_v19 = vrot.slane %v5429_v48, 5 }
 0xaff   : > { %v5564_v11 = vsel %vm5091_vm3, %v5560_v50, %v5562_v6  ;;  %v5522_v12 = vsel %vm5091_vm3, %v5518_v53, %v5520_v9  ;;  %v5690_v34 = vsel %vm5091_vm3, %v5686_v13, %v5688_v55  ;;  %v5728_v17 = vrot.slane %v5429_v48, 7  ;;  %v8962_v50 = vld [vmem:[%s10748_s30 + $0x98] sm:$0xff]  ;;  %v8961_v13 = vld [vmem:[%s10748_s30 + $0x90] sm:$0xff]  ;;  %v8960_v55 = vld [vmem:[%s10748_s30 + $0x88] sm:$0xff] }
 0xb00   : > { %5446 = vrot.lane.b32.xlu2 %v5444_v10, %s9406_s25  ;;  %v5569_v8 = vpack.c.bf16 %v5564_v11, %v5564_v11  ;;  %v5527_v14 = vpack.c.bf16 %v5522_v12, %v5522_v12  ;;  %v5606_v59 = vsel %vm5091_vm3, %v5602_v52, %v5604_v42  ;;  %v5480_v16 = vsel %vm5091_vm3, %v5478_v15, %v5430_v2 }
 0xb01   : > { %v5695_v18 = vpack.c.bf16 %v5690_v34, %v5690_v34  ;;  %v5611_v31 = vpack.c.bf16 %v5606_v59, %v5606_v59  ;;  %v5485_v20 = vpack.c.bf16 %v5480_v16, %v5480_v16  ;;  %v5648_v27 = vsel %vm5091_vm3, %v5644_v19, %v5646_v21  ;;  %v8959_v16 = vld [vmem:[%s10748_s30 + $0x80] sm:$0xff] }
 0xb02   : > { %5571 = vrot.lane.b32.xlu0 %v5569_v8, %s9406_s25  ;;  %5529 = vrot.lane.b32.xlu1 %v5527_v14, %s9406_s25  ;;  %v5732_v26 = vsel %vm5091_vm3, %v5728_v17, %v5730_v23  ;;  %v5653_v36 = vpack.c.bf16 %v5648_v27, %v5648_v27 }
 0xb03   : > { %v5737_v28 = vpack.c.bf16 %v5732_v26, %v5732_v26 }
 0xb08   : > { %5697 = vrot.lane.b32.xlu2 %v5695_v18, %s9406_s25 }
 0xb0a   : > { %5613 = vrot.lane.b32.xlu0 %v5611_v31, %s9406_s25  ;;  %5487 = vrot.lane.b32.xlu1 %v5485_v20, %s9406_s25 }
 0xb10   : > { %5655 = vrot.lane.b32.xlu2 %v5653_v36, %s9406_s25 }
 0xb12   : > { %5739 = vrot.lane.b32.xlu1 %v5737_v28, %s9406_s25  ;;  %v8966_v28 = vld [vmem:[%s10748_s30 + $0xb8] sm:$0xff] }
 0xb5a   : > { %v5447_v41 = vpop.permute.xlu2 %5446 }
 0xb5b   : > { %8288 = vmatmul.msk.bf16.vlgmr.msra.gmra.mxu0 %vm5150_vm7, %v5447_v41 }
 0xb5c   : > { %5826 = vmatpush.bf16.msra.mxu0 %v8962_v50 }
 0xb60   : > { %5827 = vmatpush.bf16.msra.mxu0 %v8961_v13 }
 0xb62   : > { %v5698_v49 = vpop.permute.xlu2 %5697 }
 0xb64   : > { %5828 = vmatpush.bf16.msra.mxu0 %v8960_v55 }
 0xb68   : > { %5829 = vmatpush.bf16.msra.mxu0 %v8959_v16 }
 0xb6a   : > { %v5656_v56 = vpop.permute.xlu2 %5655 }
 0xb74   : > { %v5572_v24 = vpop.permute.xlu0 %5571  ;;  %v5530_v30 = vpop.permute.xlu1 %5529 }
 0xb75   : > { %8306 = vmatmul.msk.bf16.vlgmr.msra.gmra.mxu2 %vm5150_vm7, %v5530_v30  ;;  %8315 = vmatmul.msk.bf16.vlgmr.msra.gmra.mxu3 %vm5150_vm7, %v5572_v24 }
 0xb7c   : > { %v5614_v60 = vpop.permute.xlu0 %5613  ;;  %v5488_v47 = vpop.permute.xlu1 %5487 }
 0xb7d   : > { %8297 = vmatmul.msk.bf16.vlgmr.msra.gmra.mxu1 %vm5150_vm7, %v5488_v47  ;;  %8324 = vmatmul.msk.bf16.vlgmr.msrb.gmra.mxu0 %vm5150_vm7, %v5614_v60 }
 0xb7e   : > { %5886 = vmatpush.bf16.msra.mxu1 %v8966_v28 }
 0xb82   : > { %5887 = vmatpush.bf16.msra.mxu1 %v8965_v51 }
 0xb84   : > { %v5740_v54 = vpop.permute.xlu1 %5739 }
 0xb85   : > { %8342 = vmatmul.msk.bf16.vlgmr.msrb.gmra.mxu2 %vm5150_vm7, %v5698_v49  ;;  %8351 = vmatmul.msk.bf16.vlgmr.msrb.gmra.mxu3 %vm5150_vm7, %v5740_v54  ;;  %v9086_v49 = vld [vmem:[#allocation14 + $0x11] ss:$0 sm:$0xff] }
 0xb86   : > { %5888 = vmatpush.bf16.msra.mxu1 %v8964_v25 }
 0xb8a   : > { %5889 = vmatpush.bf16.msra.mxu1 %v8963_v39 }
 0xb8d   : > { %8333 = vmatmul.msk.bf16.vlgmr.msrb.gmra.mxu1 %vm5150_vm7, %v5656_v56 }
 0xbd8   : > { %v5472_v57 = vpop.f32.mrf.mxu0 }
 0xbd9   : > { %v5476_v1 = vadd.f32 %v9084_v61, %v5472_v57 }
 0xbe0   : > { %v5474_v58 = vpop.f32.mrf.mxu0 }
 0xbf8   : > { %v5555_v29 = vpop.f32.mrf.mxu2  ;;  %v5597_v46 = vpop.f32.mrf.mxu3 }
 0xbfa   : > { %v5513_v62 = vpop.f32.mrf.mxu1  ;;  %v5639_v63 = vpop.f32.mrf.mxu0 }
 0xbfb   : > { %v5517_v2 = vadd.f32 %v5513_v62, %v5476_v1 }
 0xbfd   : > { %v5559_v48 = vadd.f32 %v5555_v29, %v5517_v2 }
 0xbff   : > { %v5601_v7 = vadd.f32 %v5597_v46, %v5559_v48 }
 0xc00   : > { %v5557_v3 = vpop.f32.mrf.mxu2  ;;  %v5599_v4 = vpop.f32.mrf.mxu3 }
 0xc01   : > { %v5643_v10 = vadd.f32 %v5639_v63, %v5601_v7 }
 0xc02   : > { %v5515_v5 = vpop.f32.mrf.mxu1  ;;  %v5641_v6 = vpop.f32.mrf.mxu0 }
 0xc08   : > { %v5723_v53 = vpop.f32.mrf.mxu2  ;;  %v5765_v9 = vpop.f32.mrf.mxu3 }
 0xc0a   : > { %v5681_v11 = vpop.f32.mrf.mxu1 }
 0xc0b   : > { %v5685_v12 = vadd.f32 %v5681_v11, %v5643_v10 }
 0xc0d   : > { %v5727_v8 = vadd.f32 %v5723_v53, %v5685_v12 }
 0xc0f   : > { %v5769_v14 = vadd.f32 %v5765_v9, %v5727_v8 }
 0xc10   : > { %v5725_v52 = vpop.f32.mrf.mxu2  ;;  %v5767_v15 = vpop.f32.mrf.mxu3 }
 0xc11   : > { %v5770_v34 = vand.u32 2147483647, %v5769_v14  ;;  %v5777_v17 = vmax.f32 %v5769_v14, 0.0 }
 0xc12   : > { %v5683_v42 = vpop.f32.mrf.mxu1 }
 0xc13   : > { %v5771_v59 = vsub.f32 0.0, %v5770_v34 }
 0xc15   : > { %v5772_v18 = vmul.f32 1.442695, %v5771_v59 }
 0xc17   : > { %9087 = vpow2.f32 %v5772_v18 }
 0xc1d   : > { %v9088_v19 = vpop.eup %9087 }
 0xc1e   : > { %v5774_v31 = vadd.f32 1.0, %v9088_v19 }
 0xc20   : > { %9089 = vlog2.f32 %v5774_v31 }
 0xc26   : > { %v9090_v20 = vpop.eup %9089 }
 0xc27   : > { %v5776_v21 = vmul.f32 0.6931472, %v9090_v20 }
 0xc29   : > { %v5778_v27 = vadd.f32 %v5777_v17, %v5776_v21 }
 0xc2b   : > { %9091 = vtanh.f32 %v5778_v27 }
 0xc31   : > { %v9092_v23 = vpop.eup %9091 }
 0xc32   : > { %v5780_v26 = vmul.f32 %v9092_v23, %v5769_v14 }
 0xc34   : > { %v5789_v36 = vpack.c.bf16 %v5780_v26, %v5780_v26 }
 0xc36   : > { %8368 = vmatmul.msk.bf16.vlgmr.msra.gmra.mxu0 %vm5818_vm11, %v5789_v36 }
 0xcb3   : > { %v5831_v32 = vpop.f32.mrf.mxu0 }
 0xcb4   : > { %v5832_v35 = vadd.f32 %v9085_v43, %v5831_v32 }
 0xcb6   : > { %v5835_v37 = vand.u32 2147483647, %v5832_v35  ;;  %v5842_v0 = vmax.f32 %v5832_v35, 0.0 }
 0xcb8   : > { %v5836_v38 = vsub.f32 0.0, %v5835_v37 }
 0xcba   : > { %v5837_v33 = vmul.f32 1.442695, %v5836_v38 }
 0xcbb   : > { %v5833_v40 = vpop.f32.mrf.mxu0 }
 0xcbc   : > { %9093 = vpow2.f32 %v5837_v33 }
 0xcc2   : > { %v9094_v41 = vpop.eup %9093 }
 0xcc3   : > { %v5839_v44 = vadd.f32 1.0, %v9094_v41 }
 0xcc5   : > { %9095 = vlog2.f32 %v5839_v44 }
 0xccb   : > { %v9096_v22 = vpop.eup %9095 }
 0xccc   : > { %v5841_v45 = vmul.f32 0.6931472, %v9096_v22 }
 0xcce   : > { %v5843_v24 = vadd.f32 %v5842_v0, %v5841_v45 }
 0xcd0   : > { %9097 = vtanh.f32 %v5843_v24 }
 0xcd6   : > { %v9098_v30 = vpop.eup %9097 }
 0xcd7   : > { %v5845_v60 = vmul.f32 %v9098_v30, %v5832_v35 }
 0xcd9   : > { %v5854_v47 = vpack.c.bf16 %v5845_v60, %v5845_v60 }
 0xcdb   : > { %8385 = vmatmul.msk.bf16.vlgmr.msra.gmra.mxu1 %vm5818_vm11, %v5854_v47 }
 0xd58   : > { %v5891_v54 = vpop.f32.mrf.mxu1 }
 0xd59   : > { %v5899_v56 = vadd.f32 %v9086_v49, %v5891_v54 }
 0xd5b   : > { %9099 = vtanh.f32 %v5899_v56 }
 0xd60   : > { %v5893_v57 = vpop.f32.mrf.mxu1 }
 0xd61   : > { %v9100_v58 = vpop.eup %9099 }
 0xd62   : > { %5902 = vst.msk [vmem:[%s10749_s9] sm:$0x3] %vm5901_vm12, %v9100_v58 }
 0xd63 PF: > { %s10750_s20 = sld [smem:[#allocation22_spill]]  ;;  %s10753_s17 = smov %s9383_s18 }
 0xd64   : > { %s10751_s27 = sld [smem:[#allocation21_spill]] }
 0xd65   : > { %s10752_s19 = sld [smem:[#allocation23_spill]] }
 0xd69   : > { %p27_p4 = scmp.ge.s32.totalorder %s10750_s20, 4  }
 0xd6a   : > { %s10754_s18 = smov %s10751_s27 }
 0xd6b   :  { %29 = sbr.rel (!%p27_p4) target bundleno = 15 (0xf), region = 158 }
 0xd70   :  { %5914 = vsyncpa [#allocation4], 1 }
 0xd71   :  { %5916 = vsyncpa [#allocation4 + $0x1], 1 }
 0xd72   :  { %5917 = vsyncpa [#allocation6], 1 }
 0xd73   :  { %5919 = vsyncpa [#allocation6 + $0x1], 1 }
 0xd74   :  { %5920 = vsyncpa [#allocation9], 1 }
 0xd75   :  { %5921 = vsyncpa [#allocation12], 1 }
 0xd76   :  { %5922 = vsyncpa [#allocation15], 1 }

</bundles_post_ra>
